<compile_context>
chip_gen: v7x
topology: tpu7x:2x2x1
jax: 0.10.0
libtpu: 0.0.40
codegen_flags: <defaults>
</compile_context>

<pallas_src>
import jax
import jax.numpy as jnp
from jax.experimental import pallas as pl
from jax.experimental.pallas import tpu as pltpu

NV = 30  # number of TTA views


def tta30_kernel(x_ref, p_ref, out_ref):
    """out[v] = x @ P[v] for every view handled by this grid step.

    x_ref  : (tn, S^2)           -- tn flattened images (resident across the view axis)
    p_ref  : (nv_blk, S^2, S^2)  -- one-hot selection matrices for nv_blk views
    out_ref: (nv_blk, tn, S^2)
    """
    x = x_ref[...]
    for v in range(out_ref.shape[0]):            # small static unroll (<= 30)
        out_ref[v] = jnp.dot(
            x, p_ref[v], preferred_element_type=jnp.float32
        ).astype(out_ref.dtype)


def _vmem_capacity_bytes():
    try:
        cap = getattr(pltpu.get_tpu_info(), "vmem_capacity_bytes", None)
        if cap:
            return int(cap)
    except Exception:
        pass
    return 64 << 20  # conservative default: v7x per-TensorCore VMEM


def _build_view_tables(S):
    """Row/col source indices + transpose flag for each of the 30 views.

    View v:  out[i, j] = X[rows[v, i], cols[v, j]]   if flags[v] == 0
             out[i, j] = X[cols[v, j], rows[v, i]]   if flags[v] == 1
    Half crops are NN-resized back to (S, S) (base_transforms model).
    """
    full = list(range(S))
    half_lo = [i // 2 for i in range(S)]            # NN-resize of the first half
    half_hi = [S // 2 + i // 2 for i in range(S)]   # NN-resize of the second half
    crops = [(full, full), (half_lo, full), (half_hi, full),
             (full, half_lo), (full, half_hi)]
    rows_l, cols_l, flags_l = [], [], []
    for ri, ci in crops:
        rri, rci = ri[::-1], ci[::-1]
        # per crop: identity, rot90(CCW), rot180, rot270, hflip, vflip
        rows_l += [ri, rci, rri, ci, ri, rri]
        cols_l += [ci, ri, rci, rri, rci, ci]
        flags_l += [0, 1, 0, 1, 0, 0]
    rows = jnp.array(rows_l, jnp.int32)    # (30, S)
    cols = jnp.array(cols_l, jnp.int32)    # (30, S)
    flags = jnp.array(flags_l, jnp.int32)  # (30,)
    return rows, cols, flags


def _selection_matrices(S, dtype):
    """(30, S^2, S^2) one-hot matrices P_v with  out_flat = x_flat @ P_v  (exact)."""
    rows, cols, flags = _build_view_tables(S)
    src_plain = rows[:, :, None] * S + cols[:, None, :]     # flag == 0 : X[r, c]
    src_trans = cols[:, None, :] * S + rows[:, :, None]     # flag == 1 : X[c, r]
    src = jnp.where((flags == 0)[:, None, None], src_plain, src_trans)
    src = src.reshape(NV, S * S)                            # source pixel per output pixel
    eye = jnp.arange(S * S, dtype=jnp.int32)
    return (eye[None, :, None] == src[:, None, :]).astype(dtype)   # P[v, p, o]


def tta_30_views(x):
    N, C, H, W = x.shape
    assert H == W and H % 2 == 0, \
        "base_transforms modeled as NN-resize back to a square, even (H, W)"
    S, S2, NI = H, H * W, N * C

    # --- dtype handling: v7x MXU has no integer path; f32 is exact for pixel data.
    orig_dtype = x.dtype
    compute_dtype = orig_dtype if jnp.issubdtype(orig_dtype, jnp.floating) else jnp.float32
    xc = x.astype(compute_dtype)
    itemsize = jnp.dtype(compute_dtype).itemsize

    # --- generation-aware VMEM budgets.
    vmem_cap = _vmem_capacity_bytes()
    x_budget = min(8 << 20, vmem_cap // 10)        # per x block (double-buffered)
    po_budget = min(6 << 20, vmem_cap // 8)        # per (P + out) block (double-buffered)
    assert S2 * S2 * itemsize <= po_budget, (
        f"spatial size {S} too large for the flattened-pixel selection path")
    # TODO(synk): for large S fall back to a factored per-view A_v @ X @ B_v kernel
    # (with G-image lane packing) instead of (S^2, S^2) selection matrices.

    # --- dtype-aware sublane alignment of the image axis (pad with zero images).
    sub = max(8, 32 // itemsize)                   # 8 rows f32, 16 bf16, 32 int8
    NIp = ((NI + sub - 1) // sub) * sub
    x_flat = xc.reshape(NI, S2)
    if NIp != NI:
        x_flat = jnp.concatenate(
            [x_flat, jnp.zeros((NIp - NI, S2), compute_dtype)], axis=0)

    # --- image tile: largest sublane-aligned divisor of NIp fitting the budget.
    tn_cands = [t for t in range(sub, NIp + 1, sub) if NIp % t == 0]
    fitting = [t for t in tn_cands if t * S2 * itemsize <= x_budget]
    tn = max(fitting) if fitting else min(tn_cands)
    n_tiles = NIp // tn

    # --- views per grid step (amortizes per-step overhead; divisor of 30).
    per_view = (S2 * S2 + tn * S2) * itemsize
    nv_blk = 1
    for v in (30, 15, 10, 6, 5, 3, 2):
        if v * per_view <= po_budget:
            nv_blk = v
            break
    n_vsteps = NV // nv_blk

    p_all = _selection_matrices(S, compute_dtype)   # (30, S^2, S^2)

    # --- explicit VMEM limit from the real (double-buffered) footprint.
    footprint = 2 * (tn * S2 + nv_blk * S2 * S2 + nv_blk * tn * S2) * itemsize
    assert footprint <= int(vmem_cap * 0.9), "VMEM footprint too large; reduce tiles"
    vmem_limit = int(min(max(footprint + (4 << 20), 16 << 20), int(vmem_cap * 0.9)))

    grid_spec = pltpu.PrefetchScalarGridSpec(
        num_scalar_prefetch=0,
        grid=(n_tiles, n_vsteps),          # views innermost -> x block stays resident
        in_specs=[
            pl.BlockSpec((tn, S2), lambda i, g: (i, 0)),              # x_flat
            pl.BlockSpec((nv_blk, S2, S2), lambda i, g: (g, 0, 0)),   # P_v group
        ],
        out_specs=pl.BlockSpec((nv_blk, tn, S2), lambda i, g: (g, i, 0)),
    )

    out = pl.pallas_call(
        tta30_kernel,
        out_shape=jax.ShapeDtypeStruct((NV, NIp, S2), compute_dtype),
        grid_spec=grid_spec,
        compiler_params=pltpu.CompilerParams(
            dimension_semantics=("parallel", "parallel"),
            vmem_limit_bytes=vmem_limit),
    )(x_flat, p_all)

    if NIp != NI:
        out = out[:, :NI]
    out = out.reshape(NV * N, C, S, S)      # free row-major metadata reshape
    return out.astype(orig_dtype) if out.dtype != orig_dtype else out


def reference_tta(x):
    """Pure-JAX reference replicating the PyTorch forward (NN-resize base_transforms)."""
    N, C, H, W = x.shape
    S = H

    def resize_nn(img):
        h, w = img.shape[-2:]
        ri = (jnp.arange(S) * h) // S
        ci = (jnp.arange(S) * w) // S
        return img[..., ri, :][..., :, ci]

    def six(y):
        return [y,
                jnp.rot90(y, 1, axes=(-2, -1)),
                jnp.rot90(y, 2, axes=(-2, -1)),
                jnp.rot90(y, 3, axes=(-2, -1)),
                y[..., :, ::-1],
                y[..., ::-1, :]]

    crops = [x,
             x[..., :H // 2, :], x[..., H // 2:, :],
             x[..., :, :W // 2], x[..., :, W // 2:]]
    out = []
    for c in crops:
        out += six(resize_nn(c))
    return jnp.concatenate(out, axis=0)


if __name__ == "__main__":
    key = jax.random.PRNGKey(0)
    x = jax.random.normal(key, (2, 4, 16, 16), dtype=jnp.float32)

    out = jax.block_until_ready(tta_30_views(x))
    ref = reference_tta(x)

    assert out.shape == (30 * 2, 4, 16, 16), out.shape
    assert jnp.allclose(out, ref, atol=1e-6), float(jnp.max(jnp.abs(out - ref)))
    print("KERNEL_OK")
</pallas_src>

<mosaic_0001>
module attributes {stable_mosaic.version = 11 : i64} {
  func.func @tta30_kernel(%arg0: i32, %arg1: i32, %arg2: memref<8x256xf32, #tpu.memory_space<vmem>>, %arg3: memref<15x256x256xf32, #tpu.memory_space<vmem>>, %arg4: memref<15x8x256xf32, #tpu.memory_space<vmem>>) attributes {dimension_semantics = [#tpu.dimension_semantics<parallel>, #tpu.dimension_semantics<parallel>], iteration_bounds = array<i64: 1, 2>, scalar_prefetch = 0 : i64, scratch_operands = 0 : i64, tpu.core_type = #tpu.core_type<tc>, window_params = [{transform_indices = @transform_0, window_bounds = array<i64: 8, 256>}, {transform_indices = @transform_1, window_bounds = array<i64: 15, 256, 256>}, {transform_indices = @transform_2, window_bounds = array<i64: 15, 8, 256>}]} {
    %c0 = arith.constant 0 : index
    %c0_0 = arith.constant 0 : index
    %0 = vector.load %arg2[%c0, %c0_0] : memref<8x256xf32, #tpu.memory_space<vmem>>, vector<8x256xf32>
    %c0_1 = arith.constant 0 : index
    %c0_2 = arith.constant 0 : index
    %c0_3 = arith.constant 0 : index
    %1 = vector.load %arg3[%c0_1, %c0_2, %c0_3] : memref<15x256x256xf32, #tpu.memory_space<vmem>>, vector<1x256x256xf32>
    %2 = vector.shape_cast %1 : vector<1x256x256xf32> to vector<256x256xf32>
    %cst = arith.constant dense<0.000000e+00> : vector<8x256xf32>
    %3 = tpu.matmul %0, %2, %cst {dimension_numbers = #tpu.dot_dimension_numbers<[1], [0], [0], [1], [0, 0, 1, 1], [], []>} : vector<8x256xf32>, vector<256x256xf32>, vector<8x256xf32> -> vector<8x256xf32>
    %c0_4 = arith.constant 0 : index
    %c0_5 = arith.constant 0 : index
    %c0_6 = arith.constant 0 : index
    %4 = vector.load %arg4[%c0_4, %c0_5, %c0_6] : memref<15x8x256xf32, #tpu.memory_space<vmem>>, vector<1x8x256xf32>
    %5 = vector.shape_cast %4 : vector<1x8x256xf32> to vector<8x256xf32>
    %6 = vector.shape_cast %3 : vector<8x256xf32> to vector<1x8x256xf32>
    tpu.vector_store %arg4[%c0_4, %c0_5, %c0_6], %6 {strides = array<i32>} : memref<15x8x256xf32, #tpu.memory_space<vmem>>, vector<1x8x256xf32>,
    %c1 = arith.constant 1 : index
    %c0_7 = arith.constant 0 : index
    %c0_8 = arith.constant 0 : index
    %7 = vector.load %arg3[%c1, %c0_7, %c0_8] : memref<15x256x256xf32, #tpu.memory_space<vmem>>, vector<1x256x256xf32>
    %8 = vector.shape_cast %7 : vector<1x256x256xf32> to vector<256x256xf32>
    %cst_9 = arith.constant dense<0.000000e+00> : vector<8x256xf32>
    %9 = tpu.matmul %0, %8, %cst_9 {dimension_numbers = #tpu.dot_dimension_numbers<[1], [0], [0], [1], [0, 0, 1, 1], [], []>} : vector<8x256xf32>, vector<256x256xf32>, vector<8x256xf32> -> vector<8x256xf32>
    %c1_10 = arith.constant 1 : index
    %c0_11 = arith.constant 0 : index
    %c0_12 = arith.constant 0 : index
    %10 = vector.load %arg4[%c1_10, %c0_11, %c0_12] : memref<15x8x256xf32, #tpu.memory_space<vmem>>, vector<1x8x256xf32>
    %11 = vector.shape_cast %10 : vector<1x8x256xf32> to vector<8x256xf32>
    %12 = vector.shape_cast %9 : vector<8x256xf32> to vector<1x8x256xf32>
    tpu.vector_store %arg4[%c1_10, %c0_11, %c0_12], %12 {strides = array<i32>} : memref<15x8x256xf32, #tpu.memory_space<vmem>>, vector<1x8x256xf32>,
    %c2 = arith.constant 2 : index
    %c0_13 = arith.constant 0 : index
    %c0_14 = arith.constant 0 : index
    %13 = vector.load %arg3[%c2, %c0_13, %c0_14] : memref<15x256x256xf32, #tpu.memory_space<vmem>>, vector<1x256x256xf32>
    %14 = vector.shape_cast %13 : vector<1x256x256xf32> to vector<256x256xf32>
    %cst_15 = arith.constant dense<0.000000e+00> : vector<8x256xf32>
    %15 = tpu.matmul %0, %14, %cst_15 {dimension_numbers = #tpu.dot_dimension_numbers<[1], [0], [0], [1], [0, 0, 1, 1], [], []>} : vector<8x256xf32>, vector<256x256xf32>, vector<8x256xf32> -> vector<8x256xf32>
    %c2_16 = arith.constant 2 : index
    %c0_17 = arith.constant 0 : index
    %c0_18 = arith.constant 0 : index
    %16 = vector.load %arg4[%c2_16, %c0_17, %c0_18] : memref<15x8x256xf32, #tpu.memory_space<vmem>>, vector<1x8x256xf32>
    %17 = vector.shape_cast %16 : vector<1x8x256xf32> to vector<8x256xf32>
    %18 = vector.shape_cast %15 : vector<8x256xf32> to vector<1x8x256xf32>
    tpu.vector_store %arg4[%c2_16, %c0_17, %c0_18], %18 {strides = array<i32>} : memref<15x8x256xf32, #tpu.memory_space<vmem>>, vector<1x8x256xf32>,
    %c3 = arith.constant 3 : index
    %c0_19 = arith.constant 0 : index
    %c0_20 = arith.constant 0 : index
    %19 = vector.load %arg3[%c3, %c0_19, %c0_20] : memref<15x256x256xf32, #tpu.memory_space<vmem>>, vector<1x256x256xf32>
    %20 = vector.shape_cast %19 : vector<1x256x256xf32> to vector<256x256xf32>
    %cst_21 = arith.constant dense<0.000000e+00> : vector<8x256xf32>
    %21 = tpu.matmul %0, %20, %cst_21 {dimension_numbers = #tpu.dot_dimension_numbers<[1], [0], [0], [1], [0, 0, 1, 1], [], []>} : vector<8x256xf32>, vector<256x256xf32>, vector<8x256xf32> -> vector<8x256xf32>
    %c3_22 = arith.constant 3 : index
    %c0_23 = arith.constant 0 : index
    %c0_24 = arith.constant 0 : index
    %22 = vector.load %arg4[%c3_22, %c0_23, %c0_24] : memref<15x8x256xf32, #tpu.memory_space<vmem>>, vector<1x8x256xf32>
    %23 = vector.shape_cast %22 : vector<1x8x256xf32> to vector<8x256xf32>
    %24 = vector.shape_cast %21 : vector<8x256xf32> to vector<1x8x256xf32>
    tpu.vector_store %arg4[%c3_22, %c0_23, %c0_24], %24 {strides = array<i32>} : memref<15x8x256xf32, #tpu.memory_space<vmem>>, vector<1x8x256xf32>,
    %c4 = arith.constant 4 : index
    %c0_25 = arith.constant 0 : index
    %c0_26 = arith.constant 0 : index
    %25 = vector.load %arg3[%c4, %c0_25, %c0_26] : memref<15x256x256xf32, #tpu.memory_space<vmem>>, vector<1x256x256xf32>
    %26 = vector.shape_cast %25 : vector<1x256x256xf32> to vector<256x256xf32>
    %cst_27 = arith.constant dense<0.000000e+00> : vector<8x256xf32>
    %27 = tpu.matmul %0, %26, %cst_27 {dimension_numbers = #tpu.dot_dimension_numbers<[1], [0], [0], [1], [0, 0, 1, 1], [], []>} : vector<8x256xf32>, vector<256x256xf32>, vector<8x256xf32> -> vector<8x256xf32>
    %c4_28 = arith.constant 4 : index
    %c0_29 = arith.constant 0 : index
    %c0_30 = arith.constant 0 : index
    %28 = vector.load %arg4[%c4_28, %c0_29, %c0_30] : memref<15x8x256xf32, #tpu.memory_space<vmem>>, vector<1x8x256xf32>
    %29 = vector.shape_cast %28 : vector<1x8x256xf32> to vector<8x256xf32>
    %30 = vector.shape_cast %27 : vector<8x256xf32> to vector<1x8x256xf32>
    tpu.vector_store %arg4[%c4_28, %c0_29, %c0_30], %30 {strides = array<i32>} : memref<15x8x256xf32, #tpu.memory_space<vmem>>, vector<1x8x256xf32>,
    %c5 = arith.constant 5 : index
    %c0_31 = arith.constant 0 : index
    %c0_32 = arith.constant 0 : index
    %31 = vector.load %arg3[%c5, %c0_31, %c0_32] : memref<15x256x256xf32, #tpu.memory_space<vmem>>, vector<1x256x256xf32>
    %32 = vector.shape_cast %31 : vector<1x256x256xf32> to vector<256x256xf32>
    %cst_33 = arith.constant dense<0.000000e+00> : vector<8x256xf32>
    %33 = tpu.matmul %0, %32, %cst_33 {dimension_numbers = #tpu.dot_dimension_numbers<[1], [0], [0], [1], [0, 0, 1, 1], [], []>} : vector<8x256xf32>, vector<256x256xf32>, vector<8x256xf32> -> vector<8x256xf32>
    %c5_34 = arith.constant 5 : index
    %c0_35 = arith.constant 0 : index
    %c0_36 = arith.constant 0 : index
    %34 = vector.load %arg4[%c5_34, %c0_35, %c0_36] : memref<15x8x256xf32, #tpu.memory_space<vmem>>, vector<1x8x256xf32>
    %35 = vector.shape_cast %34 : vector<1x8x256xf32> to vector<8x256xf32>
    %36 = vector.shape_cast %33 : vector<8x256xf32> to vector<1x8x256xf32>
    tpu.vector_store %arg4[%c5_34, %c0_35, %c0_36], %36 {strides = array<i32>} : memref<15x8x256xf32, #tpu.memory_space<vmem>>, vector<1x8x256xf32>,
    %c6 = arith.constant 6 : index
    %c0_37 = arith.constant 0 : index
    %c0_38 = arith.constant 0 : index
    %37 = vector.load %arg3[%c6, %c0_37, %c0_38] : memref<15x256x256xf32, #tpu.memory_space<vmem>>, vector<1x256x256xf32>
    %38 = vector.shape_cast %37 : vector<1x256x256xf32> to vector<256x256xf32>
    %cst_39 = arith.constant dense<0.000000e+00> : vector<8x256xf32>
    %39 = tpu.matmul %0, %38, %cst_39 {dimension_numbers = #tpu.dot_dimension_numbers<[1], [0], [0], [1], [0, 0, 1, 1], [], []>} : vector<8x256xf32>, vector<256x256xf32>, vector<8x256xf32> -> vector<8x256xf32>
    %c6_40 = arith.constant 6 : index
    %c0_41 = arith.constant 0 : index
    %c0_42 = arith.constant 0 : index
    %40 = vector.load %arg4[%c6_40, %c0_41, %c0_42] : memref<15x8x256xf32, #tpu.memory_space<vmem>>, vector<1x8x256xf32>
    %41 = vector.shape_cast %40 : vector<1x8x256xf32> to vector<8x256xf32>
    %42 = vector.shape_cast %39 : vector<8x256xf32> to vector<1x8x256xf32>
    tpu.vector_store %arg4[%c6_40, %c0_41, %c0_42], %42 {strides = array<i32>} : memref<15x8x256xf32, #tpu.memory_space<vmem>>, vector<1x8x256xf32>,
    %c7 = arith.constant 7 : index
    %c0_43 = arith.constant 0 : index
    %c0_44 = arith.constant 0 : index
    %43 = vector.load %arg3[%c7, %c0_43, %c0_44] : memref<15x256x256xf32, #tpu.memory_space<vmem>>, vector<1x256x256xf32>
    %44 = vector.shape_cast %43 : vector<1x256x256xf32> to vector<256x256xf32>
    %cst_45 = arith.constant dense<0.000000e+00> : vector<8x256xf32>
    %45 = tpu.matmul %0, %44, %cst_45 {dimension_numbers = #tpu.dot_dimension_numbers<[1], [0], [0], [1], [0, 0, 1, 1], [], []>} : vector<8x256xf32>, vector<256x256xf32>, vector<8x256xf32> -> vector<8x256xf32>
    %c7_46 = arith.constant 7 : index
    %c0_47 = arith.constant 0 : index
    %c0_48 = arith.constant 0 : index
    %46 = vector.load %arg4[%c7_46, %c0_47, %c0_48] : memref<15x8x256xf32, #tpu.memory_space<vmem>>, vector<1x8x256xf32>
    %47 = vector.shape_cast %46 : vector<1x8x256xf32> to vector<8x256xf32>
    %48 = vector.shape_cast %45 : vector<8x256xf32> to vector<1x8x256xf32>
    tpu.vector_store %arg4[%c7_46, %c0_47, %c0_48], %48 {strides = array<i32>} : memref<15x8x256xf32, #tpu.memory_space<vmem>>, vector<1x8x256xf32>,
    %c8 = arith.constant 8 : index
    %c0_49 = arith.constant 0 : index
    %c0_50 = arith.constant 0 : index
    %49 = vector.load %arg3[%c8, %c0_49, %c0_50] : memref<15x256x256xf32, #tpu.memory_space<vmem>>, vector<1x256x256xf32>
    %50 = vector.shape_cast %49 : vector<1x256x256xf32> to vector<256x256xf32>
    %cst_51 = arith.constant dense<0.000000e+00> : vector<8x256xf32>
    %51 = tpu.matmul %0, %50, %cst_51 {dimension_numbers = #tpu.dot_dimension_numbers<[1], [0], [0], [1], [0, 0, 1, 1], [], []>} : vector<8x256xf32>, vector<256x256xf32>, vector<8x256xf32> -> vector<8x256xf32>
    %c8_52 = arith.constant 8 : index
    %c0_53 = arith.constant 0 : index
    %c0_54 = arith.constant 0 : index
    %52 = vector.load %arg4[%c8_52, %c0_53, %c0_54] : memref<15x8x256xf32, #tpu.memory_space<vmem>>, vector<1x8x256xf32>
    %53 = vector.shape_cast %52 : vector<1x8x256xf32> to vector<8x256xf32>
    %54 = vector.shape_cast %51 : vector<8x256xf32> to vector<1x8x256xf32>
    tpu.vector_store %arg4[%c8_52, %c0_53, %c0_54], %54 {strides = array<i32>} : memref<15x8x256xf32, #tpu.memory_space<vmem>>, vector<1x8x256xf32>,
    %c9 = arith.constant 9 : index
    %c0_55 = arith.constant 0 : index
    %c0_56 = arith.constant 0 : index
    %55 = vector.load %arg3[%c9, %c0_55, %c0_56] : memref<15x256x256xf32, #tpu.memory_space<vmem>>, vector<1x256x256xf32>
    %56 = vector.shape_cast %55 : vector<1x256x256xf32> to vector<256x256xf32>
    %cst_57 = arith.constant dense<0.000000e+00> : vector<8x256xf32>
    %57 = tpu.matmul %0, %56, %cst_57 {dimension_numbers = #tpu.dot_dimension_numbers<[1], [0], [0], [1], [0, 0, 1, 1], [], []>} : vector<8x256xf32>, vector<256x256xf32>, vector<8x256xf32> -> vector<8x256xf32>
    %c9_58 = arith.constant 9 : index
    %c0_59 = arith.constant 0 : index
    %c0_60 = arith.constant 0 : index
    %58 = vector.load %arg4[%c9_58, %c0_59, %c0_60] : memref<15x8x256xf32, #tpu.memory_space<vmem>>, vector<1x8x256xf32>
    %59 = vector.shape_cast %58 : vector<1x8x256xf32> to vector<8x256xf32>
    %60 = vector.shape_cast %57 : vector<8x256xf32> to vector<1x8x256xf32>
    tpu.vector_store %arg4[%c9_58, %c0_59, %c0_60], %60 {strides = array<i32>} : memref<15x8x256xf32, #tpu.memory_space<vmem>>, vector<1x8x256xf32>,
    %c10 = arith.constant 10 : index
    %c0_61 = arith.constant 0 : index
    %c0_62 = arith.constant 0 : index
    %61 = vector.load %arg3[%c10, %c0_61, %c0_62] : memref<15x256x256xf32, #tpu.memory_space<vmem>>, vector<1x256x256xf32>
    %62 = vector.shape_cast %61 : vector<1x256x256xf32> to vector<256x256xf32>
    %cst_63 = arith.constant dense<0.000000e+00> : vector<8x256xf32>
    %63 = tpu.matmul %0, %62, %cst_63 {dimension_numbers = #tpu.dot_dimension_numbers<[1], [0], [0], [1], [0, 0, 1, 1], [], []>} : vector<8x256xf32>, vector<256x256xf32>, vector<8x256xf32> -> vector<8x256xf32>
    %c10_64 = arith.constant 10 : index
    %c0_65 = arith.constant 0 : index
    %c0_66 = arith.constant 0 : index
    %64 = vector.load %arg4[%c10_64, %c0_65, %c0_66] : memref<15x8x256xf32, #tpu.memory_space<vmem>>, vector<1x8x256xf32>
    %65 = vector.shape_cast %64 : vector<1x8x256xf32> to vector<8x256xf32>
    %66 = vector.shape_cast %63 : vector<8x256xf32> to vector<1x8x256xf32>
    tpu.vector_store %arg4[%c10_64, %c0_65, %c0_66], %66 {strides = array<i32>} : memref<15x8x256xf32, #tpu.memory_space<vmem>>, vector<1x8x256xf32>,
    %c11 = arith.constant 11 : index
    %c0_67 = arith.constant 0 : index
    %c0_68 = arith.constant 0 : index
    %67 = vector.load %arg3[%c11, %c0_67, %c0_68] : memref<15x256x256xf32, #tpu.memory_space<vmem>>, vector<1x256x256xf32>
    %68 = vector.shape_cast %67 : vector<1x256x256xf32> to vector<256x256xf32>
    %cst_69 = arith.constant dense<0.000000e+00> : vector<8x256xf32>
    %69 = tpu.matmul %0, %68, %cst_69 {dimension_numbers = #tpu.dot_dimension_numbers<[1], [0], [0], [1], [0, 0, 1, 1], [], []>} : vector<8x256xf32>, vector<256x256xf32>, vector<8x256xf32> -> vector<8x256xf32>
    %c11_70 = arith.constant 11 : index
    %c0_71 = arith.constant 0 : index
    %c0_72 = arith.constant 0 : index
    %70 = vector.load %arg4[%c11_70, %c0_71, %c0_72] : memref<15x8x256xf32, #tpu.memory_space<vmem>>, vector<1x8x256xf32>
    %71 = vector.shape_cast %70 : vector<1x8x256xf32> to vector<8x256xf32>
    %72 = vector.shape_cast %69 : vector<8x256xf32> to vector<1x8x256xf32>
    tpu.vector_store %arg4[%c11_70, %c0_71, %c0_72], %72 {strides = array<i32>} : memref<15x8x256xf32, #tpu.memory_space<vmem>>, vector<1x8x256xf32>,
    %c12 = arith.constant 12 : index
    %c0_73 = arith.constant 0 : index
    %c0_74 = arith.constant 0 : index
    %73 = vector.load %arg3[%c12, %c0_73, %c0_74] : memref<15x256x256xf32, #tpu.memory_space<vmem>>, vector<1x256x256xf32>
    %74 = vector.shape_cast %73 : vector<1x256x256xf32> to vector<256x256xf32>
    %cst_75 = arith.constant dense<0.000000e+00> : vector<8x256xf32>
    %75 = tpu.matmul %0, %74, %cst_75 {dimension_numbers = #tpu.dot_dimension_numbers<[1], [0], [0], [1], [0, 0, 1, 1], [], []>} : vector<8x256xf32>, vector<256x256xf32>, vector<8x256xf32> -> vector<8x256xf32>
    %c12_76 = arith.constant 12 : index
    %c0_77 = arith.constant 0 : index
    %c0_78 = arith.constant 0 : index
    %76 = vector.load %arg4[%c12_76, %c0_77, %c0_78] : memref<15x8x256xf32, #tpu.memory_space<vmem>>, vector<1x8x256xf32>
    %77 = vector.shape_cast %76 : vector<1x8x256xf32> to vector<8x256xf32>
    %78 = vector.shape_cast %75 : vector<8x256xf32> to vector<1x8x256xf32>
    tpu.vector_store %arg4[%c12_76, %c0_77, %c0_78], %78 {strides = array<i32>} : memref<15x8x256xf32, #tpu.memory_space<vmem>>, vector<1x8x256xf32>,
    %c13 = arith.constant 13 : index
    %c0_79 = arith.constant 0 : index
    %c0_80 = arith.constant 0 : index
    %79 = vector.load %arg3[%c13, %c0_79, %c0_80] : memref<15x256x256xf32, #tpu.memory_space<vmem>>, vector<1x256x256xf32>
    %80 = vector.shape_cast %79 : vector<1x256x256xf32> to vector<256x256xf32>
    %cst_81 = arith.constant dense<0.000000e+00> : vector<8x256xf32>
    %81 = tpu.matmul %0, %80, %cst_81 {dimension_numbers = #tpu.dot_dimension_numbers<[1], [0], [0], [1], [0, 0, 1, 1], [], []>} : vector<8x256xf32>, vector<256x256xf32>, vector<8x256xf32> -> vector<8x256xf32>
    %c13_82 = arith.constant 13 : index
    %c0_83 = arith.constant 0 : index
    %c0_84 = arith.constant 0 : index
    %82 = vector.load %arg4[%c13_82, %c0_83, %c0_84] : memref<15x8x256xf32, #tpu.memory_space<vmem>>, vector<1x8x256xf32>
    %83 = vector.shape_cast %82 : vector<1x8x256xf32> to vector<8x256xf32>
    %84 = vector.shape_cast %81 : vector<8x256xf32> to vector<1x8x256xf32>
    tpu.vector_store %arg4[%c13_82, %c0_83, %c0_84], %84 {strides = array<i32>} : memref<15x8x256xf32, #tpu.memory_space<vmem>>, vector<1x8x256xf32>,
    %c14 = arith.constant 14 : index
    %c0_85 = arith.constant 0 : index
    %c0_86 = arith.constant 0 : index
    %85 = vector.load %arg3[%c14, %c0_85, %c0_86] : memref<15x256x256xf32, #tpu.memory_space<vmem>>, vector<1x256x256xf32>
    %86 = vector.shape_cast %85 : vector<1x256x256xf32> to vector<256x256xf32>
    %cst_87 = arith.constant dense<0.000000e+00> : vector<8x256xf32>
    %87 = tpu.matmul %0, %86, %cst_87 {dimension_numbers = #tpu.dot_dimension_numbers<[1], [0], [0], [1], [0, 0, 1, 1], [], []>} : vector<8x256xf32>, vector<256x256xf32>, vector<8x256xf32> -> vector<8x256xf32>
    %c14_88 = arith.constant 14 : index
    %c0_89 = arith.constant 0 : index
    %c0_90 = arith.constant 0 : index
    %88 = vector.load %arg4[%c14_88, %c0_89, %c0_90] : memref<15x8x256xf32, #tpu.memory_space<vmem>>, vector<1x8x256xf32>
    %89 = vector.shape_cast %88 : vector<1x8x256xf32> to vector<8x256xf32>
    %90 = vector.shape_cast %87 : vector<8x256xf32> to vector<1x8x256xf32>
    tpu.vector_store %arg4[%c14_88, %c0_89, %c0_90], %90 {strides = array<i32>} : memref<15x8x256xf32, #tpu.memory_space<vmem>>, vector<1x8x256xf32>,
    return
  }
  func.func @transform_0(%arg0: i32, %arg1: i32) -> (i32, i32) {
    %c0_i32 = arith.constant 0 : i32
    %c0_i32_0 = arith.constant 0 : i32
    return %arg0, %c0_i32 : i32, i32
  }
  func.func @transform_1(%arg0: i32, %arg1: i32) -> (i32, i32, i32) {
    %c0_i32 = arith.constant 0 : i32
    %c0_i32_0 = arith.constant 0 : i32
    %c0_i32_1 = arith.constant 0 : i32
    return %arg1, %c0_i32, %c0_i32_0 : i32, i32, i32
  }
  func.func @transform_2(%arg0: i32, %arg1: i32) -> (i32, i32, i32) {
    %c0_i32 = arith.constant 0 : i32
    %c0_i32_0 = arith.constant 0 : i32
    return %arg1, %arg0, %c0_i32 : i32, i32, i32
  }
}

</mosaic_0001>

<bundles_post_ra>
// kernel: tpu_custom_call.1
= control target key start
LH: loop header
LB: loop body
LE: loop exit
PB: predicated region body
PF: predicated region fallthrough
CT: control target
= control target key end

     0   :  { %7 = vsyncpa [#allocation3], 0  ;;  %s5820_s0 = inlined_call_operand.hbm [shape: f32[8,256], index: 0, kind: input, shape index: {}]   ;;  %s5821_s1 = inlined_call_operand.hbm [shape: f32[30,256,256], index: 1, kind: input, shape index: {}]   ;;  %s5822_s2 = inlined_call_operand.hbm [shape: f32[30,8,256], index: 2, kind: output, shape index: {}]  }
   0x1   :  { %8 = vsyncpa [#allocation6], 0 }
   0x2   :  { %10 = vsyncpa [#allocation6 + $0x1], 0 }
   0x3   :  { %11 = vsyncpa [#allocation4], 0 }
   0x4   :  { %13 = vsyncpa [#allocation4 + $0x1], 0  ;;  %s4557_s9 = smov 0   ;;  %s4559_s10 = smov 0  }
   0x5   :  { %s4561_s11 = smov 0   ;;  %s4563_s12 = smov 0  }
   0x6   :  { %s4565_s13 = smov 0   ;;  %s4567_s14 = smov 0  }
   0x7 LB: > { %s2400_s15 = sadd.s32 4294967295, %s4533_s14   ;;  %s2401_s16 = sadd.s32 4294967294, %s4533_s14   ;;  %s4533_s14 = sphi %s4567_s14, %s19_s14   ;;  %s4529_s13 = sphi %s4565_s13, %s5850_s13   ;;  %s4525_s12 = sphi %s4563_s12, %s5849_s12   ;;  %s4521_s11 = sphi %s4561_s11, %s5848_s11   ;;  %s4517_s10 = sphi %s4559_s10, %s5847_s10   ;;  %s4513_s9 = sphi %s4557_s9, %s5846_s9  }
   0x8   : > { %s64_s17 = sadd.s32 1, %s4521_s11  ;;  %p71_p0 = scmp.ne.s32.totalorder %s4521_s11, %s4517_s10 }
   0x9   : > { %p72_p1 = scmp.eq.s32.totalorder %s4533_s14, 0  ;;  %p77_p2 = scmp.ne.s32.totalorder %s4517_s10, %s4513_s9 }
   0xa   : > { %p4595_p3 = scmp.eq.s32.totalorder %s2400_s15, 0  ;;  %p103_p4 = scmp.eq.s32.totalorder %s2400_s15, 1 }
   0xb   : > { %p4599_p5 = por %p72_p1, %p71_p0  ;;  %p109_p6 = scmp.eq.s32.totalorder %s2401_s16, 1 }
   0xc   : > { %s5829_s18 = scalar_select %p4595_p3, 1, 0 }
   0xd   : > { %p4605_p7 = por %p4595_p3, %p77_p2  ;;  %p4609_p8 = por %p103_p4, %p71_p0 }
   0xe   : > { %p4613_p9 = por %p109_p6, %p77_p2  ;;  %p2402_p10 = scmp.ge.s32.totalorder %s4533_s14, 1 }
   0xf   : > { %s5831_s20 = scalar_select %p4605_p7, 1, 0 }
  0x10   : > { %s5832_s21 = scalar_select %p4609_p8, 1, 0 }
  0x11   : > { %s5833_s22 = scalar_select %p4613_p9, 1, 0 }
  0x12   : > { %p116_p11 = scmp.lt.s32.totalorder %s4533_s14, 3  ;;  %s4535_s24 = smov [#allocation2]  }
  0x13   : > { %s132_s25 = sshll.u32 %s4535_s24, 4  ;;  %p4327_p1 = scmp.lt.s32.totalorder %s4533_s14, 2  ;;  %s133_s25 = int_to_ptr.vmem [resolvable:$true] %s132_s25 }
  0x14   : > { %p4620_p13 = pnand %p2402_p10, %p116_p11  ;;  %s28_s28 = sadd.s32 1, %s4529_s13 }
  0x15   : > { %p4629_p4 = pnand %p4327_p1, %p4599_p5  ;;  %p4640_p6 = scmp.ge.s32.totalorder %s28_s28, 2 }
  0x16   : > { %s5834_s23 = scalar_select %p4620_p13, 1, 0 }
  0x17   : > { %p4314_p0 = pneg %p4620_p13  ;;  %s143_s30 = sand.u32 1, %s4521_s11  }
  0x18   : > { %s5835_s26 = scalar_select %p4629_p4, 1, 0 }
  0x19   : > { %p4635_p2 = pnand %p4314_p0, %p4595_p3  ;;  %s4389_s5 = scalar_lea.hbm %s5820_s0, 256 }
  0x1a   : > { %s5837_s29 = scalar_select %p4640_p6, 1, 0 }
  0x1b   : > { %p4390_p5 = scmp.ne.s32.totalorder %s5820_s0, %s4389_s5  ;;  %p4391_p10 = pneg %p4635_p2 }
  0x1c   : > { %p4396_p0 = scmp.lt.u32.totalorder %s4389_s5, %s5820_s0 }
  0x1d   : > { %p4392_p11 = pnand %p4391_p10, %p4390_p5 }
  0x1f   : > { %p4393_p1 = pneg %p4392_p11 }
  0x21   : > { %p4398_p12 = pnand %p4396_p0, %p4393_p1 }
  0x23   : > { %4401 = shalt.err (!%p4398_p12)
}
  0x24   : > { %s4402_s16 = scalar_lea.vmem %s133_s25, 256  ;;  %p4410_p3 = scmp.lt.s32.totalorder %s133_s25, %s133_s25 }
  0x25   : > { %p4403_p9 = scmp.ne.s32.totalorder %s133_s25, %s4402_s16  ;;  %p4411_p13 = scmp.lt.s32.totalorder %s4402_s16, %s4402_s16 }
  0x27   : > { %p4405_p8 = pnand %p4403_p9, %p4391_p10  ;;  %p4412_p4 = por %p4411_p13, %p4410_p3 }
  0x29   : > { %p4406_p7 = pneg %p4405_p8 }
  0x2b   : > { %p4413_p6 = pnand %p4412_p4, %p4406_p7 }
  0x2d   : > { %4416 = shalt.err (!%p4413_p6)
}
  0x2e   : > { %4317 = dma.hbm_to_vmem [thread:$0]  (!%p4635_p2), %s5820_s0, 256, %s133_s25, [#allocation3]  }
  0x2f   : > { %p5838_p9 = scmp.ne.s32.totalorder %s5837_s29, 0  ;;  %s4303_s3 = smul.u32 7680, %s143_s30 }
  0x30   : > { %s3341_s5 = smul.u32 122880, %s4529_s13  ;;  %s4680_s29 = scalar_lea.sflag [#allocation6], %s143_s30 }
  0x31   : > { %s5852_s28 = smov (%p5838_p9, %s28_s28), 0  ;;  %s147_s8 = scalar_lea.vmem [#allocation5], %s4303_s3 }
  0x32   : > { %s61_s4 = ssub.s32 %s4529_s13, %s5852_s28  ;;  %s4671_s7 = scalar_lea.hbm %s5821_s1, %s3341_s5 }
  0x33   : > { %p62_p3 = scmp.eq.s32.totalorder %s61_s4, 0  ;;  %s155_s15 = sshll.u32 %s147_s8, 4  ;;  %s4678_s15 = int_to_ptr.vmem [resolvable:$true] %s155_s15 }
  0x34   : > { %s4417_s16 = scalar_lea.hbm %s4671_s7, 122880  ;;  %p5839_p8 = scmp.ne.s32.totalorder %s5835_s26, 0 }
  0x35   : > { %s4676_s25 = scalar_select %p62_p3, %s4521_s11, %s64_s17  }
  0x36   : > { %p4418_p7 = scmp.ne.s32.totalorder %s4671_s7, %s4417_s16  ;;  %p4419_p12 = pneg %p5839_p8 }
  0x37   : > { %s4422_s3 = scalar_lea.hbm %s5821_s1, 245760  ;;  %p4423_p2 = scmp.lt.u32.totalorder %s4671_s7, %s5821_s1 }
  0x38   : > { %p4420_p13 = pnand %p4419_p12, %p4418_p7  ;;  %p4424_p6 = scmp.lt.u32.totalorder %s4422_s3, %s4417_s16 }
  0x39   : > { %p4426_p10 = scmp.lt.u32.totalorder %s4417_s16, %s4671_s7 }
  0x3a   : > { %p4421_p4 = pneg %p4420_p13  ;;  %p4425_p5 = por %p4424_p6, %p4423_p2 }
  0x3c   : > { %p4427_p11 = por %p4426_p10, %p4425_p5 }
  0x3e   : > { %p4428_p1 = pnand %p4427_p11, %p4421_p4 }
  0x40   : > { %4431 = shalt.err (!%p4428_p1)
}
  0x41   : > { %s4432_s17 = scalar_lea.vmem %s4678_s15, 122880  ;;  %s4536_s30 = smov [#allocation5]  }
  0x42   : > { %p4433_p0 = scmp.ne.s32.totalorder %s4678_s15, %s4432_s17  ;;  %s4437_s27 = sshll.u32 %s4536_s30, 4  ;;  %s4438_s27 = int_to_ptr.vmem [resolvable:$false] %s4437_s27 }
  0x43   : > { %s4439_s6 = scalar_lea.vmem %s4438_s27, 245760  ;;  %p4440_p7 = scmp.lt.s32.totalorder %s4678_s15, %s4438_s27 }
  0x44   : > { %p4435_p9 = pnand %p4433_p0, %p4419_p12  ;;  %p4441_p13 = scmp.lt.s32.totalorder %s4439_s6, %s4432_s17 }
  0x46   : > { %p4436_p3 = pneg %p4435_p9  ;;  %p4442_p2 = por %p4441_p13, %p4440_p7 }
  0x48   : > { %p4443_p6 = pnand %p4442_p2, %p4436_p3 }
  0x4a   : > { %4446 = shalt.err (!%p4443_p6)
}
  0x4b   : > { %s4537_s8 = smov 256   ;;  %s4538_s16 = smov 16  }
  0x4c   : > { %4321 = dma.hbm_to_vmem [thread:$0]  (!%p5839_p8), %s4671_s7, 122880, %s4678_s15, %s4680_s29, %s4537_s8, %s4537_s8, %s4538_s16  }
  0x4d   : > { %p5840_p12 = scmp.ne.s32.totalorder %s5834_s23, 0 }
  0x4e   : > { %p5841_p4 = scmp.ne.s32.totalorder (!%p5840_p12), %s5829_s18, 0 }
  0x4f   : > { %167 = sbr.rel (%p5840_p12) target bundleno = 835 (0x343), region = 28 }
  0x56   : > { %4500 = dma.done.wait (%p5841_p4), [#allocation3], 256  }
  0x57   : > { %4502 = vsyncadd (%p5841_p4), [#allocation3], 4294967040  ;;  %s4715_s19 = sand.u32 1, %s4517_s10   ;;  %p5842_p8 = scmp.ne.s32.totalorder %s5831_s20, 0 }
  0x58   : > { %s4304_s24 = smul.u32 7680, %s4715_s19  ;;  %s174_s3 = scalar_lea.sflag [#allocation6], %s4715_s19 }
  0x5a   : > { %s4719_s4 = scalar_lea.vmem [#allocation5], %s4304_s24 }
  0x5b   : > { %4504 = dma.done.wait (%p5842_p8), %s174_s3, 122880  }
  0x5c   : > { %4506 = vsyncadd (%p5842_p8), %s174_s3, 4294844416  ;;  %v203_v0 = vld [vmem:[%s4719_s4 + $0x8] sm:$0xff]  ;;  %v205_v1 = vld [vmem:[%s4719_s4 + $0x18] sm:$0xff]  ;;  %s4305_s18 = smul.u32 240, %s4715_s19  ;;  %s2286_s5 = scalar_lea.sflag [#allocation4], %s4715_s19 }
  0x5d   : > { %v202_v2 = vld [vmem:[%s4719_s4] sm:$0xff]  ;;  %v3343_v3 = vpack.c.bf16 %v205_v1, %v203_v0  ;;  %v204_v4 = vld [vmem:[%s4719_s4 + $0x10] sm:$0xff]  ;;  %v207_v5 = vld [vmem:[%s4719_s4 + $0x28] sm:$0xff]  ;;  %s3342_s23 = smul.u32 3840, %s4525_s12  ;;  %p5843_p10 = scmp.ne.s32.totalorder %s5832_s21, 0 }
  0x5e   : > { %v209_v6 = vld [vmem:[%s4719_s4 + $0x38] sm:$0xff]  ;;  %v3345_v7 = vpack.c.bf16 %v204_v4, %v202_v2  ;;  %v206_v9 = vld [vmem:[%s4719_s4 + $0x20] sm:$0xff]  ;;  %v208_v10 = vld [vmem:[%s4719_s4 + $0x30] sm:$0xff]  ;;  %s5298_s20 = scalar_lea.vmem [#allocation7], %s4305_s18  ;;  %s4539_s12 = smov [#allocation7]  }
  0x5f   : > { %v3347_v8 = vpack.c.bf16 %v209_v6, %v207_v5  ;;  %v211_v11 = vld [vmem:[%s4719_s4 + $0x48] sm:$0xff]  ;;  %3344 = vmatprep.subr.bf16.mxu0 %v3343_v3  ;;  %v213_v12 = vld [vmem:[%s4719_s4 + $0x58] sm:$0xff]  ;;  %v3349_v13 = vpack.c.bf16 %v208_v10, %v206_v9  ;;  %v210_v15 = vld [vmem:[%s4719_s4 + $0x40] sm:$0xff]  ;;  %s2302_s26 = sshll.u32 %s5298_s20, 4  ;;  %s5767_s29 = scalar_lea.hbm %s5822_s2, %s3342_s23  ;;  %s5769_s26 = int_to_ptr.vmem [resolvable:$true] %s2302_s26 }
  0x60   : > { %3346 = vmatpush1.bf16.msra.mxu0 %v3345_v7  ;;  %v3351_v14 = vpack.c.bf16 %v213_v12, %v211_v11  ;;  %v212_v16 = vld [vmem:[%s4719_s4 + $0x50] sm:$0xff]  ;;  %v215_v17 = vld [vmem:[%s4719_s4 + $0x68] sm:$0xff]  ;;  %v217_v18 = vld [vmem:[%s4719_s4 + $0x78] sm:$0xff]  ;;  %s4447_s17 = scalar_lea.vmem %s5769_s26, 3840  ;;  %s4451_s30 = sshll.u32 %s4539_s12, 4  ;;  %s4452_s30 = int_to_ptr.vmem [resolvable:$false] %s4451_s30 }
  0x61   : > { %3348 = vmatprep.subr.bf16.mxu0 %v3347_v8  ;;  %v3353_v19 = vpack.c.bf16 %v212_v16, %v210_v15  ;;  %v3355_v20 = vpack.c.bf16 %v217_v18, %v215_v17  ;;  %v214_v21 = vld [vmem:[%s4719_s4 + $0x60] sm:$0xff]  ;;  %v216_v22 = vld [vmem:[%s4719_s4 + $0x70] sm:$0xff]  ;;  %v219_v23 = vld [vmem:[%s4719_s4 + $0x88] sm:$0xff]  ;;  %p4448_p5 = scmp.ne.s32.totalorder %s5769_s26, %s4447_s17  ;;  %s4453_s27 = scalar_lea.vmem %s4452_s30, 7680 }
  0x62   : > { %v221_v24 = vld [vmem:[%s4719_s4 + $0x98] sm:$0xff]  ;;  %v3357_v25 = vpack.c.bf16 %v216_v22, %v214_v21  ;;  %v218_v27 = vld [vmem:[%s4719_s4 + $0x80] sm:$0xff]  ;;  %v220_v28 = vld [vmem:[%s4719_s4 + $0x90] sm:$0xff]  ;;  %p4454_p0 = scmp.lt.s32.totalorder %s5769_s26, %s4452_s30  ;;  %p4455_p9 = scmp.lt.s32.totalorder %s4453_s27, %s4447_s17 }
  0x63   : > { %v3359_v26 = vpack.c.bf16 %v221_v24, %v219_v23  ;;  %v223_v29 = vld [vmem:[%s4719_s4 + $0xa8] sm:$0xff]  ;;  %v225_v30 = vld [vmem:[%s4719_s4 + $0xb8] sm:$0xff]  ;;  %v3361_v31 = vpack.c.bf16 %v220_v28, %v218_v27  ;;  %v222_v33 = vld [vmem:[%s4719_s4 + $0xa0] sm:$0xff]  ;;  %p4449_p11 = pnand %p4448_p5, %p5843_p10 }
  0x64   : > { %3350 = vmatpush1.bf16.msra.mxu0 %v3349_v13  ;;  %v3363_v32 = vpack.c.bf16 %v225_v30, %v223_v29  ;;  %v224_v34 = vld [vmem:[%s4719_s4 + $0xb0] sm:$0xff]  ;;  %v227_v35 = vld [vmem:[%s4719_s4 + $0xc8] sm:$0xff]  ;;  %v229_v36 = vld [vmem:[%s4719_s4 + $0xd8] sm:$0xff]  ;;  %p4456_p3 = por %p4455_p9, %p4454_p0 }
  0x65   : > { %3352 = vmatprep.subr.bf16.mxu0 %v3351_v14  ;;  %v3365_v37 = vpack.c.bf16 %v224_v34, %v222_v33  ;;  %v226_v38 = vld [vmem:[%s4719_s4 + $0xc0] sm:$0xff]  ;;  %v228_v39 = vld [vmem:[%s4719_s4 + $0xd0] sm:$0xff]  ;;  %v3367_v40 = vpack.c.bf16 %v229_v36, %v227_v35  ;;  %v231_v41 = vld [vmem:[%s4719_s4 + $0xe8] sm:$0xff]  ;;  %p4450_p1 = pneg %p4449_p11 }
  0x66   : > { %v4754_v42 = vld [vmem:[#allocation2 + $0x8] sm:$0xff]  ;;  %v2410_v43 = vld [vmem:[%s4719_s4 + $0x208] sm:$0xff]  ;;  %v2409_v46 = vld [vmem:[%s4719_s4 + $0x200] sm:$0xff]  ;;  %v3369_v49 = vpack.c.bf16 %v228_v39, %v226_v38 }
  0x67   : > { %v233_v44 = vld [vmem:[%s4719_s4 + $0xf8] sm:$0xff]  ;;  %330 = vmatprep.mubr.f32.mxu0 %v4754_v42  ;;  %468 = vmatprep.mubr.f32.mxu1 %v4754_v42  ;;  %v2411_v48 = vld [vmem:[%s4719_s4 + $0x210] sm:$0xff]  ;;  %v230_v50 = vld [vmem:[%s4719_s4 + $0xe0] sm:$0xff]  ;;  %p4457_p7 = pnand %p4456_p3, %p4450_p1 }
  0x68   : > { %3354 = vmatpush1.bf16.msra.mxu0 %v3353_v19  ;;  %v2412_v45 = vld [vmem:[%s4719_s4 + $0x218] sm:$0xff]  ;;  %v232_v51 = vld [vmem:[%s4719_s4 + $0xf0] sm:$0xff]  ;;  %v3409_v52 = vpack.c.bf16 %v2411_v48, %v2409_v46  ;;  %v2414_v53 = vld [vmem:[%s4719_s4 + $0x228] sm:$0xff]  ;;  %v3371_v54 = vpack.c.bf16 %v233_v44, %v231_v41 }
  0x69   : > { %3356 = vmatprep.subr.bf16.mxu0 %v3355_v20  ;;  %v3407_v47 = vpack.c.bf16 %v2412_v45, %v2410_v43  ;;  %v2416_v55 = vld [vmem:[%s4719_s4 + $0x238] sm:$0xff]  ;;  %v2413_v56 = vld [vmem:[%s4719_s4 + $0x220] sm:$0xff]  ;;  %v2415_v57 = vld [vmem:[%s4719_s4 + $0x230] sm:$0xff]  ;;  %v3373_v0 = vpack.c.bf16 %v232_v51, %v230_v50 }
  0x6a   : > { %v235_v58 = vld [vmem:[%s4719_s4 + $0x108] sm:$0xff]  ;;  %v237_v59 = vld [vmem:[%s4719_s4 + $0x118] sm:$0xff]  ;;  %v3411_v60 = vpack.c.bf16 %v2416_v55, %v2414_v53  ;;  %v3413_v61 = vpack.c.bf16 %v2415_v57, %v2413_v56  ;;  %v2417_v2 = vld [vmem:[%s4719_s4 + $0x240] sm:$0xff] }
  0x6b   : > { %3408 = vmatprep.subr.bf16.mxu1 %v3407_v47  ;;  %v2418_v62 = vld [vmem:[%s4719_s4 + $0x248] sm:$0xff]  ;;  %v2420_v63 = vld [vmem:[%s4719_s4 + $0x258] sm:$0xff]  ;;  %v2419_v3 = vld [vmem:[%s4719_s4 + $0x250] sm:$0xff]  ;;  %v3375_v4 = vpack.c.bf16 %v237_v59, %v235_v58 }
  0x6c   : > { %3358 = vmatpush1.bf16.msra.mxu0 %v3357_v25  ;;  %3410 = vmatpush1.bf16.msra.mxu1 %v3409_v52  ;;  %v3415_v1 = vpack.c.bf16 %v2420_v63, %v2418_v62  ;;  %v234_v5 = vld [vmem:[%s4719_s4 + $0x100] sm:$0xff]  ;;  %v236_v6 = vld [vmem:[%s4719_s4 + $0x110] sm:$0xff]  ;;  %v239_v7 = vld [vmem:[%s4719_s4 + $0x128] sm:$0xff]  ;;  %v3417_v9 = vpack.c.bf16 %v2419_v3, %v2417_v2 }
  0x6d   : > { %3360 = vmatprep.subr.bf16.mxu0 %v3359_v26  ;;  %3412 = vmatprep.subr.bf16.mxu1 %v3411_v60  ;;  %v241_v8 = vld [vmem:[%s4719_s4 + $0x138] sm:$0xff]  ;;  %v2422_v10 = vld [vmem:[%s4719_s4 + $0x268] sm:$0xff]  ;;  %v2421_v13 = vld [vmem:[%s4719_s4 + $0x260] sm:$0xff]  ;;  %v3377_v15 = vpack.c.bf16 %v236_v6, %v234_v5 }
  0x6e   : > { %v2424_v11 = vld [vmem:[%s4719_s4 + $0x278] sm:$0xff]  ;;  %v2423_v14 = vld [vmem:[%s4719_s4 + $0x270] sm:$0xff]  ;;  %v2426_v16 = vld [vmem:[%s4719_s4 + $0x288] sm:$0xff]  ;;  %v3379_v17 = vpack.c.bf16 %v241_v8, %v239_v7 }
  0x6f   : > { %v3419_v12 = vpack.c.bf16 %v2424_v11, %v2422_v10  ;;  %v238_v18 = vld [vmem:[%s4719_s4 + $0x120] sm:$0xff]  ;;  %v240_v19 = vld [vmem:[%s4719_s4 + $0x130] sm:$0xff]  ;;  %v2428_v20 = vld [vmem:[%s4719_s4 + $0x298] sm:$0xff]  ;;  %v3421_v23 = vpack.c.bf16 %v2423_v14, %v2421_v13 }
  0x70   : > { %3362 = vmatpush1.bf16.msra.mxu0 %v3361_v31  ;;  %3414 = vmatpush1.bf16.msra.mxu1 %v3413_v61  ;;  %v243_v21 = vld [vmem:[%s4719_s4 + $0x148] sm:$0xff]  ;;  %v245_v22 = vld [vmem:[%s4719_s4 + $0x158] sm:$0xff]  ;;  %v3423_v24 = vpack.c.bf16 %v2428_v20, %v2426_v16  ;;  %v2425_v25 = vld [vmem:[%s4719_s4 + $0x280] sm:$0xff]  ;;  %v3381_v27 = vpack.c.bf16 %v240_v19, %v238_v18 }
  0x71   : > { %3364 = vmatprep.subr.bf16.mxu0 %v3363_v32  ;;  %3416 = vmatprep.subr.bf16.mxu1 %v3415_v1  ;;  %v2427_v26 = vld [vmem:[%s4719_s4 + $0x290] sm:$0xff]  ;;  %v2430_v28 = vld [vmem:[%s4719_s4 + $0x2a8] sm:$0xff]  ;;  %v2432_v29 = vld [vmem:[%s4719_s4 + $0x2b8] sm:$0xff]  ;;  %v3383_v30 = vpack.c.bf16 %v245_v22, %v243_v21 }
  0x72   : > { %v242_v31 = vld [vmem:[%s4719_s4 + $0x140] sm:$0xff]  ;;  %v244_v32 = vld [vmem:[%s4719_s4 + $0x150] sm:$0xff]  ;;  %v247_v33 = vld [vmem:[%s4719_s4 + $0x168] sm:$0xff]  ;;  %v3425_v35 = vpack.c.bf16 %v2427_v26, %v2425_v25  ;;  %v3427_v36 = vpack.c.bf16 %v2432_v29, %v2430_v28 }
  0x73   : > { %v249_v34 = vld [vmem:[%s4719_s4 + $0x178] sm:$0xff]  ;;  %v2431_v38 = vld [vmem:[%s4719_s4 + $0x2b0] sm:$0xff]  ;;  %v3385_v39 = vpack.c.bf16 %v244_v32, %v242_v31  ;;  %v246_v44 = vld [vmem:[%s4719_s4 + $0x160] sm:$0xff] }
  0x74   : > { %3366 = vmatpush1.bf16.msra.mxu0 %v3365_v37  ;;  %3418 = vmatpush1.bf16.msra.mxu1 %v3417_v9  ;;  %v2429_v37 = vld [vmem:[%s4719_s4 + $0x2a0] sm:$0xff]  ;;  %v2436_v41 = vld [vmem:[%s4719_s4 + $0x2d8] sm:$0xff]  ;;  %v3387_v43 = vpack.c.bf16 %v249_v34, %v247_v33  ;;  %v248_v45 = vld [vmem:[%s4719_s4 + $0x170] sm:$0xff] }
  0x75   : > { %3368 = vmatprep.subr.bf16.mxu0 %v3367_v40  ;;  %3420 = vmatprep.subr.bf16.mxu1 %v3419_v12  ;;  %v2434_v40 = vld [vmem:[%s4719_s4 + $0x2c8] sm:$0xff]  ;;  %v253_v47 = vld [vmem:[%s4719_s4 + $0x198] sm:$0xff]  ;;  %v3429_v48 = vpack.c.bf16 %v2431_v38, %v2429_v37  ;;  %v2433_v50 = vld [vmem:[%s4719_s4 + $0x2c0] sm:$0xff]  ;;  %v3389_v52 = vpack.c.bf16 %v248_v45, %v246_v44 }
  0x76   : > { %v251_v46 = vld [vmem:[%s4719_s4 + $0x188] sm:$0xff]  ;;  %v2435_v51 = vld [vmem:[%s4719_s4 + $0x2d0] sm:$0xff]  ;;  %v250_v56 = vld [vmem:[%s4719_s4 + $0x180] sm:$0xff] }
  0x77   : > { %v2438_v53 = vld [vmem:[%s4719_s4 + $0x2e8] sm:$0xff]  ;;  %v3391_v55 = vpack.c.bf16 %v253_v47, %v251_v46  ;;  %v252_v57 = vld [vmem:[%s4719_s4 + $0x190] sm:$0xff]  ;;  %v257_v59 = vld [vmem:[%s4719_s4 + $0x1b8] sm:$0xff]  ;;  %v3433_v60 = vpack.c.bf16 %v2435_v51, %v2433_v50 }
  0x78   : > { %3370 = vmatpush1.bf16.msra.mxu0 %v3369_v49  ;;  %3422 = vmatpush1.bf16.msra.mxu1 %v3421_v23  ;;  %v3431_v49 = vpack.c.bf16 %v2436_v41, %v2434_v40  ;;  %v255_v58 = vld [vmem:[%s4719_s4 + $0x1a8] sm:$0xff]  ;;  %v2437_v62 = vld [vmem:[%s4719_s4 + $0x2e0] sm:$0xff]  ;;  %v2439_v63 = vld [vmem:[%s4719_s4 + $0x2f0] sm:$0xff] }
  0x79   : > { %3372 = vmatprep.subr.bf16.mxu0 %v3371_v54  ;;  %3424 = vmatprep.subr.bf16.mxu1 %v3423_v24  ;;  %v2440_v54 = vld [vmem:[%s4719_s4 + $0x2f8] sm:$0xff]  ;;  %v2442_v1 = vld [vmem:[%s4719_s4 + $0x308] sm:$0xff]  ;;  %v3395_v3 = vpack.c.bf16 %v257_v59, %v255_v58  ;;  %v256_v5 = vld [vmem:[%s4719_s4 + $0x1b0] sm:$0xff]  ;;  %v3437_v8 = vpack.c.bf16 %v2439_v63, %v2437_v62 }
  0x7a   : > { %v3435_v61 = vpack.c.bf16 %v2440_v54, %v2438_v53  ;;  %v2444_v2 = vld [vmem:[%s4719_s4 + $0x318] sm:$0xff]  ;;  %v259_v6 = vld [vmem:[%s4719_s4 + $0x1c8] sm:$0xff]  ;;  %v2441_v10 = vld [vmem:[%s4719_s4 + $0x300] sm:$0xff] }
  0x7b   : > { %v261_v7 = vld [vmem:[%s4719_s4 + $0x1d8] sm:$0xff]  ;;  %v3439_v9 = vpack.c.bf16 %v2444_v2, %v2442_v1  ;;  %v2443_v11 = vld [vmem:[%s4719_s4 + $0x310] sm:$0xff]  ;;  %v2446_v13 = vld [vmem:[%s4719_s4 + $0x328] sm:$0xff] }
  0x7c   : > { %3374 = vmatpush1.bf16.msra.mxu0 %v3373_v0  ;;  %3426 = vmatpush1.bf16.msra.mxu1 %v3425_v35  ;;  %v3393_v0 = vpack.c.bf16 %v252_v57, %v250_v56  ;;  %v2448_v14 = vld [vmem:[%s4719_s4 + $0x338] sm:$0xff]  ;;  %v258_v16 = vld [vmem:[%s4719_s4 + $0x1c0] sm:$0xff]  ;;  %v263_v18 = vld [vmem:[%s4719_s4 + $0x1e8] sm:$0xff]  ;;  %v3441_v20 = vpack.c.bf16 %v2443_v11, %v2441_v10 }
  0x7d   : > { %3376 = vmatprep.subr.bf16.mxu0 %v3375_v4  ;;  %3428 = vmatprep.subr.bf16.mxu1 %v3427_v36  ;;  %v254_v4 = vld [vmem:[%s4719_s4 + $0x1a0] sm:$0xff]  ;;  %v265_v19 = vld [vmem:[%s4719_s4 + $0x1f8] sm:$0xff]  ;;  %v3443_v21 = vpack.c.bf16 %v2448_v14, %v2446_v13  ;;  %v2447_v23 = vld [vmem:[%s4719_s4 + $0x330] sm:$0xff] }
  0x7e   : > { %v3397_v12 = vpack.c.bf16 %v256_v5, %v254_v4  ;;  %v2445_v22 = vld [vmem:[%s4719_s4 + $0x320] sm:$0xff]  ;;  %v2450_v25 = vld [vmem:[%s4719_s4 + $0x348] sm:$0xff]  ;;  %v2452_v26 = vld [vmem:[%s4719_s4 + $0x358] sm:$0xff] }
  0x7f   : > { %v262_v28 = vld [vmem:[%s4719_s4 + $0x1e0] sm:$0xff]  ;;  %v264_v29 = vld [vmem:[%s4719_s4 + $0x1f0] sm:$0xff]  ;;  %v2478_v31 = vld [vmem:[%s4719_s4 + $0x418] sm:$0xff]  ;;  %v3445_v32 = vpack.c.bf16 %v2447_v23, %v2445_v22  ;;  %v3447_v33 = vpack.c.bf16 %v2452_v26, %v2450_v25 }
  0x80   : > { %3378 = vmatpush1.bf16.msra.mxu0 %v3377_v15  ;;  %3430 = vmatpush1.bf16.msra.mxu1 %v3429_v48  ;;  %v3399_v15 = vpack.c.bf16 %v261_v7, %v259_v6  ;;  %v2449_v34 = vld [vmem:[%s4719_s4 + $0x340] sm:$0xff]  ;;  %v2451_v35 = vld [vmem:[%s4719_s4 + $0x350] sm:$0xff]  ;;  %v3405_v36 = vpack.c.bf16 %v264_v29, %v262_v28  ;;  %v2454_v37 = vld [vmem:[%s4719_s4 + $0x368] sm:$0xff] }
  0x81   : > { %3380 = vmatprep.subr.bf16.mxu0 %v3379_v17  ;;  %3432 = vmatprep.subr.bf16.mxu1 %v3431_v49  ;;  %v260_v17 = vld [vmem:[%s4719_s4 + $0x1d0] sm:$0xff]  ;;  %v2456_v38 = vld [vmem:[%s4719_s4 + $0x378] sm:$0xff]  ;;  %v2475_v40 = vld [vmem:[%s4719_s4 + $0x400] sm:$0xff]  ;;  %v3449_v45 = vpack.c.bf16 %v2451_v35, %v2449_v34 }
  0x82   : > { %v3401_v24 = vpack.c.bf16 %v260_v17, %v258_v16  ;;  %v2477_v41 = vld [vmem:[%s4719_s4 + $0x410] sm:$0xff]  ;;  %v2482_v44 = vld [vmem:[%s4719_s4 + $0x438] sm:$0xff]  ;;  %v3451_v46 = vpack.c.bf16 %v2456_v38, %v2454_v37  ;;  %v2453_v47 = vld [vmem:[%s4719_s4 + $0x360] sm:$0xff] }
  0x83   : > { %v2455_v48 = vld [vmem:[%s4719_s4 + $0x370] sm:$0xff]  ;;  %v3473_v50 = vpack.c.bf16 %v2477_v41, %v2475_v40  ;;  %v2458_v51 = vld [vmem:[%s4719_s4 + $0x388] sm:$0xff]  ;;  %v2479_v54 = vld [vmem:[%s4719_s4 + $0x420] sm:$0xff] }
  0x84   : > { %3382 = vmatpush1.bf16.msra.mxu0 %v3381_v27  ;;  %3434 = vmatpush1.bf16.msra.mxu1 %v3433_v60  ;;  %v3403_v27 = vpack.c.bf16 %v265_v19, %v263_v18  ;;  %v4847_v49 = vld [vmem:[#allocation2] sm:$0xff]  ;;  %v2484_v56 = vld [vmem:[%s4719_s4 + $0x448] sm:$0xff]  ;;  %v2486_v57 = vld [vmem:[%s4719_s4 + $0x458] sm:$0xff]  ;;  %v3453_v58 = vpack.c.bf16 %v2455_v48, %v2453_v47 }
  0x85   : > { %3384 = vmatprep.subr.bf16.mxu0 %v3383_v30  ;;  %3436 = vmatprep.subr.bf16.mxu1 %v3435_v61  ;;  %v2476_v30 = vld [vmem:[%s4719_s4 + $0x408] sm:$0xff]  ;;  %v2457_v60 = vld [vmem:[%s4719_s4 + $0x380] sm:$0xff]  ;;  %v2459_v61 = vld [vmem:[%s4719_s4 + $0x390] sm:$0xff]  ;;  %v3479_v1 = vpack.c.bf16 %v2486_v57, %v2484_v56 }
  0x86   : > { %v2462_v63 = vld [vmem:[%s4719_s4 + $0x3a8] sm:$0xff]  ;;  %v2483_v2 = vld [vmem:[%s4719_s4 + $0x440] sm:$0xff]  ;;  %v2490_v5 = vld [vmem:[%s4719_s4 + $0x478] sm:$0xff]  ;;  %v3457_v6 = vpack.c.bf16 %v2459_v61, %v2457_v60 }
  0x87   : > { %v2488_v4 = vld [vmem:[%s4719_s4 + $0x468] sm:$0xff]  ;;  %v2487_v14 = vld [vmem:[%s4719_s4 + $0x460] sm:$0xff]  ;;  %v2494_v17 = vld [vmem:[%s4719_s4 + $0x498] sm:$0xff] }
  0x88   : > { %3386 = vmatpush1.bf16.msra.mxu0 %v3385_v39  ;;  %3438 = vmatpush1.bf16.msra.mxu1 %v3437_v8  ;;  %v3471_v39 = vpack.c.bf16 %v2478_v31, %v2476_v30  ;;  %v2461_v8 = vld [vmem:[%s4719_s4 + $0x3a0] sm:$0xff]  ;;  %v2466_v11 = vld [vmem:[%s4719_s4 + $0x3c8] sm:$0xff]  ;;  %v3483_v13 = vpack.c.bf16 %v2490_v5, %v2488_v4  ;;  %v2498_v29 = vld [vmem:[%s4719_s4 + $0x4b8] sm:$0xff] }
  0x89   : > { %3388 = vmatprep.subr.bf16.mxu0 %v3387_v43  ;;  %3440 = vmatprep.subr.bf16.mxu1 %v3439_v9  ;;  %v2480_v43 = vld [vmem:[%s4719_s4 + $0x428] sm:$0xff]  ;;  %v2463_v9 = vld [vmem:[%s4719_s4 + $0x3b0] sm:$0xff]  ;;  %v2491_v26 = vld [vmem:[%s4719_s4 + $0x480] sm:$0xff] }
  0x8a   : > { %v3475_v53 = vpack.c.bf16 %v2482_v44, %v2480_v43  ;;  %v2492_v16 = vld [vmem:[%s4719_s4 + $0x488] sm:$0xff]  ;;  %v3461_v18 = vpack.c.bf16 %v2463_v9, %v2461_v8  ;;  %v2495_v38 = vld [vmem:[%s4719_s4 + $0x4a0] sm:$0xff]  ;;  %v2502_v41 = vld [vmem:[%s4719_s4 + $0x4d8] sm:$0xff] }
  0x8b   : > { %v2470_v23 = vld [vmem:[%s4719_s4 + $0x3e8] sm:$0xff]  ;;  %v3487_v25 = vpack.c.bf16 %v2494_v17, %v2492_v16 }
  0x8c   : > { %3390 = vmatpush1.bf16.msra.mxu0 %v3389_v52  ;;  %3442 = vmatpush1.bf16.msra.mxu1 %v3441_v20  ;;  %v2460_v52 = vld [vmem:[%s4719_s4 + $0x398] sm:$0xff]  ;;  %v2465_v20 = vld [vmem:[%s4719_s4 + $0x3c0] sm:$0xff]  ;;  %v2496_v28 = vld [vmem:[%s4719_s4 + $0x4a8] sm:$0xff] }
  0x8d   : > { %3392 = vmatprep.subr.bf16.mxu0 %v3391_v55  ;;  %3444 = vmatprep.subr.bf16.mxu1 %v3443_v21  ;;  %v2481_v55 = vld [vmem:[%s4719_s4 + $0x430] sm:$0xff]  ;;  %v3455_v59 = vpack.c.bf16 %v2460_v52, %v2458_v51  ;;  %v2542_v35 = vld [vmem:[%s4719_s4 + $0x608] sm:$0xff]  ;;  %v3491_v37 = vpack.c.bf16 %v2498_v29, %v2496_v28  ;;  %v2499_v52 = vld [vmem:[%s4719_s4 + $0x4c0] sm:$0xff] }
  0x8e   : > { %v3477_v62 = vpack.c.bf16 %v2481_v55, %v2479_v54  ;;  %v2467_v21 = vld [vmem:[%s4719_s4 + $0x3d0] sm:$0xff]  ;;  %v2500_v40 = vld [vmem:[%s4719_s4 + $0x4c8] sm:$0xff]  ;;  %v2506_v55 = vld [vmem:[%s4719_s4 + $0x4f8] sm:$0xff] }
  0x8f   : > { %v3465_v30 = vpack.c.bf16 %v2467_v21, %v2465_v20  ;;  %v2546_v48 = vld [vmem:[%s4719_s4 + $0x628] sm:$0xff]  ;;  %v3495_v51 = vpack.c.bf16 %v2502_v41, %v2500_v40 }
  0x90   : > { %3394 = vmatpush1.bf16.msra.mxu0 %v3393_v0  ;;  %3446 = vmatpush1.bf16.msra.mxu1 %v3445_v32  ;;  %v2464_v0 = vld [vmem:[%s4719_s4 + $0x3b8] sm:$0xff]  ;;  %v2469_v32 = vld [vmem:[%s4719_s4 + $0x3e0] sm:$0xff]  ;;  %v2504_v54 = vld [vmem:[%s4719_s4 + $0x4e8] sm:$0xff] }
  0x91   : > { %3396 = vmatprep.subr.bf16.mxu0 %v3395_v3  ;;  %3448 = vmatprep.subr.bf16.mxu1 %v3447_v33  ;;  %v2485_v3 = vld [vmem:[%s4719_s4 + $0x450] sm:$0xff]  ;;  %v3459_v7 = vpack.c.bf16 %v2464_v0, %v2462_v63  ;;  %v2550_v61 = vld [vmem:[%s4719_s4 + $0x648] sm:$0xff]  ;;  %v3499_v63 = vpack.c.bf16 %v2506_v55, %v2504_v54  ;;  %v2503_v0 = vld [vmem:[%s4719_s4 + $0x4e0] sm:$0xff] }
  0x92   : > { %v3481_v10 = vpack.c.bf16 %v2485_v3, %v2483_v2  ;;  %v2471_v33 = vld [vmem:[%s4719_s4 + $0x3f0] sm:$0xff]  ;;  %v2508_v2 = vld [vmem:[%s4719_s4 + $0x508] sm:$0xff]  ;;  %v2510_v3 = vld [vmem:[%s4719_s4 + $0x518] sm:$0xff] }
  0x93   : > { %v3469_v43 = vpack.c.bf16 %v2471_v33, %v2469_v32  ;;  %v2554_v9 = vld [vmem:[%s4719_s4 + $0x668] sm:$0xff] }
  0x94   : > { %3398 = vmatpush1.bf16.msra.mxu0 %v3397_v12  ;;  %3450 = vmatpush1.bf16.msra.mxu1 %v3449_v45  ;;  %v2468_v12 = vld [vmem:[%s4719_s4 + $0x3d8] sm:$0xff]  ;;  %v2541_v45 = vld [vmem:[%s4719_s4 + $0x600] sm:$0xff]  ;;  %v2558_v21 = vld [vmem:[%s4719_s4 + $0x688] sm:$0xff] }
  0x95   : > { %3400 = vmatprep.subr.bf16.mxu0 %v3399_v15  ;;  %3452 = vmatprep.subr.bf16.mxu1 %v3451_v46  ;;  %v2489_v15 = vld [vmem:[%s4719_s4 + $0x470] sm:$0xff]  ;;  %v3463_v19 = vpack.c.bf16 %v2468_v12, %v2466_v11  ;;  %v3503_v11 = vpack.c.bf16 %v2510_v3, %v2508_v2  ;;  %v2507_v12 = vld [vmem:[%s4719_s4 + $0x500] sm:$0xff]  ;;  %v2562_v33 = vld [vmem:[%s4719_s4 + $0x6a8] sm:$0xff] }
  0x96   : > { %v3485_v22 = vpack.c.bf16 %v2489_v15, %v2487_v14  ;;  %v2543_v46 = vld [vmem:[%s4719_s4 + $0x610] sm:$0xff]  ;;  %v2512_v14 = vld [vmem:[%s4719_s4 + $0x528] sm:$0xff]  ;;  %v2514_v15 = vld [vmem:[%s4719_s4 + $0x538] sm:$0xff] }
  0x97   : > { %v3537_v56 = vpack.c.bf16 %v2543_v46, %v2541_v45  ;;  %v2566_v46 = vld [vmem:[%s4719_s4 + $0x6c8] sm:$0xff] }
  0x98   : > { %3402 = vmatpush1.bf16.msra.mxu0 %v3401_v24  ;;  %3454 = vmatpush1.bf16.msra.mxu1 %v3453_v58  ;;  %v2472_v24 = vld [vmem:[%s4719_s4 + $0x3f8] sm:$0xff]  ;;  %v2545_v58 = vld [vmem:[%s4719_s4 + $0x620] sm:$0xff] }
  0x99   : > { %3404 = vmatprep.subr.bf16.mxu0 %v3403_v27  ;;  %3456 = vmatprep.subr.bf16.mxu1 %v3455_v59  ;;  %v2493_v27 = vld [vmem:[%s4719_s4 + $0x490] sm:$0xff]  ;;  %v3467_v31 = vpack.c.bf16 %v2472_v24, %v2470_v23  ;;  %v3507_v23 = vpack.c.bf16 %v2514_v15, %v2512_v14  ;;  %v2511_v24 = vld [vmem:[%s4719_s4 + $0x520] sm:$0xff] }
  0x9a   : > { %v3489_v34 = vpack.c.bf16 %v2493_v27, %v2491_v26  ;;  %v2547_v59 = vld [vmem:[%s4719_s4 + $0x630] sm:$0xff]  ;;  %v2516_v26 = vld [vmem:[%s4719_s4 + $0x548] sm:$0xff]  ;;  %v2518_v27 = vld [vmem:[%s4719_s4 + $0x558] sm:$0xff] }
  0x9b   : > { %v3541_v4 = vpack.c.bf16 %v2547_v59, %v2545_v58  ;;  %v2570_v59 = vld [vmem:[%s4719_s4 + $0x6e8] sm:$0xff] }
  0x9c   : > { %3406 = vmatpush1.bf16.msra.mxu0 %v3405_v36  ;;  %3458 = vmatpush1.bf16.msra.mxu1 %v3457_v6  ;;  %v2544_v36 = vld [vmem:[%s4719_s4 + $0x618] sm:$0xff]  ;;  %v2549_v6 = vld [vmem:[%s4719_s4 + $0x640] sm:$0xff] }
  0x9d   : > { %3472 = vmatprep.subr.bf16.mxu0 %v3471_v39  ;;  %3460 = vmatprep.subr.bf16.mxu1 %v3459_v7  ;;  %v2497_v39 = vld [vmem:[%s4719_s4 + $0x4b0] sm:$0xff]  ;;  %v3535_v44 = vpack.c.bf16 %v2544_v36, %v2542_v35  ;;  %v3511_v35 = vpack.c.bf16 %v2518_v27, %v2516_v26  ;;  %v2515_v36 = vld [vmem:[%s4719_s4 + $0x540] sm:$0xff] }
  0x9e   : > { %v3493_v47 = vpack.c.bf16 %v2497_v39, %v2495_v38  ;;  %v2551_v7 = vld [vmem:[%s4719_s4 + $0x650] sm:$0xff]  ;;  %v2520_v38 = vld [vmem:[%s4719_s4 + $0x568] sm:$0xff]  ;;  %v2522_v39 = vld [vmem:[%s4719_s4 + $0x578] sm:$0xff] }
  0x9f   : > { %331 = vmatmul.mubr.f32.vlgmr.msra.gmra.mrb[0].mxu0 %v4847_v49  ;;  %v3545_v16 = vpack.c.bf16 %v2551_v7, %v2549_v6  ;;  %v2574_v7 = vld [vmem:[%s4719_s4 + $0x708] sm:$0xff] }
  0xa0   : > { %3474 = vmatpush1.bf16.msra.mxu0 %v3473_v50  ;;  %607 = vmatprep.mubr.f32.mxu0 %v4754_v42  ;;  %v2548_v50 = vld [vmem:[%s4719_s4 + $0x638] sm:$0xff] }
  0xa1   : > { %3476 = vmatprep.subr.bf16.mxu0 %v3475_v53  ;;  %3462 = vmatpush1.bf16.msra.mxu1 %v3461_v18  ;;  %v2501_v53 = vld [vmem:[%s4719_s4 + $0x4d0] sm:$0xff]  ;;  %v3539_v57 = vpack.c.bf16 %v2548_v50, %v2546_v48  ;;  %v2553_v18 = vld [vmem:[%s4719_s4 + $0x660] sm:$0xff]  ;;  %v3515_v48 = vpack.c.bf16 %v2522_v39, %v2520_v38 }
  0xa2   : > { %3464 = vmatprep.subr.bf16.mxu1 %v3463_v19  ;;  %v3497_v60 = vpack.c.bf16 %v2501_v53, %v2499_v52  ;;  %v2555_v19 = vld [vmem:[%s4719_s4 + $0x670] sm:$0xff]  ;;  %v2519_v50 = vld [vmem:[%s4719_s4 + $0x560] sm:$0xff]  ;;  %v2524_v52 = vld [vmem:[%s4719_s4 + $0x588] sm:$0xff] }
  0xa3   : > { %v3549_v28 = vpack.c.bf16 %v2555_v19, %v2553_v18  ;;  %v2526_v53 = vld [vmem:[%s4719_s4 + $0x598] sm:$0xff]  ;;  %v2578_v19 = vld [vmem:[%s4719_s4 + $0x728] sm:$0xff] }
  0xa4   : > { %3478 = vmatpush1.bf16.msra.mxu0 %v3477_v62  ;;  %v2552_v62 = vld [vmem:[%s4719_s4 + $0x658] sm:$0xff] }
  0xa5   : > { %3480 = vmatprep.subr.bf16.mxu0 %v3479_v1  ;;  %3466 = vmatpush1.bf16.msra.mxu1 %v3465_v30  ;;  %v2505_v1 = vld [vmem:[%s4719_s4 + $0x4f0] sm:$0xff]  ;;  %v3543_v5 = vpack.c.bf16 %v2552_v62, %v2550_v61  ;;  %v2557_v30 = vld [vmem:[%s4719_s4 + $0x680] sm:$0xff]  ;;  %v3519_v61 = vpack.c.bf16 %v2526_v53, %v2524_v52 }
  0xa6   : > { %3468 = vmatprep.subr.bf16.mxu1 %v3467_v31  ;;  %v3501_v8 = vpack.c.bf16 %v2505_v1, %v2503_v0  ;;  %v2559_v31 = vld [vmem:[%s4719_s4 + $0x690] sm:$0xff]  ;;  %v2523_v62 = vld [vmem:[%s4719_s4 + $0x580] sm:$0xff]  ;;  %v2528_v0 = vld [vmem:[%s4719_s4 + $0x5a8] sm:$0xff] }
  0xa7   : > { %v3553_v40 = vpack.c.bf16 %v2559_v31, %v2557_v30  ;;  %v2530_v1 = vld [vmem:[%s4719_s4 + $0x5b8] sm:$0xff]  ;;  %v2582_v31 = vld [vmem:[%s4719_s4 + $0x748] sm:$0xff] }
  0xa8   : > { %3482 = vmatpush1.bf16.msra.mxu0 %v3481_v10  ;;  %v2556_v10 = vld [vmem:[%s4719_s4 + $0x678] sm:$0xff] }
  0xa9   : > { %3484 = vmatprep.subr.bf16.mxu0 %v3483_v13  ;;  %3470 = vmatpush1.bf16.msra.mxu1 %v3469_v43  ;;  %v2509_v13 = vld [vmem:[%s4719_s4 + $0x510] sm:$0xff]  ;;  %v3547_v17 = vpack.c.bf16 %v2556_v10, %v2554_v9  ;;  %v2561_v43 = vld [vmem:[%s4719_s4 + $0x6a0] sm:$0xff]  ;;  %v3523_v9 = vpack.c.bf16 %v2530_v1, %v2528_v0 }
  0xaa   : > { %3536 = vmatprep.subr.bf16.mxu1 %v3535_v44  ;;  %v3505_v20 = vpack.c.bf16 %v2509_v13, %v2507_v12  ;;  %v2563_v44 = vld [vmem:[%s4719_s4 + $0x6b0] sm:$0xff]  ;;  %v2527_v10 = vld [vmem:[%s4719_s4 + $0x5a0] sm:$0xff]  ;;  %v2532_v12 = vld [vmem:[%s4719_s4 + $0x5c8] sm:$0xff] }
  0xab   : > { %v3557_v54 = vpack.c.bf16 %v2563_v44, %v2561_v43  ;;  %v2534_v13 = vld [vmem:[%s4719_s4 + $0x5d8] sm:$0xff]  ;;  %v2586_v44 = vld [vmem:[%s4719_s4 + $0x768] sm:$0xff] }
  0xac   : > { %3486 = vmatpush1.bf16.msra.mxu0 %v3485_v22  ;;  %469 = vmatmul.mubr.f32.vlgmr.msra.gmra.mrb[0].mxu1 %v4847_v49  ;;  %v2560_v22 = vld [vmem:[%s4719_s4 + $0x698] sm:$0xff] }
  0xad   : > { %3488 = vmatprep.subr.bf16.mxu0 %v3487_v25  ;;  %3538 = vmatpush1.bf16.msra.mxu1 %v3537_v56  ;;  %v2513_v25 = vld [vmem:[%s4719_s4 + $0x530] sm:$0xff]  ;;  %v3551_v29 = vpack.c.bf16 %v2560_v22, %v2558_v21  ;;  %v2565_v56 = vld [vmem:[%s4719_s4 + $0x6c0] sm:$0xff]  ;;  %v3527_v21 = vpack.c.bf16 %v2534_v13, %v2532_v12 }
  0xae   : > { %746 = vmatprep.mubr.f32.mxu1 %v4754_v42  ;;  %3540 = vmatprep.subr.bf16.mxu1 %v3539_v57  ;;  %v3509_v32 = vpack.c.bf16 %v2513_v25, %v2511_v24  ;;  %v2567_v57 = vld [vmem:[%s4719_s4 + $0x6d0] sm:$0xff]  ;;  %v2531_v22 = vld [vmem:[%s4719_s4 + $0x5c0] sm:$0xff]  ;;  %v2536_v24 = vld [vmem:[%s4719_s4 + $0x5e8] sm:$0xff] }
  0xaf   : > { %v3561_v2 = vpack.c.bf16 %v2567_v57, %v2565_v56  ;;  %v2538_v25 = vld [vmem:[%s4719_s4 + $0x5f8] sm:$0xff]  ;;  %v2590_v57 = vld [vmem:[%s4719_s4 + $0x788] sm:$0xff] }
  0xb0   : > { %3490 = vmatpush1.bf16.msra.mxu0 %v3489_v34  ;;  %v2564_v34 = vld [vmem:[%s4719_s4 + $0x6b8] sm:$0xff] }
  0xb1   : > { %3492 = vmatprep.subr.bf16.mxu0 %v3491_v37  ;;  %3542 = vmatpush1.bf16.msra.mxu1 %v3541_v4  ;;  %v2517_v37 = vld [vmem:[%s4719_s4 + $0x550] sm:$0xff]  ;;  %v3555_v41 = vpack.c.bf16 %v2564_v34, %v2562_v33  ;;  %v2569_v4 = vld [vmem:[%s4719_s4 + $0x6e0] sm:$0xff]  ;;  %v3531_v33 = vpack.c.bf16 %v2538_v25, %v2536_v24 }
  0xb2   : > { %3544 = vmatprep.subr.bf16.mxu1 %v3543_v5  ;;  %v3513_v45 = vpack.c.bf16 %v2517_v37, %v2515_v36  ;;  %v2571_v5 = vld [vmem:[%s4719_s4 + $0x6f0] sm:$0xff]  ;;  %v2535_v34 = vld [vmem:[%s4719_s4 + $0x5e0] sm:$0xff]  ;;  %v2608_v36 = vld [vmem:[%s4719_s4 + $0x808] sm:$0xff] }
  0xb3   : > { %v3565_v14 = vpack.c.bf16 %v2571_v5, %v2569_v4  ;;  %v2610_v37 = vld [vmem:[%s4719_s4 + $0x818] sm:$0xff]  ;;  %v2594_v5 = vld [vmem:[%s4719_s4 + $0x7a8] sm:$0xff]  ;;  %v2597_v25 = vld [vmem:[%s4719_s4 + $0x7c0] sm:$0xff] }
  0xb4   : > { %3494 = vmatpush1.bf16.msra.mxu0 %v3493_v47  ;;  %v2568_v47 = vld [vmem:[%s4719_s4 + $0x6d8] sm:$0xff] }
  0xb5   : > { %3496 = vmatprep.subr.bf16.mxu0 %v3495_v51  ;;  %3546 = vmatpush1.bf16.msra.mxu1 %v3545_v16  ;;  %v2521_v51 = vld [vmem:[%s4719_s4 + $0x570] sm:$0xff]  ;;  %v3559_v55 = vpack.c.bf16 %v2568_v47, %v2566_v46  ;;  %v2573_v16 = vld [vmem:[%s4719_s4 + $0x700] sm:$0xff]  ;;  %v3599_v46 = vpack.c.bf16 %v2610_v37, %v2608_v36 }
  0xb6   : > { %3548 = vmatprep.subr.bf16.mxu1 %v3547_v17  ;;  %v3517_v58 = vpack.c.bf16 %v2521_v51, %v2519_v50  ;;  %v2575_v17 = vld [vmem:[%s4719_s4 + $0x710] sm:$0xff]  ;;  %v2607_v47 = vld [vmem:[%s4719_s4 + $0x800] sm:$0xff]  ;;  %v2612_v50 = vld [vmem:[%s4719_s4 + $0x828] sm:$0xff] }
  0xb7   : > { %v3569_v26 = vpack.c.bf16 %v2575_v17, %v2573_v16  ;;  %v2614_v51 = vld [vmem:[%s4719_s4 + $0x838] sm:$0xff]  ;;  %v2598_v16 = vld [vmem:[%s4719_s4 + $0x7c8] sm:$0xff]  ;;  %v2601_v37 = vld [vmem:[%s4719_s4 + $0x7e0] sm:$0xff] }
  0xb8   : > { %3498 = vmatpush1.bf16.msra.mxu0 %v3497_v60  ;;  %v2572_v60 = vld [vmem:[%s4719_s4 + $0x6f8] sm:$0xff] }
  0xb9   : > { %3500 = vmatprep.subr.bf16.mxu0 %v3499_v63  ;;  %3550 = vmatpush1.bf16.msra.mxu1 %v3549_v28  ;;  %v2525_v63 = vld [vmem:[%s4719_s4 + $0x590] sm:$0xff]  ;;  %v3563_v3 = vpack.c.bf16 %v2572_v60, %v2570_v59  ;;  %v2577_v28 = vld [vmem:[%s4719_s4 + $0x720] sm:$0xff]  ;;  %v3603_v59 = vpack.c.bf16 %v2614_v51, %v2612_v50  ;;  %v2600_v17 = vld [vmem:[%s4719_s4 + $0x7d8] sm:$0xff] }
  0xba   : > { %3552 = vmatprep.subr.bf16.mxu1 %v3551_v29  ;;  %v3521_v6 = vpack.c.bf16 %v2525_v63, %v2523_v62  ;;  %v2579_v29 = vld [vmem:[%s4719_s4 + $0x730] sm:$0xff]  ;;  %v2611_v60 = vld [vmem:[%s4719_s4 + $0x820] sm:$0xff]  ;;  %v2616_v62 = vld [vmem:[%s4719_s4 + $0x848] sm:$0xff]  ;;  %v3591_v24 = vpack.c.bf16 %v2600_v17, %v2598_v16 }
  0xbb   : > { %v3573_v38 = vpack.c.bf16 %v2579_v29, %v2577_v28  ;;  %v2618_v63 = vld [vmem:[%s4719_s4 + $0x858] sm:$0xff]  ;;  %v2602_v28 = vld [vmem:[%s4719_s4 + $0x7e8] sm:$0xff]  ;;  %v2673_v51 = vld [vmem:[%s4719_s4 + $0xa00] sm:$0xff] }
  0xbc   : > { %3502 = vmatpush1.bf16.msra.mxu0 %v3501_v8  ;;  %v2576_v8 = vld [vmem:[%s4719_s4 + $0x718] sm:$0xff]  ;;  %v2639_v16 = vld [vmem:[%s4719_s4 + $0x900] sm:$0xff]  ;;  %v2641_v17 = vld [vmem:[%s4719_s4 + $0x910] sm:$0xff] }
  0xbd   : > { %3504 = vmatprep.subr.bf16.mxu0 %v3503_v11  ;;  %3554 = vmatpush1.bf16.msra.mxu1 %v3553_v40  ;;  %v2529_v11 = vld [vmem:[%s4719_s4 + $0x5b0] sm:$0xff]  ;;  %v3567_v15 = vpack.c.bf16 %v2576_v8, %v2574_v7  ;;  %v2581_v40 = vld [vmem:[%s4719_s4 + $0x740] sm:$0xff]  ;;  %v3607_v7 = vpack.c.bf16 %v2618_v63, %v2616_v62  ;;  %v2604_v29 = vld [vmem:[%s4719_s4 + $0x7f8] sm:$0xff] }
  0xbe   : > { %3556 = vmatprep.subr.bf16.mxu1 %v3555_v41  ;;  %v3525_v18 = vpack.c.bf16 %v2529_v11, %v2527_v10  ;;  %v2583_v41 = vld [vmem:[%s4719_s4 + $0x750] sm:$0xff]  ;;  %v2615_v8 = vld [vmem:[%s4719_s4 + $0x840] sm:$0xff]  ;;  %v2620_v10 = vld [vmem:[%s4719_s4 + $0x868] sm:$0xff]  ;;  %v3595_v36 = vpack.c.bf16 %v2604_v29, %v2602_v28 }
  0xbf   : > { %v3577_v52 = vpack.c.bf16 %v2583_v41, %v2581_v40  ;;  %v2622_v11 = vld [vmem:[%s4719_s4 + $0x878] sm:$0xff]  ;;  %v2674_v40 = vld [vmem:[%s4719_s4 + $0xa08] sm:$0xff]  ;;  %v2677_v63 = vld [vmem:[%s4719_s4 + $0xa20] sm:$0xff] }
  0xc0   : > { %3506 = vmatpush1.bf16.msra.mxu0 %v3505_v20  ;;  %v2580_v20 = vld [vmem:[%s4719_s4 + $0x738] sm:$0xff]  ;;  %v2643_v28 = vld [vmem:[%s4719_s4 + $0x920] sm:$0xff]  ;;  %v2645_v29 = vld [vmem:[%s4719_s4 + $0x930] sm:$0xff] }
  0xc1   : > { %3508 = vmatprep.subr.bf16.mxu0 %v3507_v23  ;;  %3558 = vmatpush1.bf16.msra.mxu1 %v3557_v54  ;;  %v2533_v23 = vld [vmem:[%s4719_s4 + $0x5d0] sm:$0xff]  ;;  %v3571_v27 = vpack.c.bf16 %v2580_v20, %v2578_v19  ;;  %v2585_v54 = vld [vmem:[%s4719_s4 + $0x760] sm:$0xff]  ;;  %v2676_v41 = vld [vmem:[%s4719_s4 + $0xa18] sm:$0xff] }
  0xc2   : > { %3560 = vmatprep.subr.bf16.mxu1 %v3559_v55  ;;  %v3529_v30 = vpack.c.bf16 %v2533_v23, %v2531_v22  ;;  %v2587_v55 = vld [vmem:[%s4719_s4 + $0x770] sm:$0xff]  ;;  %v2619_v19 = vld [vmem:[%s4719_s4 + $0x860] sm:$0xff]  ;;  %v2626_v22 = vld [vmem:[%s4719_s4 + $0x898] sm:$0xff]  ;;  %v3663_v50 = vpack.c.bf16 %v2676_v41, %v2674_v40 }
  0xc3   : > { %v3581_v0 = vpack.c.bf16 %v2587_v55, %v2585_v54  ;;  %v2621_v20 = vld [vmem:[%s4719_s4 + $0x870] sm:$0xff]  ;;  %v2678_v54 = vld [vmem:[%s4719_s4 + $0xa28] sm:$0xff]  ;;  %v2680_v55 = vld [vmem:[%s4719_s4 + $0xa38] sm:$0xff] }
  0xc4   : > { %3510 = vmatpush1.bf16.msra.mxu0 %v3509_v32  ;;  %v2584_v32 = vld [vmem:[%s4719_s4 + $0x758] sm:$0xff]  ;;  %v3667_v62 = vpack.c.bf16 %v2680_v55, %v2678_v54  ;;  %v2647_v40 = vld [vmem:[%s4719_s4 + $0x940] sm:$0xff]  ;;  %v2649_v41 = vld [vmem:[%s4719_s4 + $0x950] sm:$0xff] }
  0xc5   : > { %3512 = vmatprep.subr.bf16.mxu0 %v3511_v35  ;;  %3562 = vmatpush1.bf16.msra.mxu1 %v3561_v2  ;;  %v2537_v35 = vld [vmem:[%s4719_s4 + $0x5f0] sm:$0xff]  ;;  %v3575_v39 = vpack.c.bf16 %v2584_v32, %v2582_v31  ;;  %v2589_v2 = vld [vmem:[%s4719_s4 + $0x780] sm:$0xff] }
  0xc6   : > { %3564 = vmatprep.subr.bf16.mxu1 %v3563_v3  ;;  %v3533_v43 = vpack.c.bf16 %v2537_v35, %v2535_v34  ;;  %v2591_v3 = vld [vmem:[%s4719_s4 + $0x790] sm:$0xff]  ;;  %v2623_v31 = vld [vmem:[%s4719_s4 + $0x880] sm:$0xff]  ;;  %v2630_v34 = vld [vmem:[%s4719_s4 + $0x8b8] sm:$0xff] }
  0xc7   : > { %v3585_v12 = vpack.c.bf16 %v2591_v3, %v2589_v2  ;;  %v2625_v32 = vld [vmem:[%s4719_s4 + $0x890] sm:$0xff]  ;;  %v2682_v2 = vld [vmem:[%s4719_s4 + $0xa48] sm:$0xff]  ;;  %v2684_v3 = vld [vmem:[%s4719_s4 + $0xa58] sm:$0xff] }
  0xc8   : > { %3514 = vmatpush1.bf16.msra.mxu0 %v3513_v45  ;;  %v2588_v45 = vld [vmem:[%s4719_s4 + $0x778] sm:$0xff]  ;;  %v2651_v54 = vld [vmem:[%s4719_s4 + $0x960] sm:$0xff]  ;;  %v2653_v55 = vld [vmem:[%s4719_s4 + $0x970] sm:$0xff] }
  0xc9   : > { %3516 = vmatprep.subr.bf16.mxu0 %v3515_v48  ;;  %3566 = vmatpush1.bf16.msra.mxu1 %v3565_v14  ;;  %v2609_v48 = vld [vmem:[%s4719_s4 + $0x810] sm:$0xff]  ;;  %v3579_v53 = vpack.c.bf16 %v2588_v45, %v2586_v44  ;;  %v2593_v14 = vld [vmem:[%s4719_s4 + $0x7a0] sm:$0xff] }
  0xca   : > { %3568 = vmatprep.subr.bf16.mxu1 %v3567_v15  ;;  %v3601_v56 = vpack.c.bf16 %v2609_v48, %v2607_v47  ;;  %v2595_v15 = vld [vmem:[%s4719_s4 + $0x7b0] sm:$0xff]  ;;  %v2627_v44 = vld [vmem:[%s4719_s4 + $0x8a0] sm:$0xff]  ;;  %v2634_v47 = vld [vmem:[%s4719_s4 + $0x8d8] sm:$0xff] }
  0xcb   : > { %v3589_v23 = vpack.c.bf16 %v2595_v15, %v2593_v14  ;;  %v2629_v45 = vld [vmem:[%s4719_s4 + $0x8b0] sm:$0xff]  ;;  %v2686_v14 = vld [vmem:[%s4719_s4 + $0xa68] sm:$0xff]  ;;  %v2688_v15 = vld [vmem:[%s4719_s4 + $0xa78] sm:$0xff] }
  0xcc   : > { %3518 = vmatpush1.bf16.msra.mxu0 %v3517_v58  ;;  %v2592_v58 = vld [vmem:[%s4719_s4 + $0x798] sm:$0xff] }
  0xcd   : > { %3520 = vmatprep.subr.bf16.mxu0 %v3519_v61  ;;  %3570 = vmatpush1.bf16.msra.mxu1 %v3569_v26  ;;  %v2613_v61 = vld [vmem:[%s4719_s4 + $0x830] sm:$0xff]  ;;  %v3583_v1 = vpack.c.bf16 %v2592_v58, %v2590_v57  ;;  %v2631_v57 = vld [vmem:[%s4719_s4 + $0x8c0] sm:$0xff] }
  0xce   : > { %3572 = vmatprep.subr.bf16.mxu1 %v3571_v27  ;;  %v3605_v4 = vpack.c.bf16 %v2613_v61, %v2611_v60  ;;  %v2599_v26 = vld [vmem:[%s4719_s4 + $0x7d0] sm:$0xff]  ;;  %v3613_v27 = vpack.c.bf16 %v2621_v20, %v2619_v19  ;;  %v2638_v60 = vld [vmem:[%s4719_s4 + $0x8f8] sm:$0xff] }
  0xcf   : > { %v3593_v35 = vpack.c.bf16 %v2599_v26, %v2597_v25  ;;  %v2633_v58 = vld [vmem:[%s4719_s4 + $0x8d0] sm:$0xff]  ;;  %v2646_v19 = vld [vmem:[%s4719_s4 + $0x938] sm:$0xff]  ;;  %v2690_v25 = vld [vmem:[%s4719_s4 + $0xa88] sm:$0xff] }
  0xd0   : > { %3522 = vmatpush1.bf16.msra.mxu0 %v3521_v6  ;;  %v2596_v6 = vld [vmem:[%s4719_s4 + $0x7b8] sm:$0xff] }
  0xd1   : > { %3524 = vmatprep.subr.bf16.mxu0 %v3523_v9  ;;  %3574 = vmatpush1.bf16.msra.mxu1 %v3573_v38  ;;  %v2617_v9 = vld [vmem:[%s4719_s4 + $0x850] sm:$0xff]  ;;  %v3587_v13 = vpack.c.bf16 %v2596_v6, %v2594_v5  ;;  %v2635_v5 = vld [vmem:[%s4719_s4 + $0x8e0] sm:$0xff]  ;;  %v2692_v26 = vld [vmem:[%s4719_s4 + $0xa98] sm:$0xff] }
  0xd2   : > { %3576 = vmatprep.subr.bf16.mxu1 %v3575_v39  ;;  %v2603_v38 = vld [vmem:[%s4719_s4 + $0x7f0] sm:$0xff]  ;;  %v3617_v39 = vpack.c.bf16 %v2625_v32, %v2623_v31  ;;  %v2650_v31 = vld [vmem:[%s4719_s4 + $0x958] sm:$0xff] }
  0xd3   : > { %v3597_v48 = vpack.c.bf16 %v2603_v38, %v2601_v37  ;;  %v2637_v6 = vld [vmem:[%s4719_s4 + $0x8f0] sm:$0xff]  ;;  %v2694_v37 = vld [vmem:[%s4719_s4 + $0xaa8] sm:$0xff]  ;;  %v2696_v38 = vld [vmem:[%s4719_s4 + $0xab8] sm:$0xff] }
  0xd4   : > { %3526 = vmatpush1.bf16.msra.mxu0 %v3525_v18  ;;  %v3611_v18 = vpack.c.bf16 %v2622_v11, %v2620_v10  ;;  %v5038_v10 = vld [vmem:[#allocation2 + $0x8] sm:$0xff]  ;;  %v3671_v11 = vpack.c.bf16 %v2684_v3, %v2682_v2  ;;  %v2655_v2 = vld [vmem:[%s4719_s4 + $0x980] sm:$0xff]  ;;  %v2657_v3 = vld [vmem:[%s4719_s4 + $0x990] sm:$0xff] }
  0xd5   : > { %3528 = vmatprep.subr.bf16.mxu0 %v3527_v21  ;;  %3578 = vmatpush1.bf16.msra.mxu1 %v3577_v52  ;;  %v2624_v21 = vld [vmem:[%s4719_s4 + $0x888] sm:$0xff]  ;;  %v2675_v52 = vld [vmem:[%s4719_s4 + $0xa10] sm:$0xff] }
  0xd6   : > { %3580 = vmatprep.subr.bf16.mxu1 %v3579_v53  ;;  %v3621_v53 = vpack.c.bf16 %v2629_v45, %v2627_v44  ;;  %v3665_v61 = vpack.c.bf16 %v2675_v52, %v2673_v51  ;;  %v2654_v44 = vld [vmem:[%s4719_s4 + $0x978] sm:$0xff]  ;;  %v2698_v51 = vld [vmem:[%s4719_s4 + $0xac8] sm:$0xff] }
  0xd7   : > { %v2700_v52 = vld [vmem:[%s4719_s4 + $0xad8] sm:$0xff] }
  0xd8   : > { %3530 = vmatpush1.bf16.msra.mxu0 %v3529_v30  ;;  %v3615_v30 = vpack.c.bf16 %v2626_v22, %v2624_v21  ;;  %v3675_v21 = vpack.c.bf16 %v2688_v15, %v2686_v14  ;;  %v2685_v22 = vld [vmem:[%s4719_s4 + $0xa60] sm:$0xff]  ;;  %v2661_v15 = vld [vmem:[%s4719_s4 + $0x9b0] sm:$0xff] }
  0xd9   : > { %3532 = vmatprep.subr.bf16.mxu0 %v3531_v33  ;;  %3582 = vmatpush1.bf16.msra.mxu1 %v3581_v0  ;;  %v2628_v33 = vld [vmem:[%s4719_s4 + $0x8a8] sm:$0xff]  ;;  %v2679_v0 = vld [vmem:[%s4719_s4 + $0xa30] sm:$0xff]  ;;  %v2659_v14 = vld [vmem:[%s4719_s4 + $0x9a0] sm:$0xff] }
  0xda   : > { %3584 = vmatprep.subr.bf16.mxu1 %v3583_v1  ;;  %v3625_v1 = vpack.c.bf16 %v2633_v58, %v2631_v57  ;;  %v2658_v57 = vld [vmem:[%s4719_s4 + $0x998] sm:$0xff] }
  0xdc   : > { %3534 = vmatpush1.bf16.msra.mxu0 %v3533_v43  ;;  %v3619_v43 = vpack.c.bf16 %v2630_v34, %v2628_v33  ;;  %v3679_v33 = vpack.c.bf16 %v2692_v26, %v2690_v25  ;;  %v2689_v34 = vld [vmem:[%s4719_s4 + $0xa80] sm:$0xff]  ;;  %v2665_v26 = vld [vmem:[%s4719_s4 + $0x9d0] sm:$0xff] }
  0xdd   : > { %3600 = vmatprep.subr.bf16.mxu0 %v3599_v46  ;;  %3586 = vmatpush1.bf16.msra.mxu1 %v3585_v12  ;;  %v2632_v46 = vld [vmem:[%s4719_s4 + $0x8c8] sm:$0xff]  ;;  %v2681_v12 = vld [vmem:[%s4719_s4 + $0xa40] sm:$0xff] }
  0xde   : > { %3588 = vmatprep.subr.bf16.mxu1 %v3587_v13  ;;  %v2683_v13 = vld [vmem:[%s4719_s4 + $0xa50] sm:$0xff]  ;;  %v2663_v25 = vld [vmem:[%s4719_s4 + $0x9c0] sm:$0xff] }
  0xdf   : > { %608 = vmatmul.mubr.f32.vlgmr.msra.gmra.mrb[2].mxu0 %v4847_v49  ;;  %v3673_v20 = vpack.c.bf16 %v2683_v13, %v2681_v12  ;;  %v2706_v12 = vld [vmem:[%s4719_s4 + $0xb08] sm:$0xff]  ;;  %v2708_v13 = vld [vmem:[%s4719_s4 + $0xb18] sm:$0xff] }
  0xe0   : > { %3602 = vmatpush1.bf16.msra.mxu0 %v3601_v56  ;;  %885 = vmatprep.mubr.f32.mxu0 %v4754_v42  ;;  %v3609_v42 = vpack.c.bf16 %v2617_v9, %v2615_v8  ;;  %v3623_v56 = vpack.c.bf16 %v2634_v47, %v2632_v46  ;;  %v2642_v8 = vld [vmem:[%s4719_s4 + $0x918] sm:$0xff]  ;;  %v3669_v9 = vpack.c.bf16 %v2679_v0, %v2677_v63  ;;  %v2693_v47 = vld [vmem:[%s4719_s4 + $0xaa0] sm:$0xff]  ;;  %v2702_v63 = vld [vmem:[%s4719_s4 + $0xae8] sm:$0xff] }
  0xe1   : > { %3604 = vmatprep.subr.bf16.mxu0 %v3603_v59  ;;  %3590 = vmatpush1.bf16.msra.mxu1 %v3589_v23  ;;  %v2636_v59 = vld [vmem:[%s4719_s4 + $0x8e8] sm:$0xff]  ;;  %v2687_v23 = vld [vmem:[%s4719_s4 + $0xa70] sm:$0xff]  ;;  %v3683_v46 = vpack.c.bf16 %v2696_v38, %v2694_v37  ;;  %v2704_v0 = vld [vmem:[%s4719_s4 + $0xaf8] sm:$0xff] }
  0xe2   : > { %3592 = vmatprep.subr.bf16.mxu1 %v3591_v24  ;;  %v3633_v24 = vpack.c.bf16 %v2641_v17, %v2639_v16  ;;  %v3677_v32 = vpack.c.bf16 %v2687_v23, %v2685_v22  ;;  %v2666_v16 = vld [vmem:[%s4719_s4 + $0x9d8] sm:$0xff]  ;;  %v2710_v22 = vld [vmem:[%s4719_s4 + $0xb28] sm:$0xff]  ;;  %v2667_v37 = vld [vmem:[%s4719_s4 + $0x9e0] sm:$0xff] }
  0xe3   : > { %v2712_v23 = vld [vmem:[%s4719_s4 + $0xb38] sm:$0xff]  ;;  %v2669_v38 = vld [vmem:[%s4719_s4 + $0x9f0] sm:$0xff] }
  0xe4   : > { %3606 = vmatpush1.bf16.msra.mxu0 %v3605_v4  ;;  %v3627_v4 = vpack.c.bf16 %v2638_v60, %v2636_v59  ;;  %v3687_v59 = vpack.c.bf16 %v2700_v52, %v2698_v51  ;;  %v2697_v60 = vld [vmem:[%s4719_s4 + $0xac0] sm:$0xff]  ;;  %v2741_v52 = vld [vmem:[%s4719_s4 + $0xc10] sm:$0xff] }
  0xe5   : > { %3608 = vmatprep.subr.bf16.mxu0 %v3607_v7  ;;  %3594 = vmatpush1.bf16.msra.mxu1 %v3593_v35  ;;  %v2640_v7 = vld [vmem:[%s4719_s4 + $0x908] sm:$0xff]  ;;  %v2691_v35 = vld [vmem:[%s4719_s4 + $0xa90] sm:$0xff]  ;;  %v2739_v51 = vld [vmem:[%s4719_s4 + $0xc00] sm:$0xff] }
  0xe6   : > { %3596 = vmatprep.subr.bf16.mxu1 %v3595_v36  ;;  %v3637_v36 = vpack.c.bf16 %v2645_v29, %v2643_v28  ;;  %v3681_v45 = vpack.c.bf16 %v2691_v35, %v2689_v34  ;;  %v2670_v28 = vld [vmem:[%s4719_s4 + $0x9f8] sm:$0xff]  ;;  %v2714_v34 = vld [vmem:[%s4719_s4 + $0xb48] sm:$0xff] }
  0xe7   : > { %v2716_v35 = vld [vmem:[%s4719_s4 + $0xb58] sm:$0xff] }
  0xe8   : > { %3610 = vmatpush1.bf16.msra.mxu0 %v3609_v42  ;;  %v3631_v42 = vpack.c.bf16 %v2642_v8, %v2640_v7  ;;  %v3691_v7 = vpack.c.bf16 %v2704_v0, %v2702_v63  ;;  %v2701_v8 = vld [vmem:[%s4719_s4 + $0xae0] sm:$0xff]  ;;  %v2745_v0 = vld [vmem:[%s4719_s4 + $0xc30] sm:$0xff] }
  0xe9   : > { %3612 = vmatprep.subr.bf16.mxu0 %v3611_v18  ;;  %3598 = vmatpush1.bf16.msra.mxu1 %v3597_v48  ;;  %v2644_v18 = vld [vmem:[%s4719_s4 + $0x928] sm:$0xff]  ;;  %v2695_v48 = vld [vmem:[%s4719_s4 + $0xab0] sm:$0xff]  ;;  %v2743_v63 = vld [vmem:[%s4719_s4 + $0xc20] sm:$0xff] }
  0xea   : > { %3664 = vmatprep.subr.bf16.mxu1 %v3663_v50  ;;  %v3641_v50 = vpack.c.bf16 %v2649_v41, %v2647_v40  ;;  %v3685_v58 = vpack.c.bf16 %v2695_v48, %v2693_v47  ;;  %v2742_v40 = vld [vmem:[%s4719_s4 + $0xc18] sm:$0xff]  ;;  %v2718_v47 = vld [vmem:[%s4719_s4 + $0xb68] sm:$0xff] }
  0xeb   : > { %v2720_v48 = vld [vmem:[%s4719_s4 + $0xb78] sm:$0xff] }
  0xec   : > { %3614 = vmatpush1.bf16.msra.mxu0 %v3613_v27  ;;  %747 = vmatmul.mubr.f32.vlgmr.msra.gmra.mrb[2].mxu1 %v4847_v49  ;;  %v3629_v49 = vpack.c.bf16 %v2637_v6, %v2635_v5  ;;  %v3635_v27 = vpack.c.bf16 %v2646_v19, %v2644_v18  ;;  %v2662_v5 = vld [vmem:[%s4719_s4 + $0x9b8] sm:$0xff]  ;;  %v3695_v18 = vpack.c.bf16 %v2708_v13, %v2706_v12  ;;  %v2705_v19 = vld [vmem:[%s4719_s4 + $0xb00] sm:$0xff] }
  0xed   : > { %3616 = vmatprep.subr.bf16.mxu0 %v3615_v30  ;;  %3666 = vmatpush1.bf16.msra.mxu1 %v3665_v61  ;;  %v2648_v30 = vld [vmem:[%s4719_s4 + $0x948] sm:$0xff]  ;;  %v2699_v61 = vld [vmem:[%s4719_s4 + $0xad0] sm:$0xff]  ;;  %v2747_v13 = vld [vmem:[%s4719_s4 + $0xc40] sm:$0xff] }
  0xee   : > { %1024 = vmatprep.mubr.f32.mxu1 %v5038_v10  ;;  %3668 = vmatprep.subr.bf16.mxu1 %v3667_v62  ;;  %v3645_v62 = vpack.c.bf16 %v2653_v55, %v2651_v54  ;;  %v3689_v6 = vpack.c.bf16 %v2699_v61, %v2697_v60  ;;  %v2746_v54 = vld [vmem:[%s4719_s4 + $0xc38] sm:$0xff]  ;;  %v2722_v60 = vld [vmem:[%s4719_s4 + $0xb88] sm:$0xff] }
  0xef   : > { %v2724_v61 = vld [vmem:[%s4719_s4 + $0xb98] sm:$0xff] }
  0xf0   : > { %3618 = vmatpush1.bf16.msra.mxu0 %v3617_v39  ;;  %v3639_v39 = vpack.c.bf16 %v2650_v31, %v2648_v30  ;;  %v3699_v30 = vpack.c.bf16 %v2712_v23, %v2710_v22  ;;  %v2709_v31 = vld [vmem:[%s4719_s4 + $0xb20] sm:$0xff] }
  0xf1   : > { %3620 = vmatprep.subr.bf16.mxu0 %v3619_v43  ;;  %3670 = vmatpush1.bf16.msra.mxu1 %v3669_v9  ;;  %v2652_v43 = vld [vmem:[%s4719_s4 + $0x968] sm:$0xff]  ;;  %v2703_v9 = vld [vmem:[%s4719_s4 + $0xaf0] sm:$0xff]  ;;  %v2751_v23 = vld [vmem:[%s4719_s4 + $0xc60] sm:$0xff] }
  0xf2   : > { %3672 = vmatprep.subr.bf16.mxu1 %v3671_v11  ;;  %v3649_v11 = vpack.c.bf16 %v2657_v3, %v2655_v2  ;;  %v3693_v17 = vpack.c.bf16 %v2703_v9, %v2701_v8  ;;  %v2750_v2 = vld [vmem:[%s4719_s4 + $0xc58] sm:$0xff]  ;;  %v3733_v8 = vpack.c.bf16 %v2745_v0, %v2743_v63  ;;  %v2726_v9 = vld [vmem:[%s4719_s4 + $0xba8] sm:$0xff] }
  0xf3   : > { %v2768_v63 = vld [vmem:[%s4719_s4 + $0xce8] sm:$0xff]  ;;  %v2770_v0 = vld [vmem:[%s4719_s4 + $0xcf8] sm:$0xff] }
  0xf4   : > { %3622 = vmatpush1.bf16.msra.mxu0 %v3621_v53  ;;  %v3643_v53 = vpack.c.bf16 %v2654_v44, %v2652_v43  ;;  %v3703_v43 = vpack.c.bf16 %v2716_v35, %v2714_v34  ;;  %v2713_v44 = vld [vmem:[%s4719_s4 + $0xb40] sm:$0xff] }
  0xf5   : > { %3624 = vmatprep.subr.bf16.mxu0 %v3623_v56  ;;  %3674 = vmatpush1.bf16.msra.mxu1 %v3673_v20  ;;  %v2656_v56 = vld [vmem:[%s4719_s4 + $0x988] sm:$0xff]  ;;  %v2707_v20 = vld [vmem:[%s4719_s4 + $0xb10] sm:$0xff]  ;;  %v2755_v35 = vld [vmem:[%s4719_s4 + $0xc80] sm:$0xff] }
  0xf6   : > { %3676 = vmatprep.subr.bf16.mxu1 %v3675_v21  ;;  %v3653_v21 = vpack.c.bf16 %v2661_v15, %v2659_v14  ;;  %v3697_v29 = vpack.c.bf16 %v2707_v20, %v2705_v19  ;;  %v2752_v14 = vld [vmem:[%s4719_s4 + $0xc68] sm:$0xff]  ;;  %v2754_v15 = vld [vmem:[%s4719_s4 + $0xc78] sm:$0xff] }
  0xf7   : > { %v2730_v20 = vld [vmem:[%s4719_s4 + $0xbc8] sm:$0xff]  ;;  %v3739_v22 = vpack.c.bf16 %v2754_v15, %v2752_v14 }
  0xf8   : > { %3626 = vmatpush1.bf16.msra.mxu0 %v3625_v1  ;;  %v3647_v1 = vpack.c.bf16 %v2658_v57, %v2656_v56  ;;  %v3707_v56 = vpack.c.bf16 %v2720_v48, %v2718_v47  ;;  %v2717_v57 = vld [vmem:[%s4719_s4 + $0xb60] sm:$0xff] }
  0xf9   : > { %3628 = vmatprep.subr.bf16.mxu0 %v3627_v4  ;;  %3678 = vmatpush1.bf16.msra.mxu1 %v3677_v32  ;;  %v2660_v4 = vld [vmem:[%s4719_s4 + $0x9a8] sm:$0xff]  ;;  %v2711_v32 = vld [vmem:[%s4719_s4 + $0xb30] sm:$0xff]  ;;  %v2759_v48 = vld [vmem:[%s4719_s4 + $0xca0] sm:$0xff] }
  0xfa   : > { %3680 = vmatprep.subr.bf16.mxu1 %v3679_v33  ;;  %v3657_v33 = vpack.c.bf16 %v2665_v26, %v2663_v25  ;;  %v3701_v41 = vpack.c.bf16 %v2711_v32, %v2709_v31  ;;  %v2756_v25 = vld [vmem:[%s4719_s4 + $0xc88] sm:$0xff]  ;;  %v2758_v26 = vld [vmem:[%s4719_s4 + $0xc98] sm:$0xff] }
  0xfb   : > { %v2734_v32 = vld [vmem:[%s4719_s4 + $0xbe8] sm:$0xff]  ;;  %v3743_v34 = vpack.c.bf16 %v2758_v26, %v2756_v25 }
  0xfc   : > { %3630 = vmatpush1.bf16.msra.mxu0 %v3629_v49  ;;  %v3651_v49 = vpack.c.bf16 %v2662_v5, %v2660_v4  ;;  %v5121_v4 = vld [vmem:[#allocation2] sm:$0xff]  ;;  %v3711_v5 = vpack.c.bf16 %v2724_v61, %v2722_v60  ;;  %v2763_v61 = vld [vmem:[%s4719_s4 + $0xcc0] sm:$0xff] }
  0xfd   : > { %3632 = vmatprep.subr.bf16.mxu0 %v3631_v42  ;;  %3682 = vmatpush1.bf16.msra.mxu1 %v3681_v45  ;;  %v2664_v42 = vld [vmem:[%s4719_s4 + $0x9c8] sm:$0xff]  ;;  %v2715_v45 = vld [vmem:[%s4719_s4 + $0xb50] sm:$0xff] }
  0xfe   : > { %3684 = vmatprep.subr.bf16.mxu1 %v3683_v46  ;;  %v3661_v46 = vpack.c.bf16 %v2669_v38, %v2667_v37  ;;  %v3705_v55 = vpack.c.bf16 %v2715_v45, %v2713_v44  ;;  %v2760_v37 = vld [vmem:[%s4719_s4 + $0xca8] sm:$0xff]  ;;  %v2762_v38 = vld [vmem:[%s4719_s4 + $0xcb8] sm:$0xff] }
  0xff   : > { %v2806_v45 = vld [vmem:[%s4719_s4 + $0xe08] sm:$0xff]  ;;  %v3747_v47 = vpack.c.bf16 %v2762_v38, %v2760_v37 }
 0x100   : > { %3634 = vmatpush1.bf16.msra.mxu0 %v3633_v24  ;;  %v3655_v24 = vpack.c.bf16 %v2666_v16, %v2664_v42 }
 0x101   : > { %3636 = vmatprep.subr.bf16.mxu0 %v3635_v27  ;;  %3686 = vmatpush1.bf16.msra.mxu1 %v3685_v58  ;;  %v2668_v27 = vld [vmem:[%s4719_s4 + $0x9e8] sm:$0xff]  ;;  %v2719_v58 = vld [vmem:[%s4719_s4 + $0xb70] sm:$0xff] }
 0x102   : > { %3688 = vmatprep.subr.bf16.mxu1 %v3687_v59  ;;  %v3729_v59 = vpack.c.bf16 %v2741_v52, %v2739_v51  ;;  %v3709_v3 = vpack.c.bf16 %v2719_v58, %v2717_v57  ;;  %v2764_v51 = vld [vmem:[%s4719_s4 + $0xcc8] sm:$0xff]  ;;  %v2766_v52 = vld [vmem:[%s4719_s4 + $0xcd8] sm:$0xff] }
 0x103   : > { %v2810_v58 = vld [vmem:[%s4719_s4 + $0xe28] sm:$0xff]  ;;  %v3751_v60 = vpack.c.bf16 %v2766_v52, %v2764_v51 }
 0x104   : > { %3638 = vmatpush1.bf16.msra.mxu0 %v3637_v36  ;;  %v3659_v36 = vpack.c.bf16 %v2670_v28, %v2668_v27 }
 0x105   : > { %3640 = vmatprep.subr.bf16.mxu0 %v3639_v39  ;;  %3690 = vmatpush1.bf16.msra.mxu1 %v3689_v6  ;;  %v2740_v39 = vld [vmem:[%s4719_s4 + $0xc08] sm:$0xff]  ;;  %v2721_v6 = vld [vmem:[%s4719_s4 + $0xb80] sm:$0xff] }
 0x106   : > { %3692 = vmatprep.subr.bf16.mxu1 %v3691_v7  ;;  %v2723_v7 = vld [vmem:[%s4719_s4 + $0xb90] sm:$0xff] }
 0x107   : > { %v3713_v42 = vpack.c.bf16 %v2723_v7, %v2721_v6  ;;  %v2814_v7 = vld [vmem:[%s4719_s4 + $0xe48] sm:$0xff] }
 0x108   : > { %3642 = vmatpush1.bf16.msra.mxu0 %v3641_v50  ;;  %v3727_v50 = vpack.c.bf16 %v2742_v40, %v2740_v39 }
 0x109   : > { %3644 = vmatprep.subr.bf16.mxu0 %v3643_v53  ;;  %3694 = vmatpush1.bf16.msra.mxu1 %v3693_v17  ;;  %v2744_v53 = vld [vmem:[%s4719_s4 + $0xc28] sm:$0xff]  ;;  %v2725_v17 = vld [vmem:[%s4719_s4 + $0xba0] sm:$0xff] }
 0x10a   : > { %3696 = vmatprep.subr.bf16.mxu1 %v3695_v18  ;;  %v2727_v18 = vld [vmem:[%s4719_s4 + $0xbb0] sm:$0xff] }
 0x10b   : > { %v3717_v27 = vpack.c.bf16 %v2727_v18, %v2725_v17  ;;  %v2818_v18 = vld [vmem:[%s4719_s4 + $0xe68] sm:$0xff] }
 0x10c   : > { %3646 = vmatpush1.bf16.msra.mxu0 %v3645_v62  ;;  %v3731_v62 = vpack.c.bf16 %v2746_v54, %v2744_v53 }
 0x10d   : > { %3648 = vmatprep.subr.bf16.mxu0 %v3647_v1  ;;  %3698 = vmatpush1.bf16.msra.mxu1 %v3697_v29  ;;  %v2748_v1 = vld [vmem:[%s4719_s4 + $0xc48] sm:$0xff]  ;;  %v2729_v29 = vld [vmem:[%s4719_s4 + $0xbc0] sm:$0xff] }
 0x10e   : > { %3700 = vmatprep.subr.bf16.mxu1 %v3699_v30  ;;  %v3735_v12 = vpack.c.bf16 %v2750_v2, %v2748_v1  ;;  %v2731_v30 = vld [vmem:[%s4719_s4 + $0xbd0] sm:$0xff] }
 0x10f   : > { %v3721_v39 = vpack.c.bf16 %v2731_v30, %v2729_v29  ;;  %v2822_v30 = vld [vmem:[%s4719_s4 + $0xe88] sm:$0xff] }
 0x110   : > { %3650 = vmatpush1.bf16.msra.mxu0 %v3649_v11  ;;  %v2728_v11 = vld [vmem:[%s4719_s4 + $0xbb8] sm:$0xff] }
 0x111   : > { %3652 = vmatprep.subr.bf16.mxu0 %v3651_v49  ;;  %3702 = vmatpush1.bf16.msra.mxu1 %v3701_v41  ;;  %v2749_v49 = vld [vmem:[%s4719_s4 + $0xc50] sm:$0xff]  ;;  %v3715_v16 = vpack.c.bf16 %v2728_v11, %v2726_v9  ;;  %v2733_v41 = vld [vmem:[%s4719_s4 + $0xbe0] sm:$0xff]  ;;  %v3755_v9 = vpack.c.bf16 %v2770_v0, %v2768_v63 }
 0x112   : > { %3704 = vmatprep.subr.bf16.mxu1 %v3703_v43  ;;  %v3737_v19 = vpack.c.bf16 %v2749_v49, %v2747_v13  ;;  %v2735_v43 = vld [vmem:[%s4719_s4 + $0xbf0] sm:$0xff]  ;;  %v2767_v11 = vld [vmem:[%s4719_s4 + $0xce0] sm:$0xff]  ;;  %v2772_v13 = vld [vmem:[%s4719_s4 + $0xd08] sm:$0xff] }
 0x113   : > { %v3725_v53 = vpack.c.bf16 %v2735_v43, %v2733_v41  ;;  %v2774_v49 = vld [vmem:[%s4719_s4 + $0xd18] sm:$0xff]  ;;  %v2826_v43 = vld [vmem:[%s4719_s4 + $0xea8] sm:$0xff] }
 0x114   : > { %3654 = vmatpush1.bf16.msra.mxu0 %v3653_v21  ;;  %v2732_v21 = vld [vmem:[%s4719_s4 + $0xbd8] sm:$0xff] }
 0x115   : > { %3656 = vmatprep.subr.bf16.mxu0 %v3655_v24  ;;  %3706 = vmatpush1.bf16.msra.mxu1 %v3705_v55  ;;  %v2753_v24 = vld [vmem:[%s4719_s4 + $0xc70] sm:$0xff]  ;;  %v3719_v28 = vpack.c.bf16 %v2732_v21, %v2730_v20  ;;  %v2805_v55 = vld [vmem:[%s4719_s4 + $0xe00] sm:$0xff]  ;;  %v3759_v20 = vpack.c.bf16 %v2774_v49, %v2772_v13 }
 0x116   : > { %3708 = vmatprep.subr.bf16.mxu1 %v3707_v56  ;;  %v3741_v31 = vpack.c.bf16 %v2753_v24, %v2751_v23  ;;  %v2807_v56 = vld [vmem:[%s4719_s4 + $0xe10] sm:$0xff]  ;;  %v2771_v21 = vld [vmem:[%s4719_s4 + $0xd00] sm:$0xff]  ;;  %v2776_v23 = vld [vmem:[%s4719_s4 + $0xd28] sm:$0xff] }
 0x117   : > { %v3793_v1 = vpack.c.bf16 %v2807_v56, %v2805_v55  ;;  %v2778_v24 = vld [vmem:[%s4719_s4 + $0xd38] sm:$0xff]  ;;  %v2830_v56 = vld [vmem:[%s4719_s4 + $0xec8] sm:$0xff] }
 0x118   : > { %3658 = vmatpush1.bf16.msra.mxu0 %v3657_v33  ;;  %v2736_v33 = vld [vmem:[%s4719_s4 + $0xbf8] sm:$0xff] }
 0x119   : > { %3660 = vmatprep.subr.bf16.mxu0 %v3659_v36  ;;  %3710 = vmatpush1.bf16.msra.mxu1 %v3709_v3  ;;  %v2757_v36 = vld [vmem:[%s4719_s4 + $0xc90] sm:$0xff]  ;;  %v3723_v40 = vpack.c.bf16 %v2736_v33, %v2734_v32  ;;  %v2809_v3 = vld [vmem:[%s4719_s4 + $0xe20] sm:$0xff]  ;;  %v3763_v32 = vpack.c.bf16 %v2778_v24, %v2776_v23 }
 0x11a   : > { %3712 = vmatprep.subr.bf16.mxu1 %v3711_v5  ;;  %v3745_v44 = vpack.c.bf16 %v2757_v36, %v2755_v35  ;;  %v2811_v5 = vld [vmem:[%s4719_s4 + $0xe30] sm:$0xff]  ;;  %v2775_v33 = vld [vmem:[%s4719_s4 + $0xd20] sm:$0xff]  ;;  %v2780_v35 = vld [vmem:[%s4719_s4 + $0xd48] sm:$0xff] }
 0x11b   : > { %v3797_v14 = vpack.c.bf16 %v2811_v5, %v2809_v3  ;;  %v2782_v36 = vld [vmem:[%s4719_s4 + $0xd58] sm:$0xff]  ;;  %v2834_v5 = vld [vmem:[%s4719_s4 + $0xee8] sm:$0xff] }
 0x11c   : > { %3662 = vmatpush1.bf16.msra.mxu0 %v3661_v46  ;;  %v2808_v46 = vld [vmem:[%s4719_s4 + $0xe18] sm:$0xff] }
 0x11d   : > { %3728 = vmatprep.subr.bf16.mxu0 %v3727_v50  ;;  %3714 = vmatpush1.bf16.msra.mxu1 %v3713_v42  ;;  %v2761_v50 = vld [vmem:[%s4719_s4 + $0xcb0] sm:$0xff]  ;;  %v3791_v54 = vpack.c.bf16 %v2808_v46, %v2806_v45  ;;  %v2813_v42 = vld [vmem:[%s4719_s4 + $0xe40] sm:$0xff]  ;;  %v3767_v45 = vpack.c.bf16 %v2782_v36, %v2780_v35 }
 0x11e   : > { %3716 = vmatprep.subr.bf16.mxu1 %v3715_v16  ;;  %v3749_v57 = vpack.c.bf16 %v2761_v50, %v2759_v48  ;;  %v2815_v16 = vld [vmem:[%s4719_s4 + $0xe50] sm:$0xff]  ;;  %v2779_v46 = vld [vmem:[%s4719_s4 + $0xd40] sm:$0xff]  ;;  %v2784_v48 = vld [vmem:[%s4719_s4 + $0xd68] sm:$0xff] }
 0x11f   : > { %886 = vmatmul.mubr.f32.vlgmr.msra.gmra.mrb[4].mxu0 %v5121_v4  ;;  %v3801_v25 = vpack.c.bf16 %v2815_v16, %v2813_v42  ;;  %v2786_v50 = vld [vmem:[%s4719_s4 + $0xd78] sm:$0xff]  ;;  %v2838_v16 = vld [vmem:[%s4719_s4 + $0xf08] sm:$0xff] }
 0x120   : > { %3730 = vmatpush1.bf16.msra.mxu0 %v3729_v59  ;;  %1163 = vmatprep.mubr.f32.mxu0 %v5038_v10  ;;  %v2812_v59 = vld [vmem:[%s4719_s4 + $0xe38] sm:$0xff] }
 0x121   : > { %3732 = vmatprep.subr.bf16.mxu0 %v3731_v62  ;;  %3718 = vmatpush1.bf16.msra.mxu1 %v3717_v27  ;;  %v2765_v62 = vld [vmem:[%s4719_s4 + $0xcd0] sm:$0xff]  ;;  %v3795_v2 = vpack.c.bf16 %v2812_v59, %v2810_v58  ;;  %v2817_v27 = vld [vmem:[%s4719_s4 + $0xe60] sm:$0xff]  ;;  %v3771_v58 = vpack.c.bf16 %v2786_v50, %v2784_v48 }
 0x122   : > { %3720 = vmatprep.subr.bf16.mxu1 %v3719_v28  ;;  %v3753_v6 = vpack.c.bf16 %v2765_v62, %v2763_v61  ;;  %v2819_v28 = vld [vmem:[%s4719_s4 + $0xe70] sm:$0xff]  ;;  %v2783_v59 = vld [vmem:[%s4719_s4 + $0xd60] sm:$0xff]  ;;  %v2788_v61 = vld [vmem:[%s4719_s4 + $0xd88] sm:$0xff] }
 0x123   : > { %v3805_v37 = vpack.c.bf16 %v2819_v28, %v2817_v27  ;;  %v2790_v62 = vld [vmem:[%s4719_s4 + $0xd98] sm:$0xff]  ;;  %v2842_v28 = vld [vmem:[%s4719_s4 + $0xf28] sm:$0xff] }
 0x124   : > { %3734 = vmatpush1.bf16.msra.mxu0 %v3733_v8  ;;  %v2816_v8 = vld [vmem:[%s4719_s4 + $0xe58] sm:$0xff] }
 0x125   : > { %3736 = vmatprep.subr.bf16.mxu0 %v3735_v12  ;;  %3722 = vmatpush1.bf16.msra.mxu1 %v3721_v39  ;;  %v2769_v12 = vld [vmem:[%s4719_s4 + $0xcf0] sm:$0xff]  ;;  %v3799_v15 = vpack.c.bf16 %v2816_v8, %v2814_v7  ;;  %v2821_v39 = vld [vmem:[%s4719_s4 + $0xe80] sm:$0xff]  ;;  %v3775_v7 = vpack.c.bf16 %v2790_v62, %v2788_v61 }
 0x126   : > { %3724 = vmatprep.subr.bf16.mxu1 %v3723_v40  ;;  %v3757_v17 = vpack.c.bf16 %v2769_v12, %v2767_v11  ;;  %v2823_v40 = vld [vmem:[%s4719_s4 + $0xe90] sm:$0xff]  ;;  %v2787_v8 = vld [vmem:[%s4719_s4 + $0xd80] sm:$0xff]  ;;  %v2792_v11 = vld [vmem:[%s4719_s4 + $0xda8] sm:$0xff] }
 0x127   : > { %v3809_v51 = vpack.c.bf16 %v2823_v40, %v2821_v39  ;;  %v2794_v12 = vld [vmem:[%s4719_s4 + $0xdb8] sm:$0xff]  ;;  %v2846_v40 = vld [vmem:[%s4719_s4 + $0xf48] sm:$0xff] }
 0x128   : > { %3738 = vmatpush1.bf16.msra.mxu0 %v3737_v19  ;;  %v2820_v19 = vld [vmem:[%s4719_s4 + $0xe78] sm:$0xff] }
 0x129   : > { %3740 = vmatprep.subr.bf16.mxu0 %v3739_v22  ;;  %3726 = vmatpush1.bf16.msra.mxu1 %v3725_v53  ;;  %v2773_v22 = vld [vmem:[%s4719_s4 + $0xd10] sm:$0xff]  ;;  %v3803_v26 = vpack.c.bf16 %v2820_v19, %v2818_v18  ;;  %v2825_v53 = vld [vmem:[%s4719_s4 + $0xea0] sm:$0xff]  ;;  %v3779_v18 = vpack.c.bf16 %v2794_v12, %v2792_v11 }
 0x12a   : > { %3792 = vmatprep.subr.bf16.mxu1 %v3791_v54  ;;  %v3761_v29 = vpack.c.bf16 %v2773_v22, %v2771_v21  ;;  %v2827_v54 = vld [vmem:[%s4719_s4 + $0xeb0] sm:$0xff]  ;;  %v2791_v19 = vld [vmem:[%s4719_s4 + $0xda0] sm:$0xff]  ;;  %v2796_v21 = vld [vmem:[%s4719_s4 + $0xdc8] sm:$0xff] }
 0x12b   : > { %v3813_v63 = vpack.c.bf16 %v2827_v54, %v2825_v53  ;;  %v2798_v22 = vld [vmem:[%s4719_s4 + $0xdd8] sm:$0xff]  ;;  %v2850_v54 = vld [vmem:[%s4719_s4 + $0xf68] sm:$0xff] }
 0x12c   : > { %3742 = vmatpush1.bf16.msra.mxu0 %v3741_v31  ;;  %1025 = vmatmul.mubr.f32.vlgmr.msra.gmra.mrb[4].mxu1 %v5121_v4  ;;  %v2824_v31 = vld [vmem:[%s4719_s4 + $0xe98] sm:$0xff] }
 0x12d   : > { %3744 = vmatprep.subr.bf16.mxu0 %v3743_v34  ;;  %3794 = vmatpush1.bf16.msra.mxu1 %v3793_v1  ;;  %v2777_v34 = vld [vmem:[%s4719_s4 + $0xd30] sm:$0xff]  ;;  %v3807_v38 = vpack.c.bf16 %v2824_v31, %v2822_v30  ;;  %v2829_v1 = vld [vmem:[%s4719_s4 + $0xec0] sm:$0xff]  ;;  %v3783_v30 = vpack.c.bf16 %v2798_v22, %v2796_v21 }
 0x12e   : > { %1302 = vmatprep.mubr.f32.mxu1 %v5038_v10  ;;  %3796 = vmatprep.subr.bf16.mxu1 %v3795_v2  ;;  %v3765_v41 = vpack.c.bf16 %v2777_v34, %v2775_v33  ;;  %v2831_v2 = vld [vmem:[%s4719_s4 + $0xed0] sm:$0xff]  ;;  %v2795_v31 = vld [vmem:[%s4719_s4 + $0xdc0] sm:$0xff]  ;;  %v2800_v33 = vld [vmem:[%s4719_s4 + $0xde8] sm:$0xff] }
 0x12f   : > { %v3817_v13 = vpack.c.bf16 %v2831_v2, %v2829_v1  ;;  %v2802_v34 = vld [vmem:[%s4719_s4 + $0xdf8] sm:$0xff]  ;;  %v2854_v2 = vld [vmem:[%s4719_s4 + $0xf88] sm:$0xff] }
 0x130   : > { %3746 = vmatpush1.bf16.msra.mxu0 %v3745_v44  ;;  %v2828_v44 = vld [vmem:[%s4719_s4 + $0xeb8] sm:$0xff] }
 0x131   : > { %3748 = vmatprep.subr.bf16.mxu0 %v3747_v47  ;;  %3798 = vmatpush1.bf16.msra.mxu1 %v3797_v14  ;;  %v2781_v47 = vld [vmem:[%s4719_s4 + $0xd50] sm:$0xff]  ;;  %v3811_v52 = vpack.c.bf16 %v2828_v44, %v2826_v43  ;;  %v2833_v14 = vld [vmem:[%s4719_s4 + $0xee0] sm:$0xff]  ;;  %v3787_v43 = vpack.c.bf16 %v2802_v34, %v2800_v33 }
 0x132   : > { %3800 = vmatprep.subr.bf16.mxu1 %v3799_v15  ;;  %v3769_v55 = vpack.c.bf16 %v2781_v47, %v2779_v46  ;;  %v2835_v15 = vld [vmem:[%s4719_s4 + $0xef0] sm:$0xff]  ;;  %v2799_v44 = vld [vmem:[%s4719_s4 + $0xde0] sm:$0xff]  ;;  %v2872_v46 = vld [vmem:[%s4719_s4 + $0x1008] sm:$0xff] }
 0x133   : > { %v3821_v23 = vpack.c.bf16 %v2835_v15, %v2833_v14  ;;  %v2874_v47 = vld [vmem:[%s4719_s4 + $0x1018] sm:$0xff]  ;;  %v2858_v15 = vld [vmem:[%s4719_s4 + $0xfa8] sm:$0xff]  ;;  %v2861_v34 = vld [vmem:[%s4719_s4 + $0xfc0] sm:$0xff] }
 0x134   : > { %3750 = vmatpush1.bf16.msra.mxu0 %v3749_v57  ;;  %v2832_v57 = vld [vmem:[%s4719_s4 + $0xed8] sm:$0xff] }
 0x135   : > { %3752 = vmatprep.subr.bf16.mxu0 %v3751_v60  ;;  %3802 = vmatpush1.bf16.msra.mxu1 %v3801_v25  ;;  %v2785_v60 = vld [vmem:[%s4719_s4 + $0xd70] sm:$0xff]  ;;  %v3815_v0 = vpack.c.bf16 %v2832_v57, %v2830_v56  ;;  %v2837_v25 = vld [vmem:[%s4719_s4 + $0xf00] sm:$0xff]  ;;  %v3855_v56 = vpack.c.bf16 %v2874_v47, %v2872_v46 }
 0x136   : > { %3804 = vmatprep.subr.bf16.mxu1 %v3803_v26  ;;  %v3773_v3 = vpack.c.bf16 %v2785_v60, %v2783_v59  ;;  %v2839_v26 = vld [vmem:[%s4719_s4 + $0xf10] sm:$0xff]  ;;  %v2871_v57 = vld [vmem:[%s4719_s4 + $0x1000] sm:$0xff]  ;;  %v2876_v59 = vld [vmem:[%s4719_s4 + $0x1028] sm:$0xff] }
 0x137   : > { %v3825_v35 = vpack.c.bf16 %v2839_v26, %v2837_v25  ;;  %v2878_v60 = vld [vmem:[%s4719_s4 + $0x1038] sm:$0xff]  ;;  %v2862_v25 = vld [vmem:[%s4719_s4 + $0xfc8] sm:$0xff]  ;;  %v2865_v47 = vld [vmem:[%s4719_s4 + $0xfe0] sm:$0xff] }
 0x138   : > { %3754 = vmatpush1.bf16.msra.mxu0 %v3753_v6  ;;  %v2836_v6 = vld [vmem:[%s4719_s4 + $0xef8] sm:$0xff] }
 0x139   : > { %3756 = vmatprep.subr.bf16.mxu0 %v3755_v9  ;;  %3806 = vmatpush1.bf16.msra.mxu1 %v3805_v37  ;;  %v2789_v9 = vld [vmem:[%s4719_s4 + $0xd90] sm:$0xff]  ;;  %v3819_v49 = vpack.c.bf16 %v2836_v6, %v2834_v5  ;;  %v2841_v37 = vld [vmem:[%s4719_s4 + $0xf20] sm:$0xff]  ;;  %v3859_v5 = vpack.c.bf16 %v2878_v60, %v2876_v59  ;;  %v2864_v26 = vld [vmem:[%s4719_s4 + $0xfd8] sm:$0xff] }
 0x13a   : > { %3808 = vmatprep.subr.bf16.mxu1 %v3807_v38  ;;  %v3777_v42 = vpack.c.bf16 %v2789_v9, %v2787_v8  ;;  %v2843_v38 = vld [vmem:[%s4719_s4 + $0xf30] sm:$0xff]  ;;  %v2875_v6 = vld [vmem:[%s4719_s4 + $0x1020] sm:$0xff]  ;;  %v2880_v8 = vld [vmem:[%s4719_s4 + $0x1048] sm:$0xff]  ;;  %v3847_v33 = vpack.c.bf16 %v2864_v26, %v2862_v25 }
 0x13b   : > { %v3829_v48 = vpack.c.bf16 %v2843_v38, %v2841_v37  ;;  %v2882_v9 = vld [vmem:[%s4719_s4 + $0x1058] sm:$0xff]  ;;  %v2866_v37 = vld [vmem:[%s4719_s4 + $0xfe8] sm:$0xff]  ;;  %v2937_v60 = vld [vmem:[%s4719_s4 + $0x1200] sm:$0xff] }
 0x13c   : > { %3758 = vmatpush1.bf16.msra.mxu0 %v3757_v17  ;;  %v2840_v17 = vld [vmem:[%s4719_s4 + $0xf18] sm:$0xff] }
 0x13d   : > { %3760 = vmatprep.subr.bf16.mxu0 %v3759_v20  ;;  %3810 = vmatpush1.bf16.msra.mxu1 %v3809_v51  ;;  %v2793_v20 = vld [vmem:[%s4719_s4 + $0xdb0] sm:$0xff]  ;;  %v3823_v24 = vpack.c.bf16 %v2840_v17, %v2838_v16  ;;  %v2845_v51 = vld [vmem:[%s4719_s4 + $0xf40] sm:$0xff]  ;;  %v3863_v16 = vpack.c.bf16 %v2882_v9, %v2880_v8  ;;  %v2868_v38 = vld [vmem:[%s4719_s4 + $0xff8] sm:$0xff] }
 0x13e   : > { %3812 = vmatprep.subr.bf16.mxu1 %v3811_v52  ;;  %v3781_v27 = vpack.c.bf16 %v2793_v20, %v2791_v19  ;;  %v2847_v52 = vld [vmem:[%s4719_s4 + $0xf50] sm:$0xff]  ;;  %v2879_v17 = vld [vmem:[%s4719_s4 + $0x1040] sm:$0xff]  ;;  %v2884_v19 = vld [vmem:[%s4719_s4 + $0x1068] sm:$0xff]  ;;  %v3851_v46 = vpack.c.bf16 %v2868_v38, %v2866_v37 }
 0x13f   : > { %v3833_v61 = vpack.c.bf16 %v2847_v52, %v2845_v51  ;;  %v2886_v20 = vld [vmem:[%s4719_s4 + $0x1078] sm:$0xff]  ;;  %v2938_v51 = vld [vmem:[%s4719_s4 + $0x1208] sm:$0xff] }
 0x140   : > { %3762 = vmatpush1.bf16.msra.mxu0 %v3761_v29  ;;  %v2844_v29 = vld [vmem:[%s4719_s4 + $0xf38] sm:$0xff] }
 0x141   : > { %3764 = vmatprep.subr.bf16.mxu0 %v3763_v32  ;;  %3814 = vmatpush1.bf16.msra.mxu1 %v3813_v63  ;;  %v2797_v32 = vld [vmem:[%s4719_s4 + $0xdd0] sm:$0xff]  ;;  %v3827_v36 = vpack.c.bf16 %v2844_v29, %v2842_v28  ;;  %v2849_v63 = vld [vmem:[%s4719_s4 + $0xf60] sm:$0xff]  ;;  %v2940_v52 = vld [vmem:[%s4719_s4 + $0x1218] sm:$0xff] }
 0x142   : > { %3816 = vmatprep.subr.bf16.mxu1 %v3815_v0  ;;  %v3785_v39 = vpack.c.bf16 %v2797_v32, %v2795_v31  ;;  %v2851_v0 = vld [vmem:[%s4719_s4 + $0xf70] sm:$0xff]  ;;  %v2883_v28 = vld [vmem:[%s4719_s4 + $0x1060] sm:$0xff]  ;;  %v2890_v31 = vld [vmem:[%s4719_s4 + $0x1098] sm:$0xff]  ;;  %v3919_v59 = vpack.c.bf16 %v2940_v52, %v2938_v51 }
 0x143   : > { %v3837_v11 = vpack.c.bf16 %v2851_v0, %v2849_v63  ;;  %v2885_v29 = vld [vmem:[%s4719_s4 + $0x1070] sm:$0xff]  ;;  %v2942_v63 = vld [vmem:[%s4719_s4 + $0x1228] sm:$0xff]  ;;  %v2944_v0 = vld [vmem:[%s4719_s4 + $0x1238] sm:$0xff] }
 0x144   : > { %3766 = vmatpush1.bf16.msra.mxu0 %v3765_v41  ;;  %v2848_v41 = vld [vmem:[%s4719_s4 + $0xf58] sm:$0xff] }
 0x145   : > { %3768 = vmatprep.subr.bf16.mxu0 %v3767_v45  ;;  %3818 = vmatpush1.bf16.msra.mxu1 %v3817_v13  ;;  %v2801_v45 = vld [vmem:[%s4719_s4 + $0xdf0] sm:$0xff]  ;;  %v3831_v50 = vpack.c.bf16 %v2848_v41, %v2846_v40  ;;  %v2853_v13 = vld [vmem:[%s4719_s4 + $0xf80] sm:$0xff]  ;;  %v2952_v25 = vld [vmem:[%s4719_s4 + $0x1278] sm:$0xff] }
 0x146   : > { %3820 = vmatprep.subr.bf16.mxu1 %v3819_v49  ;;  %v3789_v53 = vpack.c.bf16 %v2801_v45, %v2799_v44  ;;  %v2855_v49 = vld [vmem:[%s4719_s4 + $0xf90] sm:$0xff]  ;;  %v2887_v40 = vld [vmem:[%s4719_s4 + $0x1080] sm:$0xff]  ;;  %v2894_v44 = vld [vmem:[%s4719_s4 + $0x10b8] sm:$0xff] }
 0x147   : > { %v3841_v21 = vpack.c.bf16 %v2855_v49, %v2853_v13  ;;  %v2889_v41 = vld [vmem:[%s4719_s4 + $0x1090] sm:$0xff]  ;;  %v2956_v37 = vld [vmem:[%s4719_s4 + $0x1298] sm:$0xff] }
 0x148   : > { %3770 = vmatpush1.bf16.msra.mxu0 %v3769_v55  ;;  %v2852_v55 = vld [vmem:[%s4719_s4 + $0xf78] sm:$0xff]  ;;  %v2943_v13 = vld [vmem:[%s4719_s4 + $0x1230] sm:$0xff] }
 0x149   : > { %3772 = vmatprep.subr.bf16.mxu0 %v3771_v58  ;;  %3822 = vmatpush1.bf16.msra.mxu1 %v3821_v23  ;;  %v2873_v58 = vld [vmem:[%s4719_s4 + $0x1010] sm:$0xff]  ;;  %v3835_v62 = vpack.c.bf16 %v2852_v55, %v2850_v54  ;;  %v2857_v23 = vld [vmem:[%s4719_s4 + $0xfa0] sm:$0xff]  ;;  %v2960_v51 = vld [vmem:[%s4719_s4 + $0x12b8] sm:$0xff] }
 0x14a   : > { %3824 = vmatprep.subr.bf16.mxu1 %v3823_v24  ;;  %v3857_v1 = vpack.c.bf16 %v2873_v58, %v2871_v57  ;;  %v2859_v24 = vld [vmem:[%s4719_s4 + $0xfb0] sm:$0xff]  ;;  %v2891_v54 = vld [vmem:[%s4719_s4 + $0x10a0] sm:$0xff]  ;;  %v2898_v57 = vld [vmem:[%s4719_s4 + $0x10d8] sm:$0xff] }
 0x14b   : > { %v3845_v32 = vpack.c.bf16 %v2859_v24, %v2857_v23  ;;  %v2893_v55 = vld [vmem:[%s4719_s4 + $0x10b0] sm:$0xff]  ;;  %v2945_v23 = vld [vmem:[%s4719_s4 + $0x1240] sm:$0xff] }
 0x14c   : > { %3774 = vmatpush1.bf16.msra.mxu0 %v3773_v3  ;;  %v2856_v3 = vld [vmem:[%s4719_s4 + $0xf98] sm:$0xff]  ;;  %v2947_v24 = vld [vmem:[%s4719_s4 + $0x1250] sm:$0xff] }
 0x14d   : > { %3776 = vmatprep.subr.bf16.mxu0 %v3775_v7  ;;  %3826 = vmatpush1.bf16.msra.mxu1 %v3825_v35  ;;  %v2877_v7 = vld [vmem:[%s4719_s4 + $0x1030] sm:$0xff]  ;;  %v3839_v12 = vpack.c.bf16 %v2856_v3, %v2854_v2  ;;  %v2895_v2 = vld [vmem:[%s4719_s4 + $0x10c0] sm:$0xff] }
 0x14e   : > { %3828 = vmatprep.subr.bf16.mxu1 %v3827_v36  ;;  %v3861_v14 = vpack.c.bf16 %v2877_v7, %v2875_v6  ;;  %v2863_v35 = vld [vmem:[%s4719_s4 + $0xfd0] sm:$0xff]  ;;  %v3869_v36 = vpack.c.bf16 %v2885_v29, %v2883_v28  ;;  %v2900_v6 = vld [vmem:[%s4719_s4 + $0x10e8] sm:$0xff]  ;;  %v2902_v7 = vld [vmem:[%s4719_s4 + $0x10f8] sm:$0xff] }
 0x14f   : > { %v3849_v45 = vpack.c.bf16 %v2863_v35, %v2861_v34  ;;  %v2897_v3 = vld [vmem:[%s4719_s4 + $0x10d0] sm:$0xff]  ;;  %v2908_v29 = vld [vmem:[%s4719_s4 + $0x1128] sm:$0xff] }
 0x150   : > { %3778 = vmatpush1.bf16.msra.mxu0 %v3777_v42  ;;  %v2860_v42 = vld [vmem:[%s4719_s4 + $0xfb8] sm:$0xff]  ;;  %v3881_v49 = vpack.c.bf16 %v2897_v3, %v2895_v2  ;;  %v2905_v28 = vld [vmem:[%s4719_s4 + $0x1110] sm:$0xff]  ;;  %v2920_v3 = vld [vmem:[%s4719_s4 + $0x1188] sm:$0xff] }
 0x151   : > { %3780 = vmatprep.subr.bf16.mxu0 %v3779_v18  ;;  %3830 = vmatpush1.bf16.msra.mxu1 %v3829_v48  ;;  %v2881_v18 = vld [vmem:[%s4719_s4 + $0x1050] sm:$0xff]  ;;  %v3843_v22 = vpack.c.bf16 %v2860_v42, %v2858_v15  ;;  %v2948_v15 = vld [vmem:[%s4719_s4 + $0x1258] sm:$0xff]  ;;  %v3883_v42 = vpack.c.bf16 %v2902_v7, %v2900_v6 }
 0x152   : > { %3832 = vmatprep.subr.bf16.mxu1 %v3831_v50  ;;  %v2867_v48 = vld [vmem:[%s4719_s4 + $0xff0] sm:$0xff]  ;;  %v3873_v50 = vpack.c.bf16 %v2889_v41, %v2887_v40  ;;  %v2912_v41 = vld [vmem:[%s4719_s4 + $0x1148] sm:$0xff] }
 0x153   : > { %v3853_v58 = vpack.c.bf16 %v2867_v48, %v2865_v47  ;;  %v2951_v34 = vld [vmem:[%s4719_s4 + $0x1270] sm:$0xff] }
 0x154   : > { %3782 = vmatpush1.bf16.msra.mxu0 %v3781_v27  ;;  %v3867_v27 = vpack.c.bf16 %v2886_v20, %v2884_v19  ;;  %v2906_v19 = vld [vmem:[%s4719_s4 + $0x1118] sm:$0xff]  ;;  %v2909_v40 = vld [vmem:[%s4719_s4 + $0x1130] sm:$0xff] }
 0x155   : > { %3784 = vmatprep.subr.bf16.mxu0 %v3783_v30  ;;  %3834 = vmatpush1.bf16.msra.mxu1 %v3833_v61  ;;  %v2888_v30 = vld [vmem:[%s4719_s4 + $0x1088] sm:$0xff]  ;;  %v2939_v61 = vld [vmem:[%s4719_s4 + $0x1210] sm:$0xff] }
 0x156   : > { %3836 = vmatprep.subr.bf16.mxu1 %v3835_v62  ;;  %v3877_v62 = vpack.c.bf16 %v2893_v55, %v2891_v54  ;;  %v3921_v8 = vpack.c.bf16 %v2939_v61, %v2937_v60  ;;  %v2955_v47 = vld [vmem:[%s4719_s4 + $0x1290] sm:$0xff]  ;;  %v2916_v55 = vld [vmem:[%s4719_s4 + $0x1168] sm:$0xff] }
 0x157   : > { %v2913_v54 = vld [vmem:[%s4719_s4 + $0x1150] sm:$0xff] }
 0x158   : > { %3786 = vmatpush1.bf16.msra.mxu0 %v3785_v39  ;;  %v3871_v39 = vpack.c.bf16 %v2890_v31, %v2888_v30  ;;  %v2910_v30 = vld [vmem:[%s4719_s4 + $0x1138] sm:$0xff]  ;;  %v3929_v31 = vpack.c.bf16 %v2947_v24, %v2945_v23  ;;  %v2959_v60 = vld [vmem:[%s4719_s4 + $0x12b0] sm:$0xff] }
 0x159   : > { %3788 = vmatprep.subr.bf16.mxu0 %v3787_v43  ;;  %3838 = vmatpush1.bf16.msra.mxu1 %v3837_v11  ;;  %v2892_v43 = vld [vmem:[%s4719_s4 + $0x10a8] sm:$0xff]  ;;  %v3923_v11 = vpack.c.bf16 %v2944_v0, %v2942_v63  ;;  %v3891_v38 = vpack.c.bf16 %v2910_v30, %v2908_v29  ;;  %v2964_v63 = vld [vmem:[%s4719_s4 + $0x12d8] sm:$0xff]  ;;  %v2917_v2 = vld [vmem:[%s4719_s4 + $0x1170] sm:$0xff] }
 0x15a   : > { %3840 = vmatprep.subr.bf16.mxu1 %v3839_v12  ;;  %v2941_v12 = vld [vmem:[%s4719_s4 + $0x1220] sm:$0xff]  ;;  %v2967_v23 = vld [vmem:[%s4719_s4 + $0x12f0] sm:$0xff]  ;;  %v2930_v29 = vld [vmem:[%s4719_s4 + $0x11d8] sm:$0xff] }
 0x15b   : > { %v3925_v20 = vpack.c.bf16 %v2943_v13, %v2941_v12  ;;  %v2966_v13 = vld [vmem:[%s4719_s4 + $0x12e8] sm:$0xff] }
 0x15c   : > { %3790 = vmatpush1.bf16.msra.mxu0 %v3789_v53  ;;  %v3875_v53 = vpack.c.bf16 %v2894_v44, %v2892_v43  ;;  %v2914_v43 = vld [vmem:[%s4719_s4 + $0x1158] sm:$0xff] }
 0x15d   : > { %3856 = vmatprep.subr.bf16.mxu0 %v3855_v56  ;;  %3842 = vmatpush1.bf16.msra.mxu1 %v3841_v21  ;;  %v2896_v56 = vld [vmem:[%s4719_s4 + $0x10c8] sm:$0xff]  ;;  %v5311_v21 = vld [vmem:[#allocation2 + $0x8] sm:$0xff]  ;;  %v3895_v52 = vpack.c.bf16 %v2914_v43, %v2912_v41 }
 0x15e   : > { %3844 = vmatprep.subr.bf16.mxu1 %v3843_v22  ;;  %v2934_v41 = vld [vmem:[%s4719_s4 + $0x11f8] sm:$0xff] }
 0x15f   : > { %1164 = vmatmul.mubr.f32.vlgmr.msra.gmra.mrb[6].mxu0 %v5121_v4 }
 0x160   : > { %3858 = vmatpush1.bf16.msra.mxu0 %v3857_v1  ;;  %1441 = vmatprep.mubr.f32.mxu0 %v5038_v10  ;;  %v3865_v10 = vpack.c.bf16 %v2881_v18, %v2879_v17  ;;  %v3879_v1 = vpack.c.bf16 %v2898_v57, %v2896_v56  ;;  %v2901_v17 = vld [vmem:[%s4719_s4 + $0x10f0] sm:$0xff]  ;;  %v2904_v18 = vld [vmem:[%s4719_s4 + $0x1108] sm:$0xff]  ;;  %v2918_v56 = vld [vmem:[%s4719_s4 + $0x1178] sm:$0xff] }
 0x161   : > { %3860 = vmatprep.subr.bf16.mxu0 %v3859_v5  ;;  %3846 = vmatpush1.bf16.msra.mxu1 %v3845_v32  ;;  %v3887_v26 = vpack.c.bf16 %v2906_v19, %v2904_v18  ;;  %v3899_v0 = vpack.c.bf16 %v2918_v56, %v2916_v55  ;;  %v2926_v18 = vld [vmem:[%s4719_s4 + $0x11b8] sm:$0xff] }
 0x162   : > { %3848 = vmatprep.subr.bf16.mxu1 %v3847_v33  ;;  %v2949_v33 = vld [vmem:[%s4719_s4 + $0x1260] sm:$0xff]  ;;  %v3006_v55 = vld [vmem:[%s4719_s4 + $0x1418] sm:$0xff] }
 0x163   : > { %v3933_v44 = vpack.c.bf16 %v2951_v34, %v2949_v33  ;;  %v2971_v33 = vld [vmem:[%s4719_s4 + $0x1310] sm:$0xff] }
 0x164   : > { %3862 = vmatpush1.bf16.msra.mxu0 %v3861_v14  ;;  %v2946_v14 = vld [vmem:[%s4719_s4 + $0x1248] sm:$0xff] }
 0x165   : > { %3864 = vmatprep.subr.bf16.mxu0 %v3863_v16  ;;  %3850 = vmatpush1.bf16.msra.mxu1 %v3849_v45  ;;  %v2899_v16 = vld [vmem:[%s4719_s4 + $0x10e0] sm:$0xff]  ;;  %v3927_v22 = vpack.c.bf16 %v2948_v15, %v2946_v14 }
 0x166   : > { %3852 = vmatprep.subr.bf16.mxu1 %v3851_v46  ;;  %v2953_v46 = vld [vmem:[%s4719_s4 + $0x1280] sm:$0xff] }
 0x167   : > { %v3937_v57 = vpack.c.bf16 %v2955_v47, %v2953_v46  ;;  %v2919_v15 = vld [vmem:[%s4719_s4 + $0x1180] sm:$0xff]  ;;  %v2975_v46 = vld [vmem:[%s4719_s4 + $0x1330] sm:$0xff] }
 0x168   : > { %3866 = vmatpush1.bf16.msra.mxu0 %v3865_v10  ;;  %v2950_v10 = vld [vmem:[%s4719_s4 + $0x1268] sm:$0xff] }
 0x169   : > { %3868 = vmatprep.subr.bf16.mxu0 %v3867_v27  ;;  %3854 = vmatpush1.bf16.msra.mxu1 %v3853_v58  ;;  %v2903_v27 = vld [vmem:[%s4719_s4 + $0x1100] sm:$0xff]  ;;  %v3931_v32 = vpack.c.bf16 %v2952_v25, %v2950_v10  ;;  %v2972_v10 = vld [vmem:[%s4719_s4 + $0x1318] sm:$0xff] }
 0x16a   : > { %3920 = vmatprep.subr.bf16.mxu1 %v3919_v59  ;;  %v3889_v35 = vpack.c.bf16 %v2905_v28, %v2903_v27  ;;  %v2957_v59 = vld [vmem:[%s4719_s4 + $0x12a0] sm:$0xff]  ;;  %v2925_v27 = vld [vmem:[%s4719_s4 + $0x11b0] sm:$0xff]  ;;  %v2928_v28 = vld [vmem:[%s4719_s4 + $0x11c8] sm:$0xff] }
 0x16b   : > { %v3941_v6 = vpack.c.bf16 %v2959_v60, %v2957_v59  ;;  %v2979_v59 = vld [vmem:[%s4719_s4 + $0x1350] sm:$0xff] }
 0x16c   : > { %3870 = vmatpush1.bf16.msra.mxu0 %v3869_v36  ;;  %1303 = vmatmul.mubr.f32.vlgmr.msra.gmra.mrb[6].mxu1 %v5121_v4  ;;  %v3885_v4 = vpack.c.bf16 %v2901_v17, %v2899_v16  ;;  %v2954_v36 = vld [vmem:[%s4719_s4 + $0x1288] sm:$0xff] }
 0x16d   : > { %3872 = vmatprep.subr.bf16.mxu0 %v3871_v39  ;;  %3922 = vmatpush1.bf16.msra.mxu1 %v3921_v8  ;;  %v2907_v39 = vld [vmem:[%s4719_s4 + $0x1120] sm:$0xff]  ;;  %v3935_v45 = vpack.c.bf16 %v2956_v37, %v2954_v36  ;;  %v2924_v17 = vld [vmem:[%s4719_s4 + $0x11a8] sm:$0xff]  ;;  %v2976_v36 = vld [vmem:[%s4719_s4 + $0x1338] sm:$0xff]  ;;  %v3911_v37 = vpack.c.bf16 %v2930_v29, %v2928_v28 }
 0x16e   : > { %1580 = vmatprep.mubr.f32.mxu1 %v5311_v21  ;;  %3924 = vmatprep.subr.bf16.mxu1 %v3923_v11  ;;  %v3893_v48 = vpack.c.bf16 %v2909_v40, %v2907_v39  ;;  %v2961_v8 = vld [vmem:[%s4719_s4 + $0x12c0] sm:$0xff]  ;;  %v3907_v25 = vpack.c.bf16 %v2926_v18, %v2924_v17  ;;  %v2929_v39 = vld [vmem:[%s4719_s4 + $0x11d0] sm:$0xff]  ;;  %v2932_v40 = vld [vmem:[%s4719_s4 + $0x11e8] sm:$0xff] }
 0x16f   : > { %v5396_v17 = vld [vmem:[#allocation2] sm:$0xff] }
 0x170   : > { %3874 = vmatpush1.bf16.msra.mxu0 %v3873_v50  ;;  %v2958_v50 = vld [vmem:[%s4719_s4 + $0x12a8] sm:$0xff] }
 0x171   : > { %3876 = vmatprep.subr.bf16.mxu0 %v3875_v53  ;;  %3926 = vmatpush1.bf16.msra.mxu1 %v3925_v20  ;;  %v2911_v53 = vld [vmem:[%s4719_s4 + $0x1140] sm:$0xff]  ;;  %v3939_v58 = vpack.c.bf16 %v2960_v51, %v2958_v50  ;;  %v2980_v50 = vld [vmem:[%s4719_s4 + $0x1358] sm:$0xff]  ;;  %v3915_v51 = vpack.c.bf16 %v2934_v41, %v2932_v40 }
 0x172   : > { %v332_v5 = vpop.f32.mrb[0].mxu0  ;;  %3928 = vmatprep.subr.bf16.mxu1 %v3927_v22  ;;  %v3897_v61 = vpack.c.bf16 %v2913_v54, %v2911_v53  ;;  %v2965_v22 = vld [vmem:[%s4719_s4 + $0x12e0] sm:$0xff]  ;;  %v2933_v53 = vld [vmem:[%s4719_s4 + $0x11f0] sm:$0xff]  ;;  %v3004_v54 = vld [vmem:[%s4719_s4 + $0x1408] sm:$0xff] }
 0x173   : > { %337 = vst [vmem:[%s5298_s20] sm:$0xff] %v332_v5  ;;  %v334_v9 = vpop.f32.mrb[1].mxu0  ;;  %v2922_v5 = vld [vmem:[%s4719_s4 + $0x1198] sm:$0xff]  ;;  %v3949_v30 = vpack.c.bf16 %v2967_v23, %v2965_v22  ;;  %v2990_v23 = vld [vmem:[%s4719_s4 + $0x13a8] sm:$0xff] }
 0x174   : > { %338 = vst [vmem:[%s5298_s20 + $0x8] sm:$0xff] %v334_v9  ;;  %3878 = vmatpush1.bf16.msra.mxu0 %v3877_v62  ;;  %v2962_v62 = vld [vmem:[%s4719_s4 + $0x12c8] sm:$0xff]  ;;  %v2963_v9 = vld [vmem:[%s4719_s4 + $0x12d0] sm:$0xff]  ;;  %v3903_v14 = vpack.c.bf16 %v2922_v5, %v2920_v3  ;;  %v3010_v3 = vld [vmem:[%s4719_s4 + $0x1438] sm:$0xff] }
 0x175   : > { %3880 = vmatprep.subr.bf16.mxu0 %v3879_v1  ;;  %3930 = vmatpush1.bf16.msra.mxu1 %v3929_v31  ;;  %v2915_v1 = vld [vmem:[%s4719_s4 + $0x1160] sm:$0xff]  ;;  %v3943_v7 = vpack.c.bf16 %v2964_v63, %v2962_v62  ;;  %v3945_v19 = vpack.c.bf16 %v2963_v9, %v2961_v8  ;;  %v2984_v62 = vld [vmem:[%s4719_s4 + $0x1378] sm:$0xff]  ;;  %v3983_v63 = vpack.c.bf16 %v3006_v55, %v3004_v54  ;;  %v2983_v8 = vld [vmem:[%s4719_s4 + $0x1370] sm:$0xff] }
 0x176   : > { %3932 = vmatprep.subr.bf16.mxu1 %v3931_v32  ;;  %v3901_v11 = vpack.c.bf16 %v2917_v2, %v2915_v1  ;;  %v2969_v32 = vld [vmem:[%s4719_s4 + $0x1300] sm:$0xff]  ;;  %v3005_v1 = vld [vmem:[%s4719_s4 + $0x1410] sm:$0xff]  ;;  %v3008_v2 = vld [vmem:[%s4719_s4 + $0x1428] sm:$0xff] }
 0x177   : > { %v3953_v43 = vpack.c.bf16 %v2971_v33, %v2969_v32  ;;  %v2994_v33 = vld [vmem:[%s4719_s4 + $0x13c8] sm:$0xff] }
 0x178   : > { %3882 = vmatpush1.bf16.msra.mxu0 %v3881_v49  ;;  %v2968_v49 = vld [vmem:[%s4719_s4 + $0x12f8] sm:$0xff] }
 0x179   : > { %3884 = vmatprep.subr.bf16.mxu0 %v3883_v42  ;;  %3934 = vmatpush1.bf16.msra.mxu1 %v3933_v44  ;;  %v2921_v42 = vld [vmem:[%s4719_s4 + $0x1190] sm:$0xff]  ;;  %v3947_v20 = vpack.c.bf16 %v2968_v49, %v2966_v13  ;;  %v3987_v13 = vpack.c.bf16 %v3010_v3, %v3008_v2  ;;  %v3007_v49 = vld [vmem:[%s4719_s4 + $0x1420] sm:$0xff] }
 0x17a   : > { %3936 = vmatprep.subr.bf16.mxu1 %v3935_v45  ;;  %v3905_v24 = vpack.c.bf16 %v2921_v42, %v2919_v15  ;;  %v2973_v45 = vld [vmem:[%s4719_s4 + $0x1320] sm:$0xff]  ;;  %v3012_v15 = vld [vmem:[%s4719_s4 + $0x1448] sm:$0xff]  ;;  %v3014_v42 = vld [vmem:[%s4719_s4 + $0x1458] sm:$0xff] }
 0x17b   : > { %v3957_v56 = vpack.c.bf16 %v2975_v46, %v2973_v45  ;;  %v2998_v46 = vld [vmem:[%s4719_s4 + $0x13e8] sm:$0xff] }
 0x17c   : > { %3886 = vmatpush1.bf16.msra.mxu0 %v3885_v4  ;;  %v2970_v4 = vld [vmem:[%s4719_s4 + $0x1308] sm:$0xff] }
 0x17d   : > { %3888 = vmatprep.subr.bf16.mxu0 %v3887_v26  ;;  %3938 = vmatpush1.bf16.msra.mxu1 %v3937_v57  ;;  %v2923_v26 = vld [vmem:[%s4719_s4 + $0x11a0] sm:$0xff]  ;;  %v3951_v31 = vpack.c.bf16 %v2972_v10, %v2970_v4  ;;  %v3991_v4 = vpack.c.bf16 %v3014_v42, %v3012_v15  ;;  %v3034_v15 = vld [vmem:[%s4719_s4 + $0x14f8] sm:$0xff] }
 0x17e   : > { %3940 = vmatprep.subr.bf16.mxu1 %v3939_v58  ;;  %v3909_v34 = vpack.c.bf16 %v2925_v27, %v2923_v26  ;;  %v2977_v58 = vld [vmem:[%s4719_s4 + $0x1340] sm:$0xff]  ;;  %v3016_v26 = vld [vmem:[%s4719_s4 + $0x1468] sm:$0xff]  ;;  %v3018_v27 = vld [vmem:[%s4719_s4 + $0x1478] sm:$0xff] }
 0x17f   : > { %v470_v12 = vpop.f32.mrb[0].mxu1  ;;  %v3961_v5 = vpack.c.bf16 %v2979_v59, %v2977_v58  ;;  %v3011_v10 = vld [vmem:[%s4719_s4 + $0x1440] sm:$0xff]  ;;  %v3070_v59 = vld [vmem:[%s4719_s4 + $0x1608] sm:$0xff] }
 0x180   : > { %3890 = vmatpush1.bf16.msra.mxu0 %v3889_v35  ;;  %2473 = vst [vmem:[%s5298_s20 + $0x10] sm:$0xff] %v470_v12  ;;  %v472_v16 = vpop.f32.mrb[1].mxu1  ;;  %v2974_v35 = vld [vmem:[%s4719_s4 + $0x1328] sm:$0xff]  ;;  %v2988_v12 = vld [vmem:[%s4719_s4 + $0x1398] sm:$0xff] }
 0x181   : > { %3892 = vmatprep.subr.bf16.mxu0 %v3891_v38  ;;  %2474 = vst [vmem:[%s5298_s20 + $0x18] sm:$0xff] %v472_v16  ;;  %3942 = vmatpush1.bf16.msra.mxu1 %v3941_v6  ;;  %v2927_v38 = vld [vmem:[%s4719_s4 + $0x11c0] sm:$0xff]  ;;  %v3955_v44 = vpack.c.bf16 %v2976_v36, %v2974_v35  ;;  %v3995_v35 = vpack.c.bf16 %v3018_v27, %v3016_v26  ;;  %v3036_v26 = vld [vmem:[%s4719_s4 + $0x1508] sm:$0xff]  ;;  %v3038_v27 = vld [vmem:[%s4719_s4 + $0x1518] sm:$0xff] }
 0x182   : > { %3944 = vmatprep.subr.bf16.mxu1 %v3943_v7  ;;  %v3913_v47 = vpack.c.bf16 %v2929_v39, %v2927_v38  ;;  %v2981_v7 = vld [vmem:[%s4719_s4 + $0x1360] sm:$0xff]  ;;  %v3020_v38 = vld [vmem:[%s4719_s4 + $0x1488] sm:$0xff]  ;;  %v3022_v39 = vld [vmem:[%s4719_s4 + $0x1498] sm:$0xff] }
 0x183   : > { %v3965_v16 = vpack.c.bf16 %v2983_v8, %v2981_v7  ;;  %v3015_v36 = vld [vmem:[%s4719_s4 + $0x1460] sm:$0xff]  ;;  %v3074_v8 = vld [vmem:[%s4719_s4 + $0x1628] sm:$0xff] }
 0x184   : > { %3894 = vmatpush1.bf16.msra.mxu0 %v3893_v48  ;;  %v2978_v48 = vld [vmem:[%s4719_s4 + $0x1348] sm:$0xff] }
 0x185   : > { %3896 = vmatprep.subr.bf16.mxu0 %v3895_v52  ;;  %3946 = vmatpush1.bf16.msra.mxu1 %v3945_v19  ;;  %v2931_v52 = vld [vmem:[%s4719_s4 + $0x11e0] sm:$0xff]  ;;  %v3959_v57 = vpack.c.bf16 %v2980_v50, %v2978_v48  ;;  %v3999_v48 = vpack.c.bf16 %v3022_v39, %v3020_v38  ;;  %v3040_v38 = vld [vmem:[%s4719_s4 + $0x1528] sm:$0xff]  ;;  %v3042_v39 = vld [vmem:[%s4719_s4 + $0x1538] sm:$0xff] }
 0x186   : > { %3948 = vmatprep.subr.bf16.mxu1 %v3947_v20  ;;  %v3917_v60 = vpack.c.bf16 %v2933_v53, %v2931_v52  ;;  %v2985_v19 = vld [vmem:[%s4719_s4 + $0x1380] sm:$0xff]  ;;  %v2987_v20 = vld [vmem:[%s4719_s4 + $0x1390] sm:$0xff]  ;;  %v3024_v52 = vld [vmem:[%s4719_s4 + $0x14a8] sm:$0xff] }
 0x187   : > { %v3969_v28 = vpack.c.bf16 %v2987_v20, %v2985_v19  ;;  %v3019_v50 = vld [vmem:[%s4719_s4 + $0x1480] sm:$0xff]  ;;  %v3026_v53 = vld [vmem:[%s4719_s4 + $0x14b8] sm:$0xff]  ;;  %v3075_v20 = vld [vmem:[%s4719_s4 + $0x1630] sm:$0xff] }
 0x188   : > { %3898 = vmatpush1.bf16.msra.mxu0 %v3897_v61  ;;  %v2982_v61 = vld [vmem:[%s4719_s4 + $0x1368] sm:$0xff]  ;;  %v3073_v19 = vld [vmem:[%s4719_s4 + $0x1620] sm:$0xff] }
 0x189   : > { %3900 = vmatprep.subr.bf16.mxu0 %v3899_v0  ;;  %3950 = vmatpush1.bf16.msra.mxu1 %v3949_v30  ;;  %v3003_v0 = vld [vmem:[%s4719_s4 + $0x1400] sm:$0xff]  ;;  %v3963_v6 = vpack.c.bf16 %v2984_v62, %v2982_v61  ;;  %v4003_v61 = vpack.c.bf16 %v3026_v53, %v3024_v52  ;;  %v3044_v52 = vld [vmem:[%s4719_s4 + $0x1548] sm:$0xff]  ;;  %v3046_v53 = vld [vmem:[%s4719_s4 + $0x1558] sm:$0xff] }
 0x18a   : > { %3952 = vmatprep.subr.bf16.mxu1 %v3951_v31  ;;  %v3985_v9 = vpack.c.bf16 %v3005_v1, %v3003_v0  ;;  %v2989_v30 = vld [vmem:[%s4719_s4 + $0x13a0] sm:$0xff]  ;;  %v2991_v31 = vld [vmem:[%s4719_s4 + $0x13b0] sm:$0xff]  ;;  %v3028_v0 = vld [vmem:[%s4719_s4 + $0x14c8] sm:$0xff] }
 0x18b   : > { %v3973_v40 = vpack.c.bf16 %v2991_v31, %v2989_v30  ;;  %v3023_v62 = vld [vmem:[%s4719_s4 + $0x14a0] sm:$0xff]  ;;  %v3030_v1 = vld [vmem:[%s4719_s4 + $0x14d8] sm:$0xff]  ;;  %v3079_v31 = vld [vmem:[%s4719_s4 + $0x1650] sm:$0xff] }
 0x18c   : > { %3902 = vmatpush1.bf16.msra.mxu0 %v3901_v11  ;;  %v2986_v11 = vld [vmem:[%s4719_s4 + $0x1388] sm:$0xff]  ;;  %v3077_v30 = vld [vmem:[%s4719_s4 + $0x1640] sm:$0xff] }
 0x18d   : > { %3904 = vmatprep.subr.bf16.mxu0 %v3903_v14  ;;  %3954 = vmatpush1.bf16.msra.mxu1 %v3953_v43  ;;  %v3009_v14 = vld [vmem:[%s4719_s4 + $0x1430] sm:$0xff]  ;;  %v3967_v18 = vpack.c.bf16 %v2988_v12, %v2986_v11  ;;  %v2993_v43 = vld [vmem:[%s4719_s4 + $0x13c0] sm:$0xff]  ;;  %v4007_v11 = vpack.c.bf16 %v3030_v1, %v3028_v0  ;;  %v3048_v0 = vld [vmem:[%s4719_s4 + $0x1568] sm:$0xff] }
 0x18e   : > { %3956 = vmatprep.subr.bf16.mxu1 %v3955_v44  ;;  %v3989_v22 = vpack.c.bf16 %v3009_v14, %v3007_v49  ;;  %v2995_v44 = vld [vmem:[%s4719_s4 + $0x13d0] sm:$0xff]  ;;  %v3027_v12 = vld [vmem:[%s4719_s4 + $0x14c0] sm:$0xff]  ;;  %v3032_v14 = vld [vmem:[%s4719_s4 + $0x14e8] sm:$0xff] }
 0x18f   : > { %v3977_v54 = vpack.c.bf16 %v2995_v44, %v2993_v43  ;;  %v3081_v43 = vld [vmem:[%s4719_s4 + $0x1660] sm:$0xff]  ;;  %v3083_v44 = vld [vmem:[%s4719_s4 + $0x1670] sm:$0xff]  ;;  %v3050_v1 = vld [vmem:[%s4719_s4 + $0x1578] sm:$0xff] }
 0x190   : > { %3906 = vmatpush1.bf16.msra.mxu0 %v3905_v24  ;;  %v2992_v24 = vld [vmem:[%s4719_s4 + $0x13b8] sm:$0xff] }
 0x191   : > { %3908 = vmatprep.subr.bf16.mxu0 %v3907_v25  ;;  %3958 = vmatpush1.bf16.msra.mxu1 %v3957_v56  ;;  %v3013_v25 = vld [vmem:[%s4719_s4 + $0x1450] sm:$0xff]  ;;  %v3971_v29 = vpack.c.bf16 %v2992_v24, %v2990_v23  ;;  %v2997_v56 = vld [vmem:[%s4719_s4 + $0x13e0] sm:$0xff]  ;;  %v3078_v23 = vld [vmem:[%s4719_s4 + $0x1648] sm:$0xff] }
 0x192   : > { %3960 = vmatprep.subr.bf16.mxu1 %v3959_v57  ;;  %v3993_v32 = vpack.c.bf16 %v3013_v25, %v3011_v10  ;;  %v2999_v57 = vld [vmem:[%s4719_s4 + $0x13f0] sm:$0xff]  ;;  %v3080_v24 = vld [vmem:[%s4719_s4 + $0x1658] sm:$0xff]  ;;  %v3031_v10 = vld [vmem:[%s4719_s4 + $0x14e0] sm:$0xff] }
 0x193   : > { %v3981_v2 = vpack.c.bf16 %v2999_v57, %v2997_v56  ;;  %v3033_v25 = vld [vmem:[%s4719_s4 + $0x14f0] sm:$0xff]  ;;  %v3085_v56 = vld [vmem:[%s4719_s4 + $0x1680] sm:$0xff] }
 0x194   : > { %3910 = vmatpush1.bf16.msra.mxu0 %v3909_v34  ;;  %v2996_v34 = vld [vmem:[%s4719_s4 + $0x13d8] sm:$0xff]  ;;  %v3087_v57 = vld [vmem:[%s4719_s4 + $0x1690] sm:$0xff] }
 0x195   : > { %3912 = vmatprep.subr.bf16.mxu0 %v3911_v37  ;;  %3962 = vmatpush1.bf16.msra.mxu1 %v3961_v5  ;;  %v3017_v37 = vld [vmem:[%s4719_s4 + $0x1470] sm:$0xff]  ;;  %v3975_v41 = vpack.c.bf16 %v2996_v34, %v2994_v33  ;;  %v3069_v5 = vld [vmem:[%s4719_s4 + $0x1600] sm:$0xff]  ;;  %v3082_v33 = vld [vmem:[%s4719_s4 + $0x1668] sm:$0xff] }
 0x196   : > { %3964 = vmatprep.subr.bf16.mxu1 %v3963_v6  ;;  %v3997_v45 = vpack.c.bf16 %v3017_v37, %v3015_v36  ;;  %v3071_v6 = vld [vmem:[%s4719_s4 + $0x1610] sm:$0xff]  ;;  %v3084_v34 = vld [vmem:[%s4719_s4 + $0x1678] sm:$0xff]  ;;  %v3035_v36 = vld [vmem:[%s4719_s4 + $0x1500] sm:$0xff] }
 0x197   : > { %v4049_v42 = vpack.c.bf16 %v3071_v6, %v3069_v5  ;;  %v3037_v37 = vld [vmem:[%s4719_s4 + $0x1510] sm:$0xff]  ;;  %v3089_v5 = vld [vmem:[%s4719_s4 + $0x16a0] sm:$0xff] }
 0x198   : > { %3914 = vmatpush1.bf16.msra.mxu0 %v3913_v47  ;;  %v3000_v47 = vld [vmem:[%s4719_s4 + $0x13f8] sm:$0xff]  ;;  %v3091_v6 = vld [vmem:[%s4719_s4 + $0x16b0] sm:$0xff] }
 0x199   : > { %3916 = vmatprep.subr.bf16.mxu0 %v3915_v51  ;;  %3966 = vmatpush1.bf16.msra.mxu1 %v3965_v16  ;;  %v3021_v51 = vld [vmem:[%s4719_s4 + $0x1490] sm:$0xff]  ;;  %v3979_v55 = vpack.c.bf16 %v3000_v47, %v2998_v46  ;;  %v3086_v46 = vld [vmem:[%s4719_s4 + $0x1688] sm:$0xff]  ;;  %v3088_v47 = vld [vmem:[%s4719_s4 + $0x1698] sm:$0xff] }
 0x19a   : > { %3968 = vmatprep.subr.bf16.mxu1 %v3967_v18  ;;  %v4001_v58 = vpack.c.bf16 %v3021_v51, %v3019_v50  ;;  %v3039_v50 = vld [vmem:[%s4719_s4 + $0x1520] sm:$0xff]  ;;  %v3041_v51 = vld [vmem:[%s4719_s4 + $0x1530] sm:$0xff] }
 0x19c   : > { %3918 = vmatpush1.bf16.msra.mxu0 %v3917_v60  ;;  %v3072_v60 = vld [vmem:[%s4719_s4 + $0x1618] sm:$0xff] }
 0x19d   : > { %3984 = vmatprep.subr.bf16.mxu0 %v3983_v63  ;;  %3970 = vmatpush1.bf16.msra.mxu1 %v3969_v28  ;;  %v3025_v63 = vld [vmem:[%s4719_s4 + $0x14b0] sm:$0xff]  ;;  %v4047_v3 = vpack.c.bf16 %v3072_v60, %v3070_v59  ;;  %v4053_v28 = vpack.c.bf16 %v3075_v20, %v3073_v19  ;;  %v3090_v59 = vld [vmem:[%s4719_s4 + $0x16a8] sm:$0xff]  ;;  %v3092_v60 = vld [vmem:[%s4719_s4 + $0x16b8] sm:$0xff] }
 0x19e   : > { %3972 = vmatprep.subr.bf16.mxu1 %v3971_v29  ;;  %v4005_v7 = vpack.c.bf16 %v3025_v63, %v3023_v62  ;;  %v4055_v29 = vpack.c.bf16 %v3080_v24, %v3078_v23  ;;  %v3043_v62 = vld [vmem:[%s4719_s4 + $0x1540] sm:$0xff]  ;;  %v3045_v63 = vld [vmem:[%s4719_s4 + $0x1550] sm:$0xff]  ;;  %v3100_v23 = vld [vmem:[%s4719_s4 + $0x16f8] sm:$0xff] }
 0x19f   : > { %1442 = vmatmul.mubr.f32.vlgmr.msra.gmra.mrb[8].mxu0 %v5396_v17 }
 0x1a0   : > { %3986 = vmatpush1.bf16.msra.mxu0 %v3985_v9  ;;  %1719 = vmatprep.mubr.f32.mxu0 %v5311_v21  ;;  %v3076_v9 = vld [vmem:[%s4719_s4 + $0x1638] sm:$0xff] }
 0x1a1   : > { %3988 = vmatprep.subr.bf16.mxu0 %v3987_v13  ;;  %3974 = vmatpush1.bf16.msra.mxu1 %v3973_v40  ;;  %v3029_v13 = vld [vmem:[%s4719_s4 + $0x14d0] sm:$0xff]  ;;  %v4051_v18 = vpack.c.bf16 %v3076_v9, %v3074_v8  ;;  %v4057_v40 = vpack.c.bf16 %v3079_v31, %v3077_v30  ;;  %v3094_v8 = vld [vmem:[%s4719_s4 + $0x16c8] sm:$0xff]  ;;  %v3096_v9 = vld [vmem:[%s4719_s4 + $0x16d8] sm:$0xff] }
 0x1a2   : > { %3976 = vmatprep.subr.bf16.mxu1 %v3975_v41  ;;  %v4059_v41 = vpack.c.bf16 %v3084_v34, %v3082_v33  ;;  %v3097_v30 = vld [vmem:[%s4719_s4 + $0x16e0] sm:$0xff]  ;;  %v3099_v31 = vld [vmem:[%s4719_s4 + $0x16f0] sm:$0xff]  ;;  %v3102_v33 = vld [vmem:[%s4719_s4 + $0x1708] sm:$0xff] }
 0x1a3   : > { %v3104_v34 = vld [vmem:[%s4719_s4 + $0x1718] sm:$0xff] }
 0x1a4   : > { %3990 = vmatpush1.bf16.msra.mxu0 %v3989_v22  ;;  %v4009_v22 = vpack.c.bf16 %v3029_v13, %v3027_v12  ;;  %v3047_v12 = vld [vmem:[%s4719_s4 + $0x1560] sm:$0xff]  ;;  %v3049_v13 = vld [vmem:[%s4719_s4 + $0x1570] sm:$0xff] }
 0x1a5   : > { %3992 = vmatprep.subr.bf16.mxu0 %v3991_v4  ;;  %3978 = vmatpush1.bf16.msra.mxu1 %v3977_v54  ;;  %v4011_v4 = vpack.c.bf16 %v3034_v15, %v3032_v14  ;;  %v4061_v54 = vpack.c.bf16 %v3083_v44, %v3081_v43  ;;  %v3054_v14 = vld [vmem:[%s4719_s4 + $0x1598] sm:$0xff]  ;;  %v4069_v15 = vpack.c.bf16 %v3091_v6, %v3089_v5  ;;  %v3101_v43 = vld [vmem:[%s4719_s4 + $0x1700] sm:$0xff]  ;;  %v3103_v44 = vld [vmem:[%s4719_s4 + $0x1710] sm:$0xff] }
 0x1a6   : > { %3980 = vmatprep.subr.bf16.mxu1 %v3979_v55  ;;  %v4063_v55 = vpack.c.bf16 %v3088_v47, %v3086_v46  ;;  %v4029_v19 = vpack.c.bf16 %v3049_v13, %v3047_v12  ;;  %v3106_v46 = vld [vmem:[%s4719_s4 + $0x1728] sm:$0xff]  ;;  %v3108_v47 = vld [vmem:[%s4719_s4 + $0x1738] sm:$0xff]  ;;  %v3109_v5 = vld [vmem:[%s4719_s4 + $0x1740] sm:$0xff] }
 0x1a7   : > { %v3111_v6 = vld [vmem:[%s4719_s4 + $0x1750] sm:$0xff]  ;;  %v3135_v12 = vld [vmem:[%s4719_s4 + $0x1800] sm:$0xff] }
 0x1a8   : > { %3994 = vmatpush1.bf16.msra.mxu0 %v3993_v32  ;;  %v4013_v32 = vpack.c.bf16 %v3033_v25, %v3031_v10  ;;  %v3053_v10 = vld [vmem:[%s4719_s4 + $0x1590] sm:$0xff] }
 0x1a9   : > { %3996 = vmatprep.subr.bf16.mxu0 %v3995_v35  ;;  %3982 = vmatpush1.bf16.msra.mxu1 %v3981_v2  ;;  %v4015_v35 = vpack.c.bf16 %v3038_v27, %v3036_v26  ;;  %v4065_v2 = vpack.c.bf16 %v3087_v57, %v3085_v56  ;;  %v3056_v26 = vld [vmem:[%s4719_s4 + $0x15a8] sm:$0xff]  ;;  %v3058_v27 = vld [vmem:[%s4719_s4 + $0x15b8] sm:$0xff]  ;;  %v3105_v56 = vld [vmem:[%s4719_s4 + $0x1720] sm:$0xff] }
 0x1aa   : > { %4048 = vmatprep.subr.bf16.mxu1 %v4047_v3  ;;  %v4067_v3 = vpack.c.bf16 %v3092_v60, %v3090_v59  ;;  %v3107_v57 = vld [vmem:[%s4719_s4 + $0x1730] sm:$0xff]  ;;  %v3110_v59 = vld [vmem:[%s4719_s4 + $0x1748] sm:$0xff]  ;;  %v3112_v60 = vld [vmem:[%s4719_s4 + $0x1758] sm:$0xff] }
 0x1ab   : > { %v3137_v13 = vld [vmem:[%s4719_s4 + $0x1810] sm:$0xff] }
 0x1ac   : > { %3998 = vmatpush1.bf16.msra.mxu0 %v3997_v45  ;;  %1581 = vmatmul.mubr.f32.vlgmr.msra.gmra.mrb[8].mxu1 %v5396_v17  ;;  %v4017_v45 = vpack.c.bf16 %v3037_v37, %v3035_v36  ;;  %v3055_v36 = vld [vmem:[%s4719_s4 + $0x15a0] sm:$0xff]  ;;  %v3057_v37 = vld [vmem:[%s4719_s4 + $0x15b0] sm:$0xff] }
 0x1ad   : > { %4000 = vmatprep.subr.bf16.mxu0 %v3999_v48  ;;  %4050 = vmatpush1.bf16.msra.mxu1 %v4049_v42  ;;  %v4019_v48 = vpack.c.bf16 %v3042_v39, %v3040_v38  ;;  %v4071_v42 = vpack.c.bf16 %v3096_v9, %v3094_v8  ;;  %v3060_v38 = vld [vmem:[%s4719_s4 + $0x15c8] sm:$0xff]  ;;  %v3062_v39 = vld [vmem:[%s4719_s4 + $0x15d8] sm:$0xff] }
 0x1ae   : > { %1858 = vmatprep.mubr.f32.mxu1 %v5311_v21  ;;  %4052 = vmatprep.subr.bf16.mxu1 %v4051_v18  ;;  %v3095_v18 = vld [vmem:[%s4719_s4 + $0x16d0] sm:$0xff]  ;;  %v3114_v8 = vld [vmem:[%s4719_s4 + $0x1768] sm:$0xff]  ;;  %v3116_v9 = vld [vmem:[%s4719_s4 + $0x1778] sm:$0xff] }
 0x1b0   : > { %4002 = vmatpush1.bf16.msra.mxu0 %v4001_v58  ;;  %v4021_v58 = vpack.c.bf16 %v3041_v51, %v3039_v50  ;;  %v3059_v50 = vld [vmem:[%s4719_s4 + $0x15c0] sm:$0xff]  ;;  %v3061_v51 = vld [vmem:[%s4719_s4 + $0x15d0] sm:$0xff] }
 0x1b1   : > { %4004 = vmatprep.subr.bf16.mxu0 %v4003_v61  ;;  %4054 = vmatpush1.bf16.msra.mxu1 %v4053_v28  ;;  %v4023_v61 = vpack.c.bf16 %v3046_v53, %v3044_v52  ;;  %v3064_v52 = vld [vmem:[%s4719_s4 + $0x15e8] sm:$0xff]  ;;  %v3066_v53 = vld [vmem:[%s4719_s4 + $0x15f8] sm:$0xff] }
 0x1b2   : > { %v609_v49 = vpop.f32.mrb[2].mxu0  ;;  %4056 = vmatprep.subr.bf16.mxu1 %v4055_v29 }
 0x1b3   : > { %2539 = vst [vmem:[%s5298_s20 + $0x20] sm:$0xff] %v609_v49  ;;  %v611_v16 = vpop.f32.mrb[3].mxu0  ;;  %v3052_v49 = vld [vmem:[%s4719_s4 + $0x1588] sm:$0xff] }
 0x1b4   : > { %2540 = vst [vmem:[%s5298_s20 + $0x28] sm:$0xff] %v611_v16  ;;  %4006 = vmatpush1.bf16.msra.mxu0 %v4005_v7  ;;  %v4025_v7 = vpack.c.bf16 %v3045_v63, %v3043_v62  ;;  %v3093_v16 = vld [vmem:[%s4719_s4 + $0x16c0] sm:$0xff]  ;;  %v4031_v24 = vpack.c.bf16 %v3054_v14, %v3052_v49  ;;  %v3065_v63 = vld [vmem:[%s4719_s4 + $0x15f0] sm:$0xff]  ;;  %v3140_v49 = vld [vmem:[%s4719_s4 + $0x1828] sm:$0xff] }
 0x1b5   : > { %4008 = vmatprep.subr.bf16.mxu0 %v4007_v11  ;;  %4058 = vmatpush1.bf16.msra.mxu1 %v4057_v40  ;;  %v4027_v11 = vpack.c.bf16 %v3050_v1, %v3048_v0  ;;  %v4073_v28 = vpack.c.bf16 %v3095_v18, %v3093_v16  ;;  %v4077_v40 = vpack.c.bf16 %v3099_v31, %v3097_v30  ;;  %v3063_v62 = vld [vmem:[%s4719_s4 + $0x15e0] sm:$0xff]  ;;  %v3136_v0 = vld [vmem:[%s4719_s4 + $0x1808] sm:$0xff]  ;;  %v3138_v1 = vld [vmem:[%s4719_s4 + $0x1818] sm:$0xff] }
 0x1b6   : > { %4060 = vmatprep.subr.bf16.mxu1 %v4059_v41  ;;  %v4079_v41 = vpack.c.bf16 %v3104_v34, %v3102_v33  ;;  %v3142_v14 = vld [vmem:[%s4719_s4 + $0x1838] sm:$0xff]  ;;  %v3113_v16 = vld [vmem:[%s4719_s4 + $0x1760] sm:$0xff]  ;;  %v3115_v18 = vld [vmem:[%s4719_s4 + $0x1770] sm:$0xff] }
 0x1b7   : > { %v3122_v31 = vld [vmem:[%s4719_s4 + $0x17a8] sm:$0xff]  ;;  %v3143_v34 = vld [vmem:[%s4719_s4 + $0x1840] sm:$0xff] }
 0x1b8   : > { %4010 = vmatpush1.bf16.msra.mxu0 %v4009_v22  ;;  %v3098_v22 = vld [vmem:[%s4719_s4 + $0x16e8] sm:$0xff] }
 0x1b9   : > { %4012 = vmatprep.subr.bf16.mxu0 %v4011_v4  ;;  %4062 = vmatpush1.bf16.msra.mxu1 %v4061_v54  ;;  %v3051_v4 = vld [vmem:[%s4719_s4 + $0x1580] sm:$0xff]  ;;  %v4075_v29 = vpack.c.bf16 %v3100_v23, %v3098_v22  ;;  %v4081_v54 = vpack.c.bf16 %v3103_v44, %v3101_v43  ;;  %v3120_v22 = vld [vmem:[%s4719_s4 + $0x1798] sm:$0xff]  ;;  %v4115_v23 = vpack.c.bf16 %v3142_v14, %v3140_v49  ;;  %v3126_v43 = vld [vmem:[%s4719_s4 + $0x17c8] sm:$0xff] }
 0x1ba   : > { %4064 = vmatprep.subr.bf16.mxu1 %v4063_v55  ;;  %v4083_v55 = vpack.c.bf16 %v3108_v47, %v3106_v46  ;;  %v3128_v44 = vld [vmem:[%s4719_s4 + $0x17d8] sm:$0xff]  ;;  %v3147_v46 = vld [vmem:[%s4719_s4 + $0x1860] sm:$0xff]  ;;  %v3149_v47 = vld [vmem:[%s4719_s4 + $0x1870] sm:$0xff] }
 0x1bb   : > { %v3201_v14 = vld [vmem:[%s4719_s4 + $0x1a00] sm:$0xff] }
 0x1bc   : > { %4014 = vmatpush1.bf16.msra.mxu0 %v4013_v32  ;;  %v4033_v32 = vpack.c.bf16 %v3053_v10, %v3051_v4  ;;  %v3141_v4 = vld [vmem:[%s4719_s4 + $0x1830] sm:$0xff]  ;;  %v3144_v10 = vld [vmem:[%s4719_s4 + $0x1848] sm:$0xff] }
 0x1bd   : > { %4016 = vmatprep.subr.bf16.mxu0 %v4015_v35  ;;  %4066 = vmatpush1.bf16.msra.mxu1 %v4065_v2  ;;  %v4035_v35 = vpack.c.bf16 %v3058_v27, %v3056_v26  ;;  %v4085_v2 = vpack.c.bf16 %v3107_v57, %v3105_v56  ;;  %v4093_v26 = vpack.c.bf16 %v3115_v18, %v3113_v16  ;;  %v3130_v56 = vld [vmem:[%s4719_s4 + $0x17e8] sm:$0xff]  ;;  %v3132_v57 = vld [vmem:[%s4719_s4 + $0x17f8] sm:$0xff] }
 0x1be   : > { %4068 = vmatprep.subr.bf16.mxu1 %v4067_v3  ;;  %v4087_v3 = vpack.c.bf16 %v3112_v60, %v3110_v59  ;;  %v3151_v59 = vld [vmem:[%s4719_s4 + $0x1880] sm:$0xff]  ;;  %v3153_v60 = vld [vmem:[%s4719_s4 + $0x1890] sm:$0xff]  ;;  %v3206_v16 = vld [vmem:[%s4719_s4 + $0x1a28] sm:$0xff] }
 0x1bf   : > { %v748_v20 = vpop.f32.mrb[2].mxu1  ;;  %v3208_v18 = vld [vmem:[%s4719_s4 + $0x1a38] sm:$0xff] }
 0x1c0   : > { %4018 = vmatpush1.bf16.msra.mxu0 %v4017_v45  ;;  %2605 = vst [vmem:[%s5298_s20 + $0x30] sm:$0xff] %v748_v20  ;;  %v750_v25 = vpop.f32.mrb[3].mxu1  ;;  %v4037_v45 = vpack.c.bf16 %v3057_v37, %v3055_v36  ;;  %v3118_v20 = vld [vmem:[%s4719_s4 + $0x1788] sm:$0xff]  ;;  %v3150_v37 = vld [vmem:[%s4719_s4 + $0x1878] sm:$0xff] }
 0x1c1   : > { %4020 = vmatprep.subr.bf16.mxu0 %v4019_v48  ;;  %2606 = vst [vmem:[%s5298_s20 + $0x38] sm:$0xff] %v750_v25  ;;  %4070 = vmatpush1.bf16.msra.mxu1 %v4069_v15  ;;  %v4039_v48 = vpack.c.bf16 %v3062_v39, %v3060_v38  ;;  %v4089_v15 = vpack.c.bf16 %v3111_v6, %v3109_v5  ;;  %v3146_v25 = vld [vmem:[%s4719_s4 + $0x1858] sm:$0xff]  ;;  %v3148_v36 = vld [vmem:[%s4719_s4 + $0x1868] sm:$0xff] }
 0x1c2   : > { %4072 = vmatprep.subr.bf16.mxu1 %v4071_v42  ;;  %v4091_v42 = vpack.c.bf16 %v3116_v9, %v3114_v8  ;;  %v4095_v27 = vpack.c.bf16 %v3120_v22, %v3118_v20  ;;  %v4119_v33 = vpack.c.bf16 %v3146_v25, %v3144_v10  ;;  %v3202_v5 = vld [vmem:[%s4719_s4 + $0x1a08] sm:$0xff]  ;;  %v3204_v6 = vld [vmem:[%s4719_s4 + $0x1a18] sm:$0xff]  ;;  %v3155_v8 = vld [vmem:[%s4719_s4 + $0x18a0] sm:$0xff] }
 0x1c3   : > { %v3157_v9 = vld [vmem:[%s4719_s4 + $0x18b0] sm:$0xff]  ;;  %v4175_v49 = vpack.c.bf16 %v3204_v6, %v3202_v5  ;;  %v3159_v20 = vld [vmem:[%s4719_s4 + $0x18c0] sm:$0xff]  ;;  %v3224_v5 = vld [vmem:[%s4719_s4 + $0x1ab8] sm:$0xff] }
 0x1c4   : > { %4022 = vmatpush1.bf16.msra.mxu0 %v4021_v58  ;;  %v4041_v58 = vpack.c.bf16 %v3061_v51, %v3059_v50  ;;  %v3154_v50 = vld [vmem:[%s4719_s4 + $0x1898] sm:$0xff]  ;;  %v3161_v22 = vld [vmem:[%s4719_s4 + $0x18d0] sm:$0xff] }
 0x1c5   : > { %4024 = vmatprep.subr.bf16.mxu0 %v4023_v61  ;;  %4074 = vmatpush1.bf16.msra.mxu1 %v4073_v28  ;;  %v4043_v61 = vpack.c.bf16 %v3066_v53, %v3064_v52  ;;  %v3117_v28 = vld [vmem:[%s4719_s4 + $0x1780] sm:$0xff]  ;;  %v4103_v52 = vpack.c.bf16 %v3128_v44, %v3126_v43  ;;  %v3216_v43 = vld [vmem:[%s4719_s4 + $0x1a78] sm:$0xff] }
 0x1c6   : > { %4076 = vmatprep.subr.bf16.mxu1 %v4075_v29  ;;  %v3119_v29 = vld [vmem:[%s4719_s4 + $0x1790] sm:$0xff]  ;;  %v3125_v53 = vld [vmem:[%s4719_s4 + $0x17c0] sm:$0xff] }
 0x1c7   : > { %v4097_v38 = vpack.c.bf16 %v3119_v29, %v3117_v28  ;;  %v3207_v28 = vld [vmem:[%s4719_s4 + $0x1a30] sm:$0xff]  ;;  %v4137_v29 = vpack.c.bf16 %v3161_v22, %v3159_v20  ;;  %v3184_v22 = vld [vmem:[%s4719_s4 + $0x1988] sm:$0xff] }
 0x1c8   : > { %4026 = vmatpush1.bf16.msra.mxu0 %v4025_v7  ;;  %v4045_v7 = vpack.c.bf16 %v3065_v63, %v3063_v62  ;;  %v3158_v62 = vld [vmem:[%s4719_s4 + $0x18b8] sm:$0xff]  ;;  %v3181_v20 = vld [vmem:[%s4719_s4 + $0x1970] sm:$0xff] }
 0x1c9   : > { %4028 = vmatprep.subr.bf16.mxu0 %v4027_v11  ;;  %4078 = vmatpush1.bf16.msra.mxu1 %v4077_v40  ;;  %v4111_v11 = vpack.c.bf16 %v3138_v1, %v3136_v0  ;;  %v3121_v40 = vld [vmem:[%s4719_s4 + $0x17a0] sm:$0xff]  ;;  %v4107_v0 = vpack.c.bf16 %v3132_v57, %v3130_v56  ;;  %v3220_v56 = vld [vmem:[%s4719_s4 + $0x1a98] sm:$0xff] }
 0x1ca   : > { %4080 = vmatprep.subr.bf16.mxu1 %v4079_v41  ;;  %v3123_v41 = vld [vmem:[%s4719_s4 + $0x17b0] sm:$0xff]  ;;  %v3129_v1 = vld [vmem:[%s4719_s4 + $0x17e0] sm:$0xff] }
 0x1cb   : > { %v4101_v51 = vpack.c.bf16 %v3123_v41, %v3121_v40  ;;  %v3209_v40 = vld [vmem:[%s4719_s4 + $0x1a40] sm:$0xff]  ;;  %v3211_v41 = vld [vmem:[%s4719_s4 + $0x1a50] sm:$0xff] }
 0x1cc   : > { %4030 = vmatpush1.bf16.msra.mxu0 %v4029_v19  ;;  %v4113_v19 = vpack.c.bf16 %v3137_v13, %v3135_v12  ;;  %v3162_v12 = vld [vmem:[%s4719_s4 + $0x18d8] sm:$0xff] }
 0x1cd   : > { %4032 = vmatprep.subr.bf16.mxu0 %v4031_v24  ;;  %4082 = vmatpush1.bf16.msra.mxu1 %v4081_v54  ;;  %v3139_v24 = vld [vmem:[%s4719_s4 + $0x1820] sm:$0xff]  ;;  %v3127_v54 = vld [vmem:[%s4719_s4 + $0x17d0] sm:$0xff] }
 0x1ce   : > { %4084 = vmatprep.subr.bf16.mxu1 %v4083_v55  ;;  %v4117_v30 = vpack.c.bf16 %v3141_v4, %v3139_v24  ;;  %v4125_v55 = vpack.c.bf16 %v3149_v47, %v3147_v46  ;;  %v4105_v63 = vpack.c.bf16 %v3127_v54, %v3125_v53  ;;  %v3164_v24 = vld [vmem:[%s4719_s4 + $0x18e8] sm:$0xff]  ;;  %v3166_v4 = vld [vmem:[%s4719_s4 + $0x18f8] sm:$0xff]  ;;  %v3169_v46 = vld [vmem:[%s4719_s4 + $0x1910] sm:$0xff] }
 0x1cf   : > { %v3172_v47 = vld [vmem:[%s4719_s4 + $0x1928] sm:$0xff]  ;;  %v3215_v53 = vld [vmem:[%s4719_s4 + $0x1a70] sm:$0xff] }
 0x1d0   : > { %4034 = vmatpush1.bf16.msra.mxu0 %v4033_v32  ;;  %v3124_v32 = vld [vmem:[%s4719_s4 + $0x17b8] sm:$0xff] }
 0x1d1   : > { %4036 = vmatprep.subr.bf16.mxu0 %v4035_v35  ;;  %4086 = vmatpush1.bf16.msra.mxu1 %v4085_v2  ;;  %v3145_v35 = vld [vmem:[%s4719_s4 + $0x1850] sm:$0xff]  ;;  %v4099_v39 = vpack.c.bf16 %v3124_v32, %v3122_v31  ;;  %v3212_v31 = vld [vmem:[%s4719_s4 + $0x1a58] sm:$0xff]  ;;  %v4139_v32 = vpack.c.bf16 %v3166_v4, %v3164_v24 }
 0x1d2   : > { %4088 = vmatprep.subr.bf16.mxu1 %v4087_v3  ;;  %v3131_v2 = vld [vmem:[%s4719_s4 + $0x17f0] sm:$0xff]  ;;  %v4129_v3 = vpack.c.bf16 %v3153_v60, %v3151_v59  ;;  %v3176_v60 = vld [vmem:[%s4719_s4 + $0x1948] sm:$0xff] }
 0x1d3   : > { %v4109_v13 = vpack.c.bf16 %v3131_v2, %v3129_v1  ;;  %v3173_v59 = vld [vmem:[%s4719_s4 + $0x1930] sm:$0xff] }
 0x1d4   : > { %4038 = vmatpush1.bf16.msra.mxu0 %v4037_v45  ;;  %v4123_v45 = vpack.c.bf16 %v3150_v37, %v3148_v36  ;;  %v3170_v36 = vld [vmem:[%s4719_s4 + $0x1918] sm:$0xff]  ;;  %v3219_v1 = vld [vmem:[%s4719_s4 + $0x1a90] sm:$0xff] }
 0x1d5   : > { %4040 = vmatprep.subr.bf16.mxu0 %v4039_v48  ;;  %4090 = vmatpush1.bf16.msra.mxu1 %v4089_v15  ;;  %v3152_v48 = vld [vmem:[%s4719_s4 + $0x1888] sm:$0xff]  ;;  %v3203_v15 = vld [vmem:[%s4719_s4 + $0x1a10] sm:$0xff] }
 0x1d6   : > { %4092 = vmatprep.subr.bf16.mxu1 %v4091_v42  ;;  %v4133_v42 = vpack.c.bf16 %v3157_v9, %v3155_v8  ;;  %v4177_v10 = vpack.c.bf16 %v3203_v15, %v3201_v14  ;;  %v3177_v8 = vld [vmem:[%s4719_s4 + $0x1950] sm:$0xff]  ;;  %v3180_v9 = vld [vmem:[%s4719_s4 + $0x1968] sm:$0xff] }
 0x1d7   : > { %v3223_v14 = vld [vmem:[%s4719_s4 + $0x1ab0] sm:$0xff] }
 0x1d8   : > { %4042 = vmatpush1.bf16.msra.mxu0 %v4041_v58  ;;  %v4127_v58 = vpack.c.bf16 %v3154_v50, %v3152_v48  ;;  %v3174_v48 = vld [vmem:[%s4719_s4 + $0x1938] sm:$0xff]  ;;  %v4185_v50 = vpack.c.bf16 %v3211_v41, %v3209_v40  ;;  %v3231_v40 = vld [vmem:[%s4719_s4 + $0x1af0] sm:$0xff] }
 0x1d9   : > { %4044 = vmatprep.subr.bf16.mxu0 %v4043_v61  ;;  %4094 = vmatpush1.bf16.msra.mxu1 %v4093_v26  ;;  %v3156_v61 = vld [vmem:[%s4719_s4 + $0x18a8] sm:$0xff]  ;;  %v4179_v26 = vpack.c.bf16 %v3208_v18, %v3206_v16  ;;  %v4147_v57 = vpack.c.bf16 %v3174_v48, %v3172_v47  ;;  %v3228_v16 = vld [vmem:[%s4719_s4 + $0x1ad8] sm:$0xff] }
 0x1da   : > { %4096 = vmatprep.subr.bf16.mxu1 %v4095_v27  ;;  %v3205_v27 = vld [vmem:[%s4719_s4 + $0x1a20] sm:$0xff]  ;;  %v3194_v47 = vld [vmem:[%s4719_s4 + $0x19d8] sm:$0xff] }
 0x1db   : > { %v4181_v37 = vpack.c.bf16 %v3207_v28, %v3205_v27  ;;  %v3230_v28 = vld [vmem:[%s4719_s4 + $0x1ae8] sm:$0xff] }
 0x1dc   : > { %4046 = vmatpush1.bf16.msra.mxu0 %v4045_v7  ;;  %v4131_v7 = vpack.c.bf16 %v3158_v62, %v3156_v61  ;;  %v3178_v61 = vld [vmem:[%s4719_s4 + $0x1958] sm:$0xff] }
 0x1dd   : > { %4112 = vmatprep.subr.bf16.mxu0 %v4111_v11  ;;  %4098 = vmatpush1.bf16.msra.mxu1 %v4097_v38  ;;  %v3160_v11 = vld [vmem:[%s4719_s4 + $0x18c8] sm:$0xff]  ;;  %v5587_v38 = vld [vmem:[#allocation2 + $0x8] sm:$0xff]  ;;  %v4151_v6 = vpack.c.bf16 %v3178_v61, %v3176_v60 }
 0x1de   : > { %4100 = vmatprep.subr.bf16.mxu1 %v4099_v39  ;;  %v3198_v60 = vld [vmem:[%s4719_s4 + $0x19f8] sm:$0xff] }
 0x1df   : > { %1720 = vmatmul.mubr.f32.vlgmr.msra.gmra.mrb[10].mxu0 %v5396_v17 }
 0x1e0   : > { %4114 = vmatpush1.bf16.msra.mxu0 %v4113_v19  ;;  %1997 = vmatprep.mubr.f32.mxu0 %v5311_v21  ;;  %v4121_v21 = vpack.c.bf16 %v3145_v35, %v3143_v34  ;;  %v4135_v19 = vpack.c.bf16 %v3162_v12, %v3160_v11  ;;  %v3165_v34 = vld [vmem:[%s4719_s4 + $0x18f0] sm:$0xff]  ;;  %v3168_v35 = vld [vmem:[%s4719_s4 + $0x1908] sm:$0xff]  ;;  %v3182_v11 = vld [vmem:[%s4719_s4 + $0x1978] sm:$0xff] }
 0x1e1   : > { %4116 = vmatprep.subr.bf16.mxu0 %v4115_v23  ;;  %4102 = vmatpush1.bf16.msra.mxu1 %v4101_v51  ;;  %v4143_v44 = vpack.c.bf16 %v3170_v36, %v3168_v35  ;;  %v4155_v18 = vpack.c.bf16 %v3182_v11, %v3180_v9  ;;  %v3190_v35 = vld [vmem:[%s4719_s4 + $0x19b8] sm:$0xff] }
 0x1e2   : > { %4104 = vmatprep.subr.bf16.mxu1 %v4103_v52  ;;  %v3213_v52 = vld [vmem:[%s4719_s4 + $0x1a60] sm:$0xff]  ;;  %v3270_v9 = vld [vmem:[%s4719_s4 + $0x1c18] sm:$0xff] }
 0x1e3   : > { %v4189_v62 = vpack.c.bf16 %v3215_v53, %v3213_v52  ;;  %v3235_v52 = vld [vmem:[%s4719_s4 + $0x1b10] sm:$0xff] }
 0x1e4   : > { %4118 = vmatpush1.bf16.msra.mxu0 %v4117_v30  ;;  %v3210_v30 = vld [vmem:[%s4719_s4 + $0x1a48] sm:$0xff] }
 0x1e5   : > { %4120 = vmatprep.subr.bf16.mxu0 %v4119_v33  ;;  %4106 = vmatpush1.bf16.msra.mxu1 %v4105_v63  ;;  %v3163_v33 = vld [vmem:[%s4719_s4 + $0x18e0] sm:$0xff]  ;;  %v4183_v39 = vpack.c.bf16 %v3212_v31, %v3210_v30 }
 0x1e6   : > { %4108 = vmatprep.subr.bf16.mxu1 %v4107_v0  ;;  %v3217_v0 = vld [vmem:[%s4719_s4 + $0x1a80] sm:$0xff] }
 0x1e7   : > { %v4193_v12 = vpack.c.bf16 %v3219_v1, %v3217_v0  ;;  %v3183_v31 = vld [vmem:[%s4719_s4 + $0x1980] sm:$0xff]  ;;  %v3239_v0 = vld [vmem:[%s4719_s4 + $0x1b30] sm:$0xff] }
 0x1e8   : > { %4122 = vmatpush1.bf16.msra.mxu0 %v4121_v21  ;;  %v3214_v21 = vld [vmem:[%s4719_s4 + $0x1a68] sm:$0xff] }
 0x1e9   : > { %4124 = vmatprep.subr.bf16.mxu0 %v4123_v45  ;;  %4110 = vmatpush1.bf16.msra.mxu1 %v4109_v13  ;;  %v3167_v45 = vld [vmem:[%s4719_s4 + $0x1900] sm:$0xff]  ;;  %v4187_v51 = vpack.c.bf16 %v3216_v43, %v3214_v21  ;;  %v3236_v21 = vld [vmem:[%s4719_s4 + $0x1b18] sm:$0xff] }
 0x1ea   : > { %4176 = vmatprep.subr.bf16.mxu1 %v4175_v49  ;;  %v4145_v54 = vpack.c.bf16 %v3169_v46, %v3167_v45  ;;  %v3221_v49 = vld [vmem:[%s4719_s4 + $0x1aa0] sm:$0xff]  ;;  %v3189_v45 = vld [vmem:[%s4719_s4 + $0x19b0] sm:$0xff]  ;;  %v3192_v46 = vld [vmem:[%s4719_s4 + $0x19c8] sm:$0xff] }
 0x1eb   : > { %v4197_v24 = vpack.c.bf16 %v3223_v14, %v3221_v49  ;;  %v3243_v49 = vld [vmem:[%s4719_s4 + $0x1b50] sm:$0xff] }
 0x1ec   : > { %4126 = vmatpush1.bf16.msra.mxu0 %v4125_v55  ;;  %1859 = vmatmul.mubr.f32.vlgmr.msra.gmra.mrb[10].mxu1 %v5396_v17  ;;  %v4141_v17 = vpack.c.bf16 %v3165_v34, %v3163_v33  ;;  %v3218_v55 = vld [vmem:[%s4719_s4 + $0x1a88] sm:$0xff] }
 0x1ed   : > { %4128 = vmatprep.subr.bf16.mxu0 %v4127_v58  ;;  %4178 = vmatpush1.bf16.msra.mxu1 %v4177_v10  ;;  %v3171_v58 = vld [vmem:[%s4719_s4 + $0x1920] sm:$0xff]  ;;  %v4191_v63 = vpack.c.bf16 %v3220_v56, %v3218_v55  ;;  %v3188_v34 = vld [vmem:[%s4719_s4 + $0x19a8] sm:$0xff]  ;;  %v3240_v55 = vld [vmem:[%s4719_s4 + $0x1b38] sm:$0xff]  ;;  %v4167_v56 = vpack.c.bf16 %v3194_v47, %v3192_v46 }
 0x1ee   : > { %2136 = vmatprep.mubr.f32.mxu1 %v5587_v38  ;;  %4180 = vmatprep.subr.bf16.mxu1 %v4179_v26  ;;  %v4149_v2 = vpack.c.bf16 %v3173_v59, %v3171_v58  ;;  %v3225_v10 = vld [vmem:[%s4719_s4 + $0x1ac0] sm:$0xff]  ;;  %v4163_v43 = vpack.c.bf16 %v3190_v35, %v3188_v34  ;;  %v3193_v58 = vld [vmem:[%s4719_s4 + $0x19d0] sm:$0xff]  ;;  %v3196_v59 = vld [vmem:[%s4719_s4 + $0x19e8] sm:$0xff] }
 0x1ef   : > { %v5672_v34 = vld [vmem:[#allocation2] sm:$0xff] }
 0x1f0   : > { %4130 = vmatpush1.bf16.msra.mxu0 %v4129_v3  ;;  %v3222_v3 = vld [vmem:[%s4719_s4 + $0x1aa8] sm:$0xff] }
 0x1f1   : > { %4132 = vmatprep.subr.bf16.mxu0 %v4131_v7  ;;  %4182 = vmatpush1.bf16.msra.mxu1 %v4181_v37  ;;  %v3175_v7 = vld [vmem:[%s4719_s4 + $0x1940] sm:$0xff]  ;;  %v4195_v13 = vpack.c.bf16 %v3224_v5, %v3222_v3  ;;  %v3244_v3 = vld [vmem:[%s4719_s4 + $0x1b58] sm:$0xff]  ;;  %v4171_v5 = vpack.c.bf16 %v3198_v60, %v3196_v59 }
 0x1f2   : > { %v887_v23 = vpop.f32.mrb[4].mxu0  ;;  %4184 = vmatprep.subr.bf16.mxu1 %v4183_v39  ;;  %v4153_v15 = vpack.c.bf16 %v3177_v8, %v3175_v7  ;;  %v3229_v39 = vld [vmem:[%s4719_s4 + $0x1ae0] sm:$0xff]  ;;  %v3197_v7 = vld [vmem:[%s4719_s4 + $0x19f0] sm:$0xff]  ;;  %v3268_v8 = vld [vmem:[%s4719_s4 + $0x1c08] sm:$0xff] }
 0x1f3   : > { %2671 = vst [vmem:[%s5298_s20 + $0x40] sm:$0xff] %v887_v23  ;;  %v889_v25 = vpop.f32.mrb[5].mxu0  ;;  %v3186_v23 = vld [vmem:[%s4719_s4 + $0x1998] sm:$0xff]  ;;  %v4205_v48 = vpack.c.bf16 %v3231_v40, %v3229_v39  ;;  %v3254_v40 = vld [vmem:[%s4719_s4 + $0x1ba8] sm:$0xff]  ;;  %v3257_v60 = vld [vmem:[%s4719_s4 + $0x1bc0] sm:$0xff] }
 0x1f4   : > { %2672 = vst [vmem:[%s5298_s20 + $0x48] sm:$0xff] %v889_v25  ;;  %4134 = vmatpush1.bf16.msra.mxu0 %v4133_v42  ;;  %v3226_v42 = vld [vmem:[%s4719_s4 + $0x1ac8] sm:$0xff]  ;;  %v3227_v25 = vld [vmem:[%s4719_s4 + $0x1ad0] sm:$0xff]  ;;  %v4159_v30 = vpack.c.bf16 %v3186_v23, %v3184_v22  ;;  %v3274_v22 = vld [vmem:[%s4719_s4 + $0x1c38] sm:$0xff] }
 0x1f5   : > { %4136 = vmatprep.subr.bf16.mxu0 %v4135_v19  ;;  %4186 = vmatpush1.bf16.msra.mxu1 %v4185_v50  ;;  %v3179_v19 = vld [vmem:[%s4719_s4 + $0x1960] sm:$0xff]  ;;  %v4199_v4 = vpack.c.bf16 %v3228_v16, %v3226_v42  ;;  %v4201_v36 = vpack.c.bf16 %v3227_v25, %v3225_v10  ;;  %v3248_v42 = vld [vmem:[%s4719_s4 + $0x1b78] sm:$0xff]  ;;  %v4239_v16 = vpack.c.bf16 %v3270_v9, %v3268_v8  ;;  %v3247_v10 = vld [vmem:[%s4719_s4 + $0x1b70] sm:$0xff] }
 0x1f6   : > { %4188 = vmatprep.subr.bf16.mxu1 %v4187_v51  ;;  %v4157_v26 = vpack.c.bf16 %v3181_v20, %v3179_v19  ;;  %v3233_v51 = vld [vmem:[%s4719_s4 + $0x1b00] sm:$0xff]  ;;  %v3269_v19 = vld [vmem:[%s4719_s4 + $0x1c10] sm:$0xff]  ;;  %v3272_v20 = vld [vmem:[%s4719_s4 + $0x1c28] sm:$0xff] }
 0x1f7   : > { %v4209_v61 = vpack.c.bf16 %v3235_v52, %v3233_v51  ;;  %v3258_v51 = vld [vmem:[%s4719_s4 + $0x1bc8] sm:$0xff]  ;;  %v3260_v52 = vld [vmem:[%s4719_s4 + $0x1bd8] sm:$0xff]  ;;  %v3261_v9 = vld [vmem:[%s4719_s4 + $0x1be0] sm:$0xff] }
 0x1f8   : > { %4138 = vmatpush1.bf16.msra.mxu0 %v4137_v29  ;;  %v3232_v29 = vld [vmem:[%s4719_s4 + $0x1af8] sm:$0xff]  ;;  %v4231_v59 = vpack.c.bf16 %v3260_v52, %v3258_v51  ;;  %v3311_v52 = vld [vmem:[%s4719_s4 + $0x1d60] sm:$0xff] }
 0x1f9   : > { %4140 = vmatprep.subr.bf16.mxu0 %v4139_v32  ;;  %4190 = vmatpush1.bf16.msra.mxu1 %v4189_v62  ;;  %v3185_v32 = vld [vmem:[%s4719_s4 + $0x1990] sm:$0xff]  ;;  %v4203_v37 = vpack.c.bf16 %v3232_v29, %v3230_v28  ;;  %v4243_v28 = vpack.c.bf16 %v3274_v22, %v3272_v20  ;;  %v3271_v29 = vld [vmem:[%s4719_s4 + $0x1c20] sm:$0xff] }
 0x1fa   : > { %4192 = vmatprep.subr.bf16.mxu1 %v4191_v63  ;;  %v4161_v41 = vpack.c.bf16 %v3185_v32, %v3183_v31  ;;  %v3237_v63 = vld [vmem:[%s4719_s4 + $0x1b20] sm:$0xff]  ;;  %v3276_v31 = vld [vmem:[%s4719_s4 + $0x1c48] sm:$0xff]  ;;  %v3278_v32 = vld [vmem:[%s4719_s4 + $0x1c58] sm:$0xff] }
 0x1fb   : > { %v4213_v11 = vpack.c.bf16 %v3239_v0, %v3237_v63  ;;  %v3262_v63 = vld [vmem:[%s4719_s4 + $0x1be8] sm:$0xff]  ;;  %v3264_v0 = vld [vmem:[%s4719_s4 + $0x1bf8] sm:$0xff]  ;;  %v3291_v20 = vld [vmem:[%s4719_s4 + $0x1cc0] sm:$0xff] }
 0x1fc   : > { %4142 = vmatpush1.bf16.msra.mxu0 %v4141_v17  ;;  %v3234_v17 = vld [vmem:[%s4719_s4 + $0x1b08] sm:$0xff]  ;;  %v4235_v8 = vpack.c.bf16 %v3264_v0, %v3262_v63  ;;  %v3293_v22 = vld [vmem:[%s4719_s4 + $0x1cd0] sm:$0xff]  ;;  %v3322_v63 = vld [vmem:[%s4719_s4 + $0x1db8] sm:$0xff] }
 0x1fd   : > { %4144 = vmatprep.subr.bf16.mxu0 %v4143_v44  ;;  %4194 = vmatpush1.bf16.msra.mxu1 %v4193_v12  ;;  %v3187_v44 = vld [vmem:[%s4719_s4 + $0x19a0] sm:$0xff]  ;;  %v4207_v50 = vpack.c.bf16 %v3236_v21, %v3234_v17  ;;  %v4247_v17 = vpack.c.bf16 %v3278_v32, %v3276_v31 }
 0x1fe   : > { %4196 = vmatprep.subr.bf16.mxu1 %v4195_v13  ;;  %v4165_v53 = vpack.c.bf16 %v3189_v45, %v3187_v44  ;;  %v3241_v13 = vld [vmem:[%s4719_s4 + $0x1b40] sm:$0xff]  ;;  %v3280_v44 = vld [vmem:[%s4719_s4 + $0x1c68] sm:$0xff]  ;;  %v3282_v45 = vld [vmem:[%s4719_s4 + $0x1c78] sm:$0xff] }
 0x1ff   : > { %v1026_v27 = vpop.f32.mrb[4].mxu1  ;;  %v4217_v23 = vpack.c.bf16 %v3243_v49, %v3241_v13  ;;  %v3275_v21 = vld [vmem:[%s4719_s4 + $0x1c40] sm:$0xff] }
 0x200   : > { %4146 = vmatpush1.bf16.msra.mxu0 %v4145_v54  ;;  %2737 = vst [vmem:[%s5298_s20 + $0x50] sm:$0xff] %v1026_v27  ;;  %v1028_v33 = vpop.f32.mrb[5].mxu1  ;;  %v3238_v54 = vld [vmem:[%s4719_s4 + $0x1b28] sm:$0xff]  ;;  %v3252_v27 = vld [vmem:[%s4719_s4 + $0x1b98] sm:$0xff]  ;;  %v3287_v49 = vld [vmem:[%s4719_s4 + $0x1ca0] sm:$0xff] }
 0x201   : > { %4148 = vmatprep.subr.bf16.mxu0 %v4147_v57  ;;  %2738 = vst [vmem:[%s5298_s20 + $0x58] sm:$0xff] %v1028_v33  ;;  %4198 = vmatpush1.bf16.msra.mxu1 %v4197_v24  ;;  %v3191_v57 = vld [vmem:[%s4719_s4 + $0x19c0] sm:$0xff]  ;;  %v4211_v62 = vpack.c.bf16 %v3240_v55, %v3238_v54  ;;  %v3281_v55 = vld [vmem:[%s4719_s4 + $0x1c70] sm:$0xff] }
 0x202   : > { %4200 = vmatprep.subr.bf16.mxu1 %v4199_v4  ;;  %v4169_v1 = vpack.c.bf16 %v3193_v58, %v3191_v57  ;;  %v3245_v4 = vld [vmem:[%s4719_s4 + $0x1b60] sm:$0xff]  ;;  %v3286_v57 = vld [vmem:[%s4719_s4 + $0x1c98] sm:$0xff] }
 0x203   : > { %v4221_v33 = vpack.c.bf16 %v3247_v10, %v3245_v4  ;;  %v3279_v54 = vld [vmem:[%s4719_s4 + $0x1c60] sm:$0xff]  ;;  %v3298_v4 = vld [vmem:[%s4719_s4 + $0x1cf8] sm:$0xff] }
 0x204   : > { %4150 = vmatpush1.bf16.msra.mxu0 %v4149_v2  ;;  %v3242_v2 = vld [vmem:[%s4719_s4 + $0x1b48] sm:$0xff] }
 0x205   : > { %4152 = vmatprep.subr.bf16.mxu0 %v4151_v6  ;;  %4202 = vmatpush1.bf16.msra.mxu1 %v4201_v36  ;;  %v3195_v6 = vld [vmem:[%s4719_s4 + $0x19e0] sm:$0xff]  ;;  %v4215_v12 = vpack.c.bf16 %v3244_v3, %v3242_v2  ;;  %v3285_v3 = vld [vmem:[%s4719_s4 + $0x1c90] sm:$0xff] }
 0x206   : > { %4204 = vmatprep.subr.bf16.mxu1 %v4203_v37  ;;  %v4173_v14 = vpack.c.bf16 %v3197_v7, %v3195_v6  ;;  %v3249_v36 = vld [vmem:[%s4719_s4 + $0x1b80] sm:$0xff]  ;;  %v3251_v37 = vld [vmem:[%s4719_s4 + $0x1b90] sm:$0xff]  ;;  %v3290_v6 = vld [vmem:[%s4719_s4 + $0x1cb8] sm:$0xff] }
 0x207   : > { %v4225_v46 = vpack.c.bf16 %v3251_v37, %v3249_v36  ;;  %v3283_v2 = vld [vmem:[%s4719_s4 + $0x1c80] sm:$0xff]  ;;  %v3304_v36 = vld [vmem:[%s4719_s4 + $0x1d28] sm:$0xff]  ;;  %v3306_v37 = vld [vmem:[%s4719_s4 + $0x1d38] sm:$0xff] }
 0x208   : > { %4154 = vmatpush1.bf16.msra.mxu0 %v4153_v15  ;;  %v3246_v15 = vld [vmem:[%s4719_s4 + $0x1b68] sm:$0xff] }
 0x209   : > { %4156 = vmatprep.subr.bf16.mxu0 %v4155_v18  ;;  %4206 = vmatpush1.bf16.msra.mxu1 %v4205_v48  ;;  %v3267_v18 = vld [vmem:[%s4719_s4 + $0x1c00] sm:$0xff]  ;;  %v4219_v24 = vpack.c.bf16 %v3248_v42, %v3246_v15  ;;  %v3292_v15 = vld [vmem:[%s4719_s4 + $0x1cc8] sm:$0xff]  ;;  %v3294_v42 = vld [vmem:[%s4719_s4 + $0x1cd8] sm:$0xff] }
 0x20a   : > { %4208 = vmatprep.subr.bf16.mxu1 %v4207_v50  ;;  %v4241_v25 = vpack.c.bf16 %v3269_v19, %v3267_v18  ;;  %v3253_v48 = vld [vmem:[%s4719_s4 + $0x1ba0] sm:$0xff]  ;;  %v3255_v50 = vld [vmem:[%s4719_s4 + $0x1bb0] sm:$0xff]  ;;  %v4263_v19 = vpack.c.bf16 %v3294_v42, %v3292_v15 }
 0x20b   : > { %v4229_v58 = vpack.c.bf16 %v3255_v50, %v3253_v48  ;;  %v3312_v48 = vld [vmem:[%s4719_s4 + $0x1d68] sm:$0xff]  ;;  %v3314_v50 = vld [vmem:[%s4719_s4 + $0x1d78] sm:$0xff]  ;;  %v3327_v15 = vld [vmem:[%s4719_s4 + $0x1de0] sm:$0xff] }
 0x20c   : > { %4158 = vmatpush1.bf16.msra.mxu0 %v4157_v26  ;;  %v3250_v26 = vld [vmem:[%s4719_s4 + $0x1b88] sm:$0xff]  ;;  %v4283_v51 = vpack.c.bf16 %v3314_v50, %v3312_v48  ;;  %v3329_v42 = vld [vmem:[%s4719_s4 + $0x1df0] sm:$0xff] }
 0x20d   : > { %4160 = vmatprep.subr.bf16.mxu0 %v4159_v30  ;;  %4210 = vmatpush1.bf16.msra.mxu1 %v4209_v61  ;;  %v3273_v30 = vld [vmem:[%s4719_s4 + $0x1c30] sm:$0xff]  ;;  %v4223_v35 = vpack.c.bf16 %v3252_v27, %v3250_v26  ;;  %v3295_v27 = vld [vmem:[%s4719_s4 + $0x1ce0] sm:$0xff] }
 0x20e   : > { %4212 = vmatprep.subr.bf16.mxu1 %v4211_v62  ;;  %v4245_v39 = vpack.c.bf16 %v3273_v30, %v3271_v29  ;;  %v3259_v61 = vld [vmem:[%s4719_s4 + $0x1bd0] sm:$0xff]  ;;  %v4253_v62 = vpack.c.bf16 %v3281_v55, %v3279_v54  ;;  %v3300_v29 = vld [vmem:[%s4719_s4 + $0x1d08] sm:$0xff]  ;;  %v3302_v30 = vld [vmem:[%s4719_s4 + $0x1d18] sm:$0xff] }
 0x20f   : > { %v4233_v7 = vpack.c.bf16 %v3259_v61, %v3257_v60  ;;  %v4271_v32 = vpack.c.bf16 %v3302_v30, %v3300_v29  ;;  %v3316_v54 = vld [vmem:[%s4719_s4 + $0x1d88] sm:$0xff]  ;;  %v3318_v55 = vld [vmem:[%s4719_s4 + $0x1d98] sm:$0xff]  ;;  %v3317_v60 = vld [vmem:[%s4719_s4 + $0x1d90] sm:$0xff] }
 0x210   : > { %4162 = vmatpush1.bf16.msra.mxu0 %v4161_v41  ;;  %v3256_v41 = vld [vmem:[%s4719_s4 + $0x1bb8] sm:$0xff] }
 0x211   : > { %4164 = vmatprep.subr.bf16.mxu0 %v4163_v43  ;;  %4214 = vmatpush1.bf16.msra.mxu1 %v4213_v11  ;;  %v3277_v43 = vld [vmem:[%s4719_s4 + $0x1c50] sm:$0xff]  ;;  %v4227_v47 = vpack.c.bf16 %v3256_v41, %v3254_v40  ;;  %v4275_v40 = vpack.c.bf16 %v3306_v37, %v3304_v36  ;;  %v3303_v41 = vld [vmem:[%s4719_s4 + $0x1d20] sm:$0xff] }
 0x212   : > { %4216 = vmatprep.subr.bf16.mxu1 %v4215_v12  ;;  %v3263_v11 = vld [vmem:[%s4719_s4 + $0x1bf0] sm:$0xff]  ;;  %v4257_v12 = vpack.c.bf16 %v3285_v3, %v3283_v2  ;;  %v3319_v2 = vld [vmem:[%s4719_s4 + $0x1da0] sm:$0xff] }
 0x213   : > { %v3321_v3 = vld [vmem:[%s4719_s4 + $0x1db0] sm:$0xff] }
 0x214   : > { %4166 = vmatpush1.bf16.msra.mxu0 %v4165_v53  ;;  %v4251_v53 = vpack.c.bf16 %v3282_v45, %v3280_v44 }
 0x215   : > { %4168 = vmatprep.subr.bf16.mxu0 %v4167_v56  ;;  %4218 = vmatpush1.bf16.msra.mxu1 %v4217_v23  ;;  %v3284_v56 = vld [vmem:[%s4719_s4 + $0x1c88] sm:$0xff] }
 0x216   : > { %4220 = vmatprep.subr.bf16.mxu1 %v4219_v24  ;;  %v3296_v24 = vld [vmem:[%s4719_s4 + $0x1ce8] sm:$0xff] }
 0x217   : > { %v4267_v26 = vpack.c.bf16 %v3298_v4, %v3296_v24 }
 0x218   : > { %4170 = vmatpush1.bf16.msra.mxu0 %v4169_v1  ;;  %v4255_v1 = vpack.c.bf16 %v3286_v57, %v3284_v56 }
 0x219   : > { %4172 = vmatprep.subr.bf16.mxu0 %v4171_v5  ;;  %4222 = vmatpush1.bf16.msra.mxu1 %v4221_v33  ;;  %v3288_v5 = vld [vmem:[%s4719_s4 + $0x1ca8] sm:$0xff]  ;;  %v3299_v33 = vld [vmem:[%s4719_s4 + $0x1d00] sm:$0xff] }
 0x21a   : > { %4224 = vmatprep.subr.bf16.mxu1 %v4223_v35  ;;  %v4259_v13 = vpack.c.bf16 %v3290_v6, %v3288_v5  ;;  %v3301_v35 = vld [vmem:[%s4719_s4 + $0x1d10] sm:$0xff]  ;;  %v3324_v5 = vld [vmem:[%s4719_s4 + $0x1dc8] sm:$0xff]  ;;  %v3326_v6 = vld [vmem:[%s4719_s4 + $0x1dd8] sm:$0xff] }
 0x21c   : > { %4174 = vmatpush1.bf16.msra.mxu0 %v4173_v14  ;;  %v3289_v14 = vld [vmem:[%s4719_s4 + $0x1cb0] sm:$0xff] }
 0x21d   : > { %4240 = vmatprep.subr.bf16.mxu0 %v4239_v16  ;;  %4226 = vmatpush1.bf16.msra.mxu1 %v4225_v46  ;;  %v4237_v16 = vpack.c.bf16 %v3263_v11, %v3261_v9  ;;  %v4261_v18 = vpack.c.bf16 %v3289_v14, %v3287_v49  ;;  %v3307_v46 = vld [vmem:[%s4719_s4 + $0x1d40] sm:$0xff]  ;;  %v3325_v11 = vld [vmem:[%s4719_s4 + $0x1dd0] sm:$0xff] }
 0x21e   : > { %4228 = vmatprep.subr.bf16.mxu1 %v4227_v47  ;;  %v3309_v47 = vld [vmem:[%s4719_s4 + $0x1d50] sm:$0xff]  ;;  %v3323_v9 = vld [vmem:[%s4719_s4 + $0x1dc0] sm:$0xff] }
 0x21f   : > { %1998 = vmatmul.mubr.f32.vlgmr.msra.gmra.mrb[12].mxu0 %v5672_v34  ;;  %v4297_v49 = vpack.c.bf16 %v3325_v11, %v3323_v9 }
 0x220   : > { %4242 = vmatpush1.bf16.msra.mxu0 %v4241_v25  ;;  %2275 = vmatprep.mubr.f32.mxu0 %v5587_v38  ;;  %v4249_v38 = vpack.c.bf16 %v3277_v43, %v3275_v21  ;;  %v4265_v25 = vpack.c.bf16 %v3293_v22, %v3291_v20  ;;  %v3308_v21 = vld [vmem:[%s4719_s4 + $0x1d48] sm:$0xff]  ;;  %v3310_v43 = vld [vmem:[%s4719_s4 + $0x1d58] sm:$0xff] }
 0x221   : > { %4244 = vmatprep.subr.bf16.mxu0 %v4243_v28  ;;  %4230 = vmatpush1.bf16.msra.mxu1 %v4229_v58  ;;  %v3297_v28 = vld [vmem:[%s4719_s4 + $0x1cf0] sm:$0xff]  ;;  %v4279_v45 = vpack.c.bf16 %v3310_v43, %v3308_v21  ;;  %v4287_v58 = vpack.c.bf16 %v3318_v55, %v3316_v54 }
 0x222   : > { %4232 = vmatprep.subr.bf16.mxu1 %v4231_v59  ;;  %v4269_v31 = vpack.c.bf16 %v3297_v28, %v3295_v27  ;;  %v3315_v59 = vld [vmem:[%s4719_s4 + $0x1d80] sm:$0xff] }
 0x223   : > { %v4289_v0 = vpack.c.bf16 %v3317_v60, %v3315_v59 }
 0x224   : > { %4246 = vmatpush1.bf16.msra.mxu0 %v4245_v39  ;;  %v4273_v39 = vpack.c.bf16 %v3301_v35, %v3299_v33 }
 0x225   : > { %4248 = vmatprep.subr.bf16.mxu0 %v4247_v17  ;;  %4234 = vmatpush1.bf16.msra.mxu1 %v4233_v7  ;;  %v3305_v17 = vld [vmem:[%s4719_s4 + $0x1d30] sm:$0xff]  ;;  %v4293_v7 = vpack.c.bf16 %v3321_v3, %v3319_v2 }
 0x226   : > { %4236 = vmatprep.subr.bf16.mxu1 %v4235_v8  ;;  %v4277_v44 = vpack.c.bf16 %v3305_v17, %v3303_v41  ;;  %v4295_v8 = vpack.c.bf16 %v3326_v6, %v3324_v5 }
 0x228   : > { %4250 = vmatpush1.bf16.msra.mxu0 %v4249_v38  ;;  %v4281_v38 = vpack.c.bf16 %v3309_v47, %v3307_v46 }
 0x229   : > { %4252 = vmatprep.subr.bf16.mxu0 %v4251_v53  ;;  %4238 = vmatpush1.bf16.msra.mxu1 %v4237_v16  ;;  %v3313_v53 = vld [vmem:[%s4719_s4 + $0x1d70] sm:$0xff]  ;;  %v4301_v16 = vpack.c.bf16 %v3329_v42, %v3327_v15 }
 0x22a   : > { %v4285_v56 = vpack.c.bf16 %v3313_v53, %v3311_v52 }
 0x22c   : > { %4254 = vmatpush1.bf16.msra.mxu0 %v4253_v62  ;;  %2137 = vmatmul.mubr.f32.vlgmr.msra.gmra.mrb[12].mxu1 %v5672_v34  ;;  %v3320_v62 = vld [vmem:[%s4719_s4 + $0x1da8] sm:$0xff] }
 0x22d   : > { %4256 = vmatprep.subr.bf16.mxu0 %v4255_v1  ;;  %v4291_v1 = vpack.c.bf16 %v3322_v63, %v3320_v62 }
 0x230   : > { %4258 = vmatpush1.bf16.msra.mxu0 %v4257_v12  ;;  %v3328_v12 = vld [vmem:[%s4719_s4 + $0x1de8] sm:$0xff] }
 0x231   : > { %4260 = vmatprep.subr.bf16.mxu0 %v4259_v13  ;;  %v3330_v13 = vld [vmem:[%s4719_s4 + $0x1df8] sm:$0xff] }
 0x232   : > { %v1165_v23 = vpop.f32.mrb[6].mxu0  ;;  %v4299_v14 = vpack.c.bf16 %v3330_v13, %v3328_v12 }
 0x233   : > { %2803 = vst [vmem:[%s5298_s20 + $0x60] sm:$0xff] %v1165_v23  ;;  %v1167_v10 = vpop.f32.mrb[7].mxu0 }
 0x234   : > { %2804 = vst [vmem:[%s5298_s20 + $0x68] sm:$0xff] %v1167_v10  ;;  %4262 = vmatpush1.bf16.msra.mxu0 %v4261_v18 }
 0x235   : > { %4264 = vmatprep.subr.bf16.mxu0 %v4263_v19 }
 0x238   : > { %4266 = vmatpush1.bf16.msra.mxu0 %v4265_v25 }
 0x239   : > { %4268 = vmatprep.subr.bf16.mxu0 %v4267_v26 }
 0x23c   : > { %4270 = vmatpush1.bf16.msra.mxu0 %v4269_v31 }
 0x23d   : > { %4272 = vmatprep.subr.bf16.mxu0 %v4271_v32 }
 0x23f   : > { %v1304_v57 = vpop.f32.mrb[6].mxu1 }
 0x240   : > { %4274 = vmatpush1.bf16.msra.mxu0 %v4273_v39  ;;  %2869 = vst [vmem:[%s5298_s20 + $0x70] sm:$0xff] %v1304_v57  ;;  %v1306_v61 = vpop.f32.mrb[7].mxu1 }
 0x241   : > { %4276 = vmatprep.subr.bf16.mxu0 %v4275_v40  ;;  %2870 = vst [vmem:[%s5298_s20 + $0x78] sm:$0xff] %v1306_v61 }
 0x244   : > { %4278 = vmatpush1.bf16.msra.mxu0 %v4277_v44 }
 0x245   : > { %4280 = vmatprep.subr.bf16.mxu0 %v4279_v45 }
 0x248   : > { %4282 = vmatpush1.bf16.msra.mxu0 %v4281_v38 }
 0x249   : > { %4284 = vmatprep.subr.bf16.mxu0 %v4283_v51 }
 0x24c   : > { %4286 = vmatpush1.bf16.msra.mxu0 %v4285_v56 }
 0x24d   : > { %4288 = vmatprep.subr.bf16.mxu0 %v4287_v58 }
 0x250   : > { %4290 = vmatpush1.bf16.msra.mxu0 %v4289_v0 }
 0x251   : > { %4292 = vmatprep.subr.bf16.mxu0 %v4291_v1 }
 0x254   : > { %4294 = vmatpush1.bf16.msra.mxu0 %v4293_v7 }
 0x255   : > { %4296 = vmatprep.subr.bf16.mxu0 %v4295_v8 }
 0x258   : > { %4298 = vmatpush1.bf16.msra.mxu0 %v4297_v49 }
 0x259   : > { %4300 = vmatprep.subr.bf16.mxu0 %v4299_v14 }
 0x25c   : > { %4302 = vmatpush1.bf16.msra.mxu0 %v4301_v16 }
 0x25f   : > { %2276 = vmatmul.mubr.f32.vlgmr.msra.gmra.mrb[14].mxu0 %v5672_v34 }
 0x272   : > { %v1443_v18 = vpop.f32.mrb[8].mxu0 }
 0x273   : > { %2935 = vst [vmem:[%s5298_s20 + $0x80] sm:$0xff] %v1443_v18  ;;  %v1445_v19 = vpop.f32.mrb[9].mxu0 }
 0x274   : > { %2936 = vst [vmem:[%s5298_s20 + $0x88] sm:$0xff] %v1445_v19 }
 0x27f   : > { %v1582_v20 = vpop.f32.mrb[8].mxu1 }
 0x280   : > { %3001 = vst [vmem:[%s5298_s20 + $0x90] sm:$0xff] %v1582_v20  ;;  %v1584_v22 = vpop.f32.mrb[9].mxu1 }
 0x281   : > { %3002 = vst [vmem:[%s5298_s20 + $0x98] sm:$0xff] %v1584_v22 }
 0x2b2   : > { %v1721_v23 = vpop.f32.mrb[10].mxu0 }
 0x2b3   : > { %3067 = vst [vmem:[%s5298_s20 + $0xa0] sm:$0xff] %v1721_v23  ;;  %v1723_v24 = vpop.f32.mrb[11].mxu0 }
 0x2b4   : > { %3068 = vst [vmem:[%s5298_s20 + $0xa8] sm:$0xff] %v1723_v24 }
 0x2bf   : > { %v1860_v34 = vpop.f32.mrb[10].mxu1 }
 0x2c0   : > { %3133 = vst [vmem:[%s5298_s20 + $0xb0] sm:$0xff] %v1860_v34  ;;  %v1862_v4 = vpop.f32.mrb[11].mxu1 }
 0x2c1   : > { %3134 = vst [vmem:[%s5298_s20 + $0xb8] sm:$0xff] %v1862_v4 }
 0x2f2   : > { %v1999_v10 = vpop.f32.mrb[12].mxu0 }
 0x2f3   : > { %3199 = vst [vmem:[%s5298_s20 + $0xc0] sm:$0xff] %v1999_v10  ;;  %v2001_v25 = vpop.f32.mrb[13].mxu0 }
 0x2f4   : > { %3200 = vst [vmem:[%s5298_s20 + $0xc8] sm:$0xff] %v2001_v25 }
 0x2ff   : > { %v2138_v26 = vpop.f32.mrb[12].mxu1 }
 0x300   : > { %3265 = vst [vmem:[%s5298_s20 + $0xd0] sm:$0xff] %v2138_v26  ;;  %v2140_v27 = vpop.f32.mrb[13].mxu1 }
 0x301   : > { %3266 = vst [vmem:[%s5298_s20 + $0xd8] sm:$0xff] %v2140_v27 }
 0x332   : > { %v2277_v28 = vpop.f32.mrb[14].mxu0 }
 0x333   : > { %3331 = vst [vmem:[%s5298_s20 + $0xe0] sm:$0xff] %v2277_v28  ;;  %v2279_v29 = vpop.f32.mrb[15].mxu0 }
 0x334   : > { %3332 = vst [vmem:[%s5298_s20 + $0xe8] sm:$0xff] %v2279_v29 }
 0x335   : > { %4460 = shalt.err (!%p4457_p7)
}
 0x336   : > { %s4461_s6 = scalar_lea.hbm %s5767_s29, 3840  ;;  %s4465_s24 = scalar_lea.hbm %s5822_s2, 7680 }
 0x337   : > { %p4462_p13 = scmp.ne.s32.totalorder %s5767_s29, %s4461_s6  ;;  %p4466_p12 = scmp.lt.u32.totalorder %s5767_s29, %s5822_s2 }
 0x338   : > { %p4467_p4 = scmp.lt.u32.totalorder %s4465_s24, %s4461_s6  ;;  %p4469_p5 = scmp.lt.u32.totalorder %s4461_s6, %s5767_s29 }
 0x339   : > { %p4463_p2 = pnand %p4462_p13, %p5843_p10 }
 0x33a   : > { %p4468_p8 = por %p4467_p4, %p4466_p12 }
 0x33b   : > { %p4464_p6 = pneg %p4463_p2 }
 0x33c   : > { %p4470_p11 = por %p4469_p5, %p4468_p8 }
 0x33e   : > { %p4471_p1 = pnand %p4470_p11, %p4464_p6 }
 0x340   : > { %4474 = shalt.err (!%p4471_p1)
}
 0x341   : > { %s4540_s18 = smov 256   ;;  %s4541_s20 = smov 16  }
 0x342   : > { %4312 = dma.vmem_to_hbm [thread:$0]  (%p5843_p10), %s5769_s26, 3840, %s5767_s29, %s2286_s5, %s4540_s18, %s4540_s18, %s4541_s20  }
 0x343 PF: > { %s2317_s23 = sand.u32 1, %s4513_s9   ;;  %p5844_p0 = scmp.ne.s32.totalorder %s5833_s22, 0 }
 0x344   : > { %p5845_p9 = scmp.ge.s32.totalorder %s4533_s14, 2  ;;  %s2318_s7 = scalar_lea.sflag [#allocation4], %s2317_s23 }
 0x346   : > { %p4323_p3 = pnand %p5845_p9, %p5844_p0 }
 0x348   : > { %4508 = dma.done.wait (!%p4323_p3), %s2318_s7, 3840  }
 0x349   : > { %4510 = vsyncadd (!%p4323_p3), %s2318_s7, 4294963456  ;;  %s19_s14 = sadd.s32 1, %s4533_s14   ;;  %s5846_s9 = smov %s4517_s10 }
 0x34a   : > { %p16_p7 = scmp.ge.s32.totalorder %s19_s14, 4   ;;  %s5847_s10 = smov %s4521_s11 }
 0x34b   : > { %s5848_s11 = smov %s4676_s25  ;;  %s5849_s12 = smov %s4529_s13 }
 0x34c   : > { %s5850_s13 = smov %s5852_s28  ;;  %18 = sbr.rel (!%p16_p7) target bundleno = 7 (0x7), region = 107 }
 0x353   :  { %2323 = vsyncpa [#allocation3], 1 }
 0x354   :  { %2325 = vsyncpa [#allocation3 + $0x1], 1 }
 0x355   :  { %2326 = vsyncpa [#allocation6], 1 }
 0x356   :  { %2328 = vsyncpa [#allocation6 + $0x1], 1 }
 0x357   :  { %2329 = vsyncpa [#allocation4], 1 }
 0x358   :  { %2331 = vsyncpa [#allocation4 + $0x1], 1 }

</bundles_post_ra>
